<compile_context>
chip_gen: v7x
topology: tpu7x:2x2x1
jax: 0.10.0
libtpu: 0.0.40
codegen_flags: <defaults>
</compile_context>

<pallas_src>
import functools

import jax
import jax.numpy as jnp
from jax.experimental import pallas as pl
from jax.experimental.pallas import tpu as pltpu


# ---------------------------------------------------------------------------
# Fused RDB kernel
# ---------------------------------------------------------------------------
def _rdb_fused_kernel(*refs, Nb, Cin, H, W, d_list, gx, gf, d_max, feat_dtype):
    n_layers = len(d_list)
    Hp, Wp = H + 2 * d_max, W + 2 * d_max
    L = Hp * Wp                     # padded flat length of one image (per channel)
    Ltot = Nb * L                   # Nb images laid out back-to-back on lanes
    q0 = d_max * Wp + d_max         # flat index of interior (0, 0) of image 0
    Lc = (Nb - 1) * L + (H - 1) * Wp + W   # contiguous span covering all interiors
    c_pt = gx + n_layers * gf       # padded total channel count (sublane groups of 8)

    x_ref = refs[0]                              # (Nb*Cin, H*W) f32, NCHW-flat
    mask_ref = refs[1]                           # (1, Lc) f32: 1 at interior, 0 at halo/gap
    dense_refs = refs[2:2 + 2 * n_layers]        # per layer: (9, gf, c_in) weights, (gf, 1) bias
    wp_ref = refs[2 + 2 * n_layers]              # (Cin, c_pt) final 1x1 weight (scratch order)
    bp_ref = refs[3 + 2 * n_layers]              # (Cin, 1) f32
    o_ref = refs[4 + 2 * n_layers]               # (Nb*Cin, H*W) f32, dense store block
    stack_ref = refs[5 + 2 * n_layers]           # VMEM (c_pt, Ltot) feat_dtype

    # --- (1) re-establish only what is NOT overwritten below (cheap, and safe
    #         under "parallel" sharding: every grid step is self-contained).
    #   * input(+pad) channel rows: interior rewritten below, halo must be 0
    #   * feature rows: interior span [q0, q0+Lc) rewritten below (masked),
    #     only the head/tail strips outside that span need zeroing.
    stack_ref[0:gx, :] = jnp.zeros((gx, Ltot), feat_dtype)
    stack_ref[gx:c_pt, 0:q0] = jnp.zeros((c_pt - gx, q0), feat_dtype)
    stack_ref[gx:c_pt, q0 + Lc:Ltot] = jnp.zeros((c_pt - gx, Ltot - q0 - Lc), feat_dtype)

    # --- (2) unpack NCHW-flat input rows into the padded, channels-on-sublane stack.
    for i in range(Nb):
        for h in range(H):
            dst = i * L + (d_max + h) * Wp + d_max
            stack_ref[0:Cin, dst:dst + W] = (
                x_ref[i * Cin:(i + 1) * Cin, h * W:(h + 1) * W].astype(feat_dtype))

    interior_mask = mask_ref[...]                # (1, Lc), broadcasts over sublanes

    # --- (3) dense layers: 9 accumulating taps per layer (no im2col concat),
    #         bias + ReLU fused, masked so the halo/gap columns stay zero,
    #         output stored as a sublane-aligned slab ("free" channel concat).
    c_in = gx
    for li, d in enumerate(d_list):
        w_ref = dense_refs[2 * li]               # (9, gf, c_in) feat_dtype
        b_ref = dense_refs[2 * li + 1]           # (gf, 1) f32
        acc = None
        for kh in range(3):
            for kw in range(3):
                off = (kh - 1) * d * Wp + (kw - 1) * d
                rhs = stack_ref[0:c_in, q0 + off:q0 + off + Lc]      # (c_in, Lc)
                part = jax.lax.dot_general(
                    w_ref[kh * 3 + kw], rhs, (((1,), (0,)), ((), ())),
                    preferred_element_type=jnp.float32)              # (gf, Lc)
                acc = part if acc is None else acc + part
        y = jnp.maximum(acc + b_ref[...], 0.0) * interior_mask       # f32 epilogue
        c_out0 = gx + li * gf
        stack_ref[c_out0:c_out0 + gf, q0:q0 + Lc] = y.astype(feat_dtype)
        c_in = c_out0 + gf

    # --- (4) final 1x1 conv (transposed, one matmul over the whole span),
    #         bias + residual in f32, packed into a dense (Nb*Cin, H*W) block.
    resT = jax.lax.dot_general(
        wp_ref[...], stack_ref[0:c_pt, q0:q0 + Lc], (((1,), (0,)), ((), ())),
        preferred_element_type=jnp.float32) + bp_ref[...]            # (Cin, Lc) f32
    for i in range(Nb):
        for h in range(H):
            src = i * L + h * Wp
            o_ref[i * Cin:(i + 1) * Cin, h * W:(h + 1) * W] = (
                resT[:, src:src + W]
                + x_ref[i * Cin:(i + 1) * Cin, h * W:(h + 1) * W])   # residual in f32


# ---------------------------------------------------------------------------
# Host-side wrapper
# ---------------------------------------------------------------------------
def _round_up(v, m):
    return ((v + m - 1) // m) * m


def _pick_images_per_step(N, Cin, max_images=8):
    for nb in range(min(N, max_images), 0, -1):
        if N % nb == 0 and (nb * Cin) % 8 == 0:
            return nb
    return N


def _scratch_channel_map(n_prev, Cin, inter, gx, gf):
    """Torch channel order [f_n, ..., f_1, x] -> scratch channel indices."""
    s = []
    for k in range(n_prev, 0, -1):
        base = gx + (k - 1) * gf
        s.extend(range(base, base + inter))
    s.extend(range(Cin))
    return jnp.asarray(s, dtype=jnp.int32)


def rdb_forward(params, x, d_list, inter_num, *, images_per_step=None,
                feature_dtype=jnp.float32, vmem_limit_bytes=None):
    """x: (N, Cin, H, W) float32 NCHW (torch layout); returns (N, Cin, H, W)."""
    N, Cin, H, W = x.shape
    n_layers = len(d_list)
    d_max = max(d_list)
    Hp, Wp = H + 2 * d_max, W + 2 * d_max
    L = Hp * Wp
    gx = _round_up(Cin, 8)            # input channel group, padded to a sublane tile
    gf = _round_up(inter_num, 8)      # per-layer feature group, padded to a sublane tile
    c_pt = gx + n_layers * gf

    Nb = images_per_step if images_per_step is not None else _pick_images_per_step(N, Cin)
    assert N % Nb == 0, "images_per_step must divide N"
    assert (Nb * Cin) % 8 == 0 or Nb == N, "need >=8 sublanes per output block"

    Ltot = Nb * L
    q0 = d_max * Wp + d_max
    Lc = (Nb - 1) * L + (H - 1) * Wp + W

    # Host-built interior mask (1 at interior pixels, 0 at halo / inter-image gaps).
    j = jnp.arange(Lc, dtype=jnp.int32)
    p = (q0 + j) % L
    r = p // Wp
    c = p % Wp
    mask = (((r >= d_max) & (r < d_max + H) & (c >= d_max) & (c < d_max + W))
            .astype(jnp.float32).reshape(1, Lc))

    # Free row-major reshape: NCHW -> NCHW-flat (no transpose, no copy semantics).
    kernel_args = [x.reshape(N * Cin, H * W), mask]
    in_specs = [
        pl.BlockSpec((Nb * Cin, H * W), lambda n: (n, 0)),
        pl.BlockSpec((1, Lc), lambda n: (0, 0)),
    ]

    # One-time weight packing: torch concat order -> scratch channel order,
    # (3,3,Cin,O) HWIO -> (9, gf, c_in) per-tap matrices, zero-padded groups.
    for i, (w, b) in enumerate(params["dense"]):
        c_in_t = Cin + i * inter_num
        c8 = gx + i * gf
        s = _scratch_channel_map(i, Cin, inter_num, gx, gf)
        w_p = jnp.transpose(w, (0, 1, 3, 2)).reshape(9, inter_num, c_in_t)
        w_c = jnp.zeros((9, inter_num, c8), jnp.float32).at[:, :, s].set(w_p)
        w_full = jnp.zeros((9, gf, c8), feature_dtype).at[:, :inter_num, :].set(
            w_c.astype(feature_dtype))
        b_full = jnp.zeros((gf, 1), jnp.float32).at[:inter_num, 0].set(b)
        kernel_args += [w_full, b_full]
        in_specs += [
            pl.BlockSpec((9, gf, c8), lambda n: (0, 0, 0)),
            pl.BlockSpec((gf, 1), lambda n: (0, 0)),
        ]

    wp, bp = params["post"]
    s = _scratch_channel_map(n_layers, Cin, inter_num, gx, gf)
    wp_full = jnp.zeros((Cin, c_pt), feature_dtype).at[:, s].set(
        wp.T.astype(feature_dtype))
    kernel_args += [wp_full, bp.reshape(Cin, 1).astype(jnp.float32)]
    in_specs += [
        pl.BlockSpec((Cin, c_pt), lambda n: (0, 0)),
        pl.BlockSpec((Cin, 1), lambda n: (0, 0)),
    ]

    kernel = functools.partial(
        _rdb_fused_kernel, Nb=Nb, Cin=Cin, H=H, W=W, d_list=tuple(d_list),
        gx=gx, gf=gf, d_max=d_max, feat_dtype=feature_dtype)

    cp = dict(dimension_semantics=("parallel",))
    if vmem_limit_bytes is not None:   # raise on v5e/v6e for large images instead of striping
        cp["vmem_limit_bytes"] = vmem_limit_bytes

    out_flat = pl.pallas_call(
        kernel,
        out_shape=jax.ShapeDtypeStruct((N * Cin, H * W), jnp.float32),
        grid=(N // Nb,),
        in_specs=in_specs,
        out_specs=pl.BlockSpec((Nb * Cin, H * W), lambda n: (n, 0)),
        scratch_shapes=[pltpu.VMEM((c_pt, Ltot), feature_dtype)],
        compiler_params=pltpu.CompilerParams(**cp),
    )(*kernel_args)

    # Free dim-split reshape back to NCHW (no transpose epilogue).
    return out_flat.reshape(N, Cin, H, W)


# ---------------------------------------------------------------------------
# Parameter init (torch conventions) and pure-JAX reference (NCHW)
# ---------------------------------------------------------------------------
def init_rdb_params(key, in_channel, d_list, inter_num):
    params = {"dense": [], "post": None}
    ch = in_channel
    for _ in d_list:
        key, kw_, kb_ = jax.random.split(key, 3)
        w = jax.random.normal(kw_, (3, 3, ch, inter_num), jnp.float32) * 0.05
        b = jax.random.normal(kb_, (inter_num,), jnp.float32) * 0.05
        params["dense"].append((w, b))
        ch += inter_num
    key, kw_, kb_ = jax.random.split(key, 3)
    wp = jax.random.normal(kw_, (ch, in_channel), jnp.float32) * 0.05
    bp = jax.random.normal(kb_, (in_channel,), jnp.float32) * 0.05
    params["post"] = (wp, bp)
    return params


def rdb_reference(params, x, d_list):
    t = x                                         # (N, C, H, W)
    dn = ("NCHW", "HWIO", "NCHW")
    for (w, b), d in zip(params["dense"], d_list):
        y = jax.lax.conv_general_dilated(
            t, w, window_strides=(1, 1), padding=[(d, d), (d, d)],
            rhs_dilation=(d, d), dimension_numbers=dn)
        _t = jnp.maximum(y + b[None, :, None, None], 0.0)
        t = jnp.concatenate([_t, t], axis=1)      # torch.cat([_t, t], dim=1)
    wp, bp = params["post"]
    y = jnp.einsum("nchw,co->nohw", t, wp) + bp[None, :, None, None]
    return y + x


if __name__ == "__main__":
    # Config consistent with RDB(in_channel=4, d_list=(1, 2, 1), inter_num=8)
    in_channel = 4
    d_list = (1, 2, 1)
    inter_num = 8
    N, H, W = 4, 16, 16

    key = jax.random.PRNGKey(0)
    key, kx = jax.random.split(key)
    x = jax.random.normal(kx, (N, in_channel, H, W), jnp.float32)
    params = init_rdb_params(key, in_channel, d_list, inter_num)

    # f32 path: 2 images / grid step -> 2 grid steps, dense (8, 256) output blocks.
    out = rdb_forward(params, x, d_list, inter_num, images_per_step=2)
    out = jax.block_until_ready(out)

    ref = rdb_reference(params, x, d_list)
    assert out.shape == (N, in_channel, H, W)
    assert jnp.allclose(out, ref, rtol=1e-4, atol=1e-4), "f32 mismatch vs reference"

    # bf16 feature stack (v6e / v7x option): matmuls accumulate f32, residual and
    # epilogue stay f32 — only the dense stack / weights are bf16.
    out_bf16 = rdb_forward(params, x, d_list, inter_num, images_per_step=2,
                           feature_dtype=jnp.bfloat16)
    out_bf16 = jax.block_until_ready(out_bf16)
    assert float(jnp.max(jnp.abs(out_bf16 - ref))) < 0.1, "bf16 mismatch vs reference"

    print("KERNEL_OK")
</pallas_src>

<mosaic_0001>
module attributes {stable_mosaic.version = 11 : i64} {
  func.func @_rdb_fused_kernel(%arg0: i32, %arg1: memref<8x256xf32, #tpu.memory_space<vmem>>, %arg2: memref<1x716xf32, #tpu.memory_space<vmem>>, %arg3: memref<9x8x8xf32, #tpu.memory_space<vmem>>, %arg4: memref<8x1xf32, #tpu.memory_space<vmem>>, %arg5: memref<9x8x16xf32, #tpu.memory_space<vmem>>, %arg6: memref<8x1xf32, #tpu.memory_space<vmem>>, %arg7: memref<9x8x24xf32, #tpu.memory_space<vmem>>, %arg8: memref<8x1xf32, #tpu.memory_space<vmem>>, %arg9: memref<4x32xf32, #tpu.memory_space<vmem>>, %arg10: memref<4x1xf32, #tpu.memory_space<vmem>>, %arg11: memref<8x256xf32, #tpu.memory_space<vmem>>, %arg12: memref<32x800xf32, #tpu.memory_space<vmem>>) attributes {dimension_semantics = [#tpu.dimension_semantics<parallel>], iteration_bounds = array<i64: 2>, scalar_prefetch = 0 : i64, scratch_operands = 1 : i64, tpu.core_type = #tpu.core_type<tc>, window_params = [{transform_indices = @transform_0, window_bounds = array<i64: 8, 256>}, {pipeline_mode = #tpu.pipeline_mode<synchronous>, transform_indices = @transform_1, window_bounds = array<i64: 1, 716>}, {pipeline_mode = #tpu.pipeline_mode<synchronous>, transform_indices = @transform_2, window_bounds = array<i64: 9, 8, 8>}, {pipeline_mode = #tpu.pipeline_mode<synchronous>, transform_indices = @transform_3, window_bounds = array<i64: 8, 1>}, {pipeline_mode = #tpu.pipeline_mode<synchronous>, transform_indices = @transform_4, window_bounds = array<i64: 9, 8, 16>}, {pipeline_mode = #tpu.pipeline_mode<synchronous>, transform_indices = @transform_5, window_bounds = array<i64: 8, 1>}, {pipeline_mode = #tpu.pipeline_mode<synchronous>, transform_indices = @transform_6, window_bounds = array<i64: 9, 8, 24>}, {pipeline_mode = #tpu.pipeline_mode<synchronous>, transform_indices = @transform_7, window_bounds = array<i64: 8, 1>}, {pipeline_mode = #tpu.pipeline_mode<synchronous>, transform_indices = @transform_8, window_bounds = array<i64: 4, 32>}, {pipeline_mode = #tpu.pipeline_mode<synchronous>, transform_indices = @transform_9, window_bounds = array<i64: 4, 1>}, {transform_indices = @transform_10, window_bounds = array<i64: 8, 256>}]} {
    %cst = arith.constant 0.000000e+00 : f32
    %0 = vector.broadcast %cst : f32 to vector<8x800xf32>
    %c0 = arith.constant 0 : index
    %c0_0 = arith.constant 0 : index
    %1 = vector.load %arg12[%c0, %c0_0] : memref<32x800xf32, #tpu.memory_space<vmem>>, vector<8x800xf32>
    tpu.vector_store %arg12[%c0, %c0_0], %0 {strides = array<i32>} : memref<32x800xf32, #tpu.memory_space<vmem>>, vector<8x800xf32>,
    %cst_1 = arith.constant 0.000000e+00 : f32
    %2 = vector.broadcast %cst_1 : f32 to vector<24x42xf32>
    %c8 = arith.constant 8 : index
    %c0_2 = arith.constant 0 : index
    %3 = vector.load %arg12[%c8, %c0_2] : memref<32x800xf32, #tpu.memory_space<vmem>>, vector<24x42xf32>
    tpu.vector_store %arg12[%c8, %c0_2], %2 {strides = array<i32>} : memref<32x800xf32, #tpu.memory_space<vmem>>, vector<24x42xf32>,
    %cst_3 = arith.constant 0.000000e+00 : f32
    %4 = vector.broadcast %cst_3 : f32 to vector<24x42xf32>
    %c8_4 = arith.constant 8 : index
    %c758 = arith.constant 758 : index
    %5 = vector.load %arg12[%c8_4, %c758] : memref<32x800xf32, #tpu.memory_space<vmem>>, vector<24x42xf32>
    tpu.vector_store %arg12[%c8_4, %c758], %4 {strides = array<i32>} : memref<32x800xf32, #tpu.memory_space<vmem>>, vector<24x42xf32>,
    %c0_5 = arith.constant 0 : index
    %c0_6 = arith.constant 0 : index
    %6 = vector.load %arg1[%c0_5, %c0_6] : memref<8x256xf32, #tpu.memory_space<vmem>>, vector<4x16xf32>
    %c0_7 = arith.constant 0 : index
    %c42 = arith.constant 42 : index
    %7 = vector.load %arg12[%c0_7, %c42] : memref<32x800xf32, #tpu.memory_space<vmem>>, vector<4x16xf32>
    tpu.vector_store %arg12[%c0_7, %c42], %6 {strides = array<i32>} : memref<32x800xf32, #tpu.memory_space<vmem>>, vector<4x16xf32>,
    %c0_8 = arith.constant 0 : index
    %c16 = arith.constant 16 : index
    %8 = vector.load %arg1[%c0_8, %c16] : memref<8x256xf32, #tpu.memory_space<vmem>>, vector<4x16xf32>
    %c0_9 = arith.constant 0 : index
    %c62 = arith.constant 62 : index
    %9 = vector.load %arg12[%c0_9, %c62] : memref<32x800xf32, #tpu.memory_space<vmem>>, vector<4x16xf32>
    tpu.vector_store %arg12[%c0_9, %c62], %8 {strides = array<i32>} : memref<32x800xf32, #tpu.memory_space<vmem>>, vector<4x16xf32>,
    %c0_10 = arith.constant 0 : index
    %c32 = arith.constant 32 : index
    %10 = vector.load %arg1[%c0_10, %c32] : memref<8x256xf32, #tpu.memory_space<vmem>>, vector<4x16xf32>
    %c0_11 = arith.constant 0 : index
    %c82 = arith.constant 82 : index
    %11 = vector.load %arg12[%c0_11, %c82] : memref<32x800xf32, #tpu.memory_space<vmem>>, vector<4x16xf32>
    tpu.vector_store %arg12[%c0_11, %c82], %10 {strides = array<i32>} : memref<32x800xf32, #tpu.memory_space<vmem>>, vector<4x16xf32>,
    %c0_12 = arith.constant 0 : index
    %c48 = arith.constant 48 : index
    %12 = vector.load %arg1[%c0_12, %c48] : memref<8x256xf32, #tpu.memory_space<vmem>>, vector<4x16xf32>
    %c0_13 = arith.constant 0 : index
    %c102 = arith.constant 102 : index
    %13 = vector.load %arg12[%c0_13, %c102] : memref<32x800xf32, #tpu.memory_space<vmem>>, vector<4x16xf32>
    tpu.vector_store %arg12[%c0_13, %c102], %12 {strides = array<i32>} : memref<32x800xf32, #tpu.memory_space<vmem>>, vector<4x16xf32>,
    %c0_14 = arith.constant 0 : index
    %c64 = arith.constant 64 : index
    %14 = vector.load %arg1[%c0_14, %c64] : memref<8x256xf32, #tpu.memory_space<vmem>>, vector<4x16xf32>
    %c0_15 = arith.constant 0 : index
    %c122 = arith.constant 122 : index
    %15 = vector.load %arg12[%c0_15, %c122] : memref<32x800xf32, #tpu.memory_space<vmem>>, vector<4x16xf32>
    tpu.vector_store %arg12[%c0_15, %c122], %14 {strides = array<i32>} : memref<32x800xf32, #tpu.memory_space<vmem>>, vector<4x16xf32>,
    %c0_16 = arith.constant 0 : index
    %c80 = arith.constant 80 : index
    %16 = vector.load %arg1[%c0_16, %c80] : memref<8x256xf32, #tpu.memory_space<vmem>>, vector<4x16xf32>
    %c0_17 = arith.constant 0 : index
    %c142 = arith.constant 142 : index
    %17 = vector.load %arg12[%c0_17, %c142] : memref<32x800xf32, #tpu.memory_space<vmem>>, vector<4x16xf32>
    tpu.vector_store %arg12[%c0_17, %c142], %16 {strides = array<i32>} : memref<32x800xf32, #tpu.memory_space<vmem>>, vector<4x16xf32>,
    %c0_18 = arith.constant 0 : index
    %c96 = arith.constant 96 : index
    %18 = vector.load %arg1[%c0_18, %c96] : memref<8x256xf32, #tpu.memory_space<vmem>>, vector<4x16xf32>
    %c0_19 = arith.constant 0 : index
    %c162 = arith.constant 162 : index
    %19 = vector.load %arg12[%c0_19, %c162] : memref<32x800xf32, #tpu.memory_space<vmem>>, vector<4x16xf32>
    tpu.vector_store %arg12[%c0_19, %c162], %18 {strides = array<i32>} : memref<32x800xf32, #tpu.memory_space<vmem>>, vector<4x16xf32>,
    %c0_20 = arith.constant 0 : index
    %c112 = arith.constant 112 : index
    %20 = vector.load %arg1[%c0_20, %c112] : memref<8x256xf32, #tpu.memory_space<vmem>>, vector<4x16xf32>
    %c0_21 = arith.constant 0 : index
    %c182 = arith.constant 182 : index
    %21 = vector.load %arg12[%c0_21, %c182] : memref<32x800xf32, #tpu.memory_space<vmem>>, vector<4x16xf32>
    tpu.vector_store %arg12[%c0_21, %c182], %20 {strides = array<i32>} : memref<32x800xf32, #tpu.memory_space<vmem>>, vector<4x16xf32>,
    %c0_22 = arith.constant 0 : index
    %c128 = arith.constant 128 : index
    %22 = vector.load %arg1[%c0_22, %c128] : memref<8x256xf32, #tpu.memory_space<vmem>>, vector<4x16xf32>
    %c0_23 = arith.constant 0 : index
    %c202 = arith.constant 202 : index
    %23 = vector.load %arg12[%c0_23, %c202] : memref<32x800xf32, #tpu.memory_space<vmem>>, vector<4x16xf32>
    tpu.vector_store %arg12[%c0_23, %c202], %22 {strides = array<i32>} : memref<32x800xf32, #tpu.memory_space<vmem>>, vector<4x16xf32>,
    %c0_24 = arith.constant 0 : index
    %c144 = arith.constant 144 : index
    %24 = vector.load %arg1[%c0_24, %c144] : memref<8x256xf32, #tpu.memory_space<vmem>>, vector<4x16xf32>
    %c0_25 = arith.constant 0 : index
    %c222 = arith.constant 222 : index
    %25 = vector.load %arg12[%c0_25, %c222] : memref<32x800xf32, #tpu.memory_space<vmem>>, vector<4x16xf32>
    tpu.vector_store %arg12[%c0_25, %c222], %24 {strides = array<i32>} : memref<32x800xf32, #tpu.memory_space<vmem>>, vector<4x16xf32>,
    %c0_26 = arith.constant 0 : index
    %c160 = arith.constant 160 : index
    %26 = vector.load %arg1[%c0_26, %c160] : memref<8x256xf32, #tpu.memory_space<vmem>>, vector<4x16xf32>
    %c0_27 = arith.constant 0 : index
    %c242 = arith.constant 242 : index
    %27 = vector.load %arg12[%c0_27, %c242] : memref<32x800xf32, #tpu.memory_space<vmem>>, vector<4x16xf32>
    tpu.vector_store %arg12[%c0_27, %c242], %26 {strides = array<i32>} : memref<32x800xf32, #tpu.memory_space<vmem>>, vector<4x16xf32>,
    %c0_28 = arith.constant 0 : index
    %c176 = arith.constant 176 : index
    %28 = vector.load %arg1[%c0_28, %c176] : memref<8x256xf32, #tpu.memory_space<vmem>>, vector<4x16xf32>
    %c0_29 = arith.constant 0 : index
    %c262 = arith.constant 262 : index
    %29 = vector.load %arg12[%c0_29, %c262] : memref<32x800xf32, #tpu.memory_space<vmem>>, vector<4x16xf32>
    tpu.vector_store %arg12[%c0_29, %c262], %28 {strides = array<i32>} : memref<32x800xf32, #tpu.memory_space<vmem>>, vector<4x16xf32>,
    %c0_30 = arith.constant 0 : index
    %c192 = arith.constant 192 : index
    %30 = vector.load %arg1[%c0_30, %c192] : memref<8x256xf32, #tpu.memory_space<vmem>>, vector<4x16xf32>
    %c0_31 = arith.constant 0 : index
    %c282 = arith.constant 282 : index
    %31 = vector.load %arg12[%c0_31, %c282] : memref<32x800xf32, #tpu.memory_space<vmem>>, vector<4x16xf32>
    tpu.vector_store %arg12[%c0_31, %c282], %30 {strides = array<i32>} : memref<32x800xf32, #tpu.memory_space<vmem>>, vector<4x16xf32>,
    %c0_32 = arith.constant 0 : index
    %c208 = arith.constant 208 : index
    %32 = vector.load %arg1[%c0_32, %c208] : memref<8x256xf32, #tpu.memory_space<vmem>>, vector<4x16xf32>
    %c0_33 = arith.constant 0 : index
    %c302 = arith.constant 302 : index
    %33 = vector.load %arg12[%c0_33, %c302] : memref<32x800xf32, #tpu.memory_space<vmem>>, vector<4x16xf32>
    tpu.vector_store %arg12[%c0_33, %c302], %32 {strides = array<i32>} : memref<32x800xf32, #tpu.memory_space<vmem>>, vector<4x16xf32>,
    %c0_34 = arith.constant 0 : index
    %c224 = arith.constant 224 : index
    %34 = vector.load %arg1[%c0_34, %c224] : memref<8x256xf32, #tpu.memory_space<vmem>>, vector<4x16xf32>
    %c0_35 = arith.constant 0 : index
    %c322 = arith.constant 322 : index
    %35 = vector.load %arg12[%c0_35, %c322] : memref<32x800xf32, #tpu.memory_space<vmem>>, vector<4x16xf32>
    tpu.vector_store %arg12[%c0_35, %c322], %34 {strides = array<i32>} : memref<32x800xf32, #tpu.memory_space<vmem>>, vector<4x16xf32>,
    %c0_36 = arith.constant 0 : index
    %c240 = arith.constant 240 : index
    %36 = vector.load %arg1[%c0_36, %c240] : memref<8x256xf32, #tpu.memory_space<vmem>>, vector<4x16xf32>
    %c0_37 = arith.constant 0 : index
    %c342 = arith.constant 342 : index
    %37 = vector.load %arg12[%c0_37, %c342] : memref<32x800xf32, #tpu.memory_space<vmem>>, vector<4x16xf32>
    tpu.vector_store %arg12[%c0_37, %c342], %36 {strides = array<i32>} : memref<32x800xf32, #tpu.memory_space<vmem>>, vector<4x16xf32>,
    %c4 = arith.constant 4 : index
    %c0_38 = arith.constant 0 : index
    %38 = vector.load %arg1[%c4, %c0_38] : memref<8x256xf32, #tpu.memory_space<vmem>>, vector<4x16xf32>
    %c0_39 = arith.constant 0 : index
    %c442 = arith.constant 442 : index
    %39 = vector.load %arg12[%c0_39, %c442] : memref<32x800xf32, #tpu.memory_space<vmem>>, vector<4x16xf32>
    tpu.vector_store %arg12[%c0_39, %c442], %38 {strides = array<i32>} : memref<32x800xf32, #tpu.memory_space<vmem>>, vector<4x16xf32>,
    %c4_40 = arith.constant 4 : index
    %c16_41 = arith.constant 16 : index
    %40 = vector.load %arg1[%c4_40, %c16_41] : memref<8x256xf32, #tpu.memory_space<vmem>>, vector<4x16xf32>
    %c0_42 = arith.constant 0 : index
    %c462 = arith.constant 462 : index
    %41 = vector.load %arg12[%c0_42, %c462] : memref<32x800xf32, #tpu.memory_space<vmem>>, vector<4x16xf32>
    tpu.vector_store %arg12[%c0_42, %c462], %40 {strides = array<i32>} : memref<32x800xf32, #tpu.memory_space<vmem>>, vector<4x16xf32>,
    %c4_43 = arith.constant 4 : index
    %c32_44 = arith.constant 32 : index
    %42 = vector.load %arg1[%c4_43, %c32_44] : memref<8x256xf32, #tpu.memory_space<vmem>>, vector<4x16xf32>
    %c0_45 = arith.constant 0 : index
    %c482 = arith.constant 482 : index
    %43 = vector.load %arg12[%c0_45, %c482] : memref<32x800xf32, #tpu.memory_space<vmem>>, vector<4x16xf32>
    tpu.vector_store %arg12[%c0_45, %c482], %42 {strides = array<i32>} : memref<32x800xf32, #tpu.memory_space<vmem>>, vector<4x16xf32>,
    %c4_46 = arith.constant 4 : index
    %c48_47 = arith.constant 48 : index
    %44 = vector.load %arg1[%c4_46, %c48_47] : memref<8x256xf32, #tpu.memory_space<vmem>>, vector<4x16xf32>
    %c0_48 = arith.constant 0 : index
    %c502 = arith.constant 502 : index
    %45 = vector.load %arg12[%c0_48, %c502] : memref<32x800xf32, #tpu.memory_space<vmem>>, vector<4x16xf32>
    tpu.vector_store %arg12[%c0_48, %c502], %44 {strides = array<i32>} : memref<32x800xf32, #tpu.memory_space<vmem>>, vector<4x16xf32>,
    %c4_49 = arith.constant 4 : index
    %c64_50 = arith.constant 64 : index
    %46 = vector.load %arg1[%c4_49, %c64_50] : memref<8x256xf32, #tpu.memory_space<vmem>>, vector<4x16xf32>
    %c0_51 = arith.constant 0 : index
    %c522 = arith.constant 522 : index
    %47 = vector.load %arg12[%c0_51, %c522] : memref<32x800xf32, #tpu.memory_space<vmem>>, vector<4x16xf32>
    tpu.vector_store %arg12[%c0_51, %c522], %46 {strides = array<i32>} : memref<32x800xf32, #tpu.memory_space<vmem>>, vector<4x16xf32>,
    %c4_52 = arith.constant 4 : index
    %c80_53 = arith.constant 80 : index
    %48 = vector.load %arg1[%c4_52, %c80_53] : memref<8x256xf32, #tpu.memory_space<vmem>>, vector<4x16xf32>
    %c0_54 = arith.constant 0 : index
    %c542 = arith.constant 542 : index
    %49 = vector.load %arg12[%c0_54, %c542] : memref<32x800xf32, #tpu.memory_space<vmem>>, vector<4x16xf32>
    tpu.vector_store %arg12[%c0_54, %c542], %48 {strides = array<i32>} : memref<32x800xf32, #tpu.memory_space<vmem>>, vector<4x16xf32>,
    %c4_55 = arith.constant 4 : index
    %c96_56 = arith.constant 96 : index
    %50 = vector.load %arg1[%c4_55, %c96_56] : memref<8x256xf32, #tpu.memory_space<vmem>>, vector<4x16xf32>
    %c0_57 = arith.constant 0 : index
    %c562 = arith.constant 562 : index
    %51 = vector.load %arg12[%c0_57, %c562] : memref<32x800xf32, #tpu.memory_space<vmem>>, vector<4x16xf32>
    tpu.vector_store %arg12[%c0_57, %c562], %50 {strides = array<i32>} : memref<32x800xf32, #tpu.memory_space<vmem>>, vector<4x16xf32>,
    %c4_58 = arith.constant 4 : index
    %c112_59 = arith.constant 112 : index
    %52 = vector.load %arg1[%c4_58, %c112_59] : memref<8x256xf32, #tpu.memory_space<vmem>>, vector<4x16xf32>
    %c0_60 = arith.constant 0 : index
    %c582 = arith.constant 582 : index
    %53 = vector.load %arg12[%c0_60, %c582] : memref<32x800xf32, #tpu.memory_space<vmem>>, vector<4x16xf32>
    tpu.vector_store %arg12[%c0_60, %c582], %52 {strides = array<i32>} : memref<32x800xf32, #tpu.memory_space<vmem>>, vector<4x16xf32>,
    %c4_61 = arith.constant 4 : index
    %c128_62 = arith.constant 128 : index
    %54 = vector.load %arg1[%c4_61, %c128_62] : memref<8x256xf32, #tpu.memory_space<vmem>>, vector<4x16xf32>
    %c0_63 = arith.constant 0 : index
    %c602 = arith.constant 602 : index
    %55 = vector.load %arg12[%c0_63, %c602] : memref<32x800xf32, #tpu.memory_space<vmem>>, vector<4x16xf32>
    tpu.vector_store %arg12[%c0_63, %c602], %54 {strides = array<i32>} : memref<32x800xf32, #tpu.memory_space<vmem>>, vector<4x16xf32>,
    %c4_64 = arith.constant 4 : index
    %c144_65 = arith.constant 144 : index
    %56 = vector.load %arg1[%c4_64, %c144_65] : memref<8x256xf32, #tpu.memory_space<vmem>>, vector<4x16xf32>
    %c0_66 = arith.constant 0 : index
    %c622 = arith.constant 622 : index
    %57 = vector.load %arg12[%c0_66, %c622] : memref<32x800xf32, #tpu.memory_space<vmem>>, vector<4x16xf32>
    tpu.vector_store %arg12[%c0_66, %c622], %56 {strides = array<i32>} : memref<32x800xf32, #tpu.memory_space<vmem>>, vector<4x16xf32>,
    %c4_67 = arith.constant 4 : index
    %c160_68 = arith.constant 160 : index
    %58 = vector.load %arg1[%c4_67, %c160_68] : memref<8x256xf32, #tpu.memory_space<vmem>>, vector<4x16xf32>
    %c0_69 = arith.constant 0 : index
    %c642 = arith.constant 642 : index
    %59 = vector.load %arg12[%c0_69, %c642] : memref<32x800xf32, #tpu.memory_space<vmem>>, vector<4x16xf32>
    tpu.vector_store %arg12[%c0_69, %c642], %58 {strides = array<i32>} : memref<32x800xf32, #tpu.memory_space<vmem>>, vector<4x16xf32>,
    %c4_70 = arith.constant 4 : index
    %c176_71 = arith.constant 176 : index
    %60 = vector.load %arg1[%c4_70, %c176_71] : memref<8x256xf32, #tpu.memory_space<vmem>>, vector<4x16xf32>
    %c0_72 = arith.constant 0 : index
    %c662 = arith.constant 662 : index
    %61 = vector.load %arg12[%c0_72, %c662] : memref<32x800xf32, #tpu.memory_space<vmem>>, vector<4x16xf32>
    tpu.vector_store %arg12[%c0_72, %c662], %60 {strides = array<i32>} : memref<32x800xf32, #tpu.memory_space<vmem>>, vector<4x16xf32>,
    %c4_73 = arith.constant 4 : index
    %c192_74 = arith.constant 192 : index
    %62 = vector.load %arg1[%c4_73, %c192_74] : memref<8x256xf32, #tpu.memory_space<vmem>>, vector<4x16xf32>
    %c0_75 = arith.constant 0 : index
    %c682 = arith.constant 682 : index
    %63 = vector.load %arg12[%c0_75, %c682] : memref<32x800xf32, #tpu.memory_space<vmem>>, vector<4x16xf32>
    tpu.vector_store %arg12[%c0_75, %c682], %62 {strides = array<i32>} : memref<32x800xf32, #tpu.memory_space<vmem>>, vector<4x16xf32>,
    %c4_76 = arith.constant 4 : index
    %c208_77 = arith.constant 208 : index
    %64 = vector.load %arg1[%c4_76, %c208_77] : memref<8x256xf32, #tpu.memory_space<vmem>>, vector<4x16xf32>
    %c0_78 = arith.constant 0 : index
    %c702 = arith.constant 702 : index
    %65 = vector.load %arg12[%c0_78, %c702] : memref<32x800xf32, #tpu.memory_space<vmem>>, vector<4x16xf32>
    tpu.vector_store %arg12[%c0_78, %c702], %64 {strides = array<i32>} : memref<32x800xf32, #tpu.memory_space<vmem>>, vector<4x16xf32>,
    %c4_79 = arith.constant 4 : index
    %c224_80 = arith.constant 224 : index
    %66 = vector.load %arg1[%c4_79, %c224_80] : memref<8x256xf32, #tpu.memory_space<vmem>>, vector<4x16xf32>
    %c0_81 = arith.constant 0 : index
    %c722 = arith.constant 722 : index
    %67 = vector.load %arg12[%c0_81, %c722] : memref<32x800xf32, #tpu.memory_space<vmem>>, vector<4x16xf32>
    tpu.vector_store %arg12[%c0_81, %c722], %66 {strides = array<i32>} : memref<32x800xf32, #tpu.memory_space<vmem>>, vector<4x16xf32>,
    %c4_82 = arith.constant 4 : index
    %c240_83 = arith.constant 240 : index
    %68 = vector.load %arg1[%c4_82, %c240_83] : memref<8x256xf32, #tpu.memory_space<vmem>>, vector<4x16xf32>
    %c0_84 = arith.constant 0 : index
    %c742 = arith.constant 742 : index
    %69 = vector.load %arg12[%c0_84, %c742] : memref<32x800xf32, #tpu.memory_space<vmem>>, vector<4x16xf32>
    tpu.vector_store %arg12[%c0_84, %c742], %68 {strides = array<i32>} : memref<32x800xf32, #tpu.memory_space<vmem>>, vector<4x16xf32>,
    %c0_85 = arith.constant 0 : index
    %c0_86 = arith.constant 0 : index
    %70 = vector.load %arg2[%c0_85, %c0_86] : memref<1x716xf32, #tpu.memory_space<vmem>>, vector<1x716xf32>
    %c0_87 = arith.constant 0 : index
    %c21 = arith.constant 21 : index
    %71 = vector.load %arg12[%c0_87, %c21] : memref<32x800xf32, #tpu.memory_space<vmem>>, vector<8x716xf32>
    %c0_88 = arith.constant 0 : index
    %c0_89 = arith.constant 0 : index
    %c0_90 = arith.constant 0 : index
    %72 = vector.load %arg3[%c0_88, %c0_89, %c0_90] : memref<9x8x8xf32, #tpu.memory_space<vmem>>, vector<1x8x8xf32>
    %73 = vector.shape_cast %72 : vector<1x8x8xf32> to vector<8x8xf32>
    %cst_91 = arith.constant dense<0.000000e+00> : vector<8x716xf32>
    %74 = tpu.matmul %73, %71, %cst_91 {dimension_numbers = #tpu.dot_dimension_numbers<[1], [0], [0], [1], [0, 0, 1, 1], [], []>} : vector<8x8xf32>, vector<8x716xf32>, vector<8x716xf32> -> vector<8x716xf32>
    %c0_92 = arith.constant 0 : index
    %c22 = arith.constant 22 : index
    %75 = vector.load %arg12[%c0_92, %c22] : memref<32x800xf32, #tpu.memory_space<vmem>>, vector<8x716xf32>
    %c1 = arith.constant 1 : index
    %c0_93 = arith.constant 0 : index
    %c0_94 = arith.constant 0 : index
    %76 = vector.load %arg3[%c1, %c0_93, %c0_94] : memref<9x8x8xf32, #tpu.memory_space<vmem>>, vector<1x8x8xf32>
    %77 = vector.shape_cast %76 : vector<1x8x8xf32> to vector<8x8xf32>
    %cst_95 = arith.constant dense<0.000000e+00> : vector<8x716xf32>
    %78 = tpu.matmul %77, %75, %cst_95 {dimension_numbers = #tpu.dot_dimension_numbers<[1], [0], [0], [1], [0, 0, 1, 1], [], []>} : vector<8x8xf32>, vector<8x716xf32>, vector<8x716xf32> -> vector<8x716xf32>
    %79 = arith.addf %74, %78 : vector<8x716xf32>
    %c0_96 = arith.constant 0 : index
    %c23 = arith.constant 23 : index
    %80 = vector.load %arg12[%c0_96, %c23] : memref<32x800xf32, #tpu.memory_space<vmem>>, vector<8x716xf32>
    %c2 = arith.constant 2 : index
    %c0_97 = arith.constant 0 : index
    %c0_98 = arith.constant 0 : index
    %81 = vector.load %arg3[%c2, %c0_97, %c0_98] : memref<9x8x8xf32, #tpu.memory_space<vmem>>, vector<1x8x8xf32>
    %82 = vector.shape_cast %81 : vector<1x8x8xf32> to vector<8x8xf32>
    %cst_99 = arith.constant dense<0.000000e+00> : vector<8x716xf32>
    %83 = tpu.matmul %82, %80, %cst_99 {dimension_numbers = #tpu.dot_dimension_numbers<[1], [0], [0], [1], [0, 0, 1, 1], [], []>} : vector<8x8xf32>, vector<8x716xf32>, vector<8x716xf32> -> vector<8x716xf32>
    %84 = arith.addf %79, %83 : vector<8x716xf32>
    %c0_100 = arith.constant 0 : index
    %c41 = arith.constant 41 : index
    %85 = vector.load %arg12[%c0_100, %c41] : memref<32x800xf32, #tpu.memory_space<vmem>>, vector<8x716xf32>
    %c3 = arith.constant 3 : index
    %c0_101 = arith.constant 0 : index
    %c0_102 = arith.constant 0 : index
    %86 = vector.load %arg3[%c3, %c0_101, %c0_102] : memref<9x8x8xf32, #tpu.memory_space<vmem>>, vector<1x8x8xf32>
    %87 = vector.shape_cast %86 : vector<1x8x8xf32> to vector<8x8xf32>
    %cst_103 = arith.constant dense<0.000000e+00> : vector<8x716xf32>
    %88 = tpu.matmul %87, %85, %cst_103 {dimension_numbers = #tpu.dot_dimension_numbers<[1], [0], [0], [1], [0, 0, 1, 1], [], []>} : vector<8x8xf32>, vector<8x716xf32>, vector<8x716xf32> -> vector<8x716xf32>
    %89 = arith.addf %84, %88 : vector<8x716xf32>
    %c0_104 = arith.constant 0 : index
    %c42_105 = arith.constant 42 : index
    %90 = vector.load %arg12[%c0_104, %c42_105] : memref<32x800xf32, #tpu.memory_space<vmem>>, vector<8x716xf32>
    %c4_106 = arith.constant 4 : index
    %c0_107 = arith.constant 0 : index
    %c0_108 = arith.constant 0 : index
    %91 = vector.load %arg3[%c4_106, %c0_107, %c0_108] : memref<9x8x8xf32, #tpu.memory_space<vmem>>, vector<1x8x8xf32>
    %92 = vector.shape_cast %91 : vector<1x8x8xf32> to vector<8x8xf32>
    %cst_109 = arith.constant dense<0.000000e+00> : vector<8x716xf32>
    %93 = tpu.matmul %92, %90, %cst_109 {dimension_numbers = #tpu.dot_dimension_numbers<[1], [0], [0], [1], [0, 0, 1, 1], [], []>} : vector<8x8xf32>, vector<8x716xf32>, vector<8x716xf32> -> vector<8x716xf32>
    %94 = arith.addf %89, %93 : vector<8x716xf32>
    %c0_110 = arith.constant 0 : index
    %c43 = arith.constant 43 : index
    %95 = vector.load %arg12[%c0_110, %c43] : memref<32x800xf32, #tpu.memory_space<vmem>>, vector<8x716xf32>
    %c5 = arith.constant 5 : index
    %c0_111 = arith.constant 0 : index
    %c0_112 = arith.constant 0 : index
    %96 = vector.load %arg3[%c5, %c0_111, %c0_112] : memref<9x8x8xf32, #tpu.memory_space<vmem>>, vector<1x8x8xf32>
    %97 = vector.shape_cast %96 : vector<1x8x8xf32> to vector<8x8xf32>
    %cst_113 = arith.constant dense<0.000000e+00> : vector<8x716xf32>
    %98 = tpu.matmul %97, %95, %cst_113 {dimension_numbers = #tpu.dot_dimension_numbers<[1], [0], [0], [1], [0, 0, 1, 1], [], []>} : vector<8x8xf32>, vector<8x716xf32>, vector<8x716xf32> -> vector<8x716xf32>
    %99 = arith.addf %94, %98 : vector<8x716xf32>
    %c0_114 = arith.constant 0 : index
    %c61 = arith.constant 61 : index
    %100 = vector.load %arg12[%c0_114, %c61] : memref<32x800xf32, #tpu.memory_space<vmem>>, vector<8x716xf32>
    %c6 = arith.constant 6 : index
    %c0_115 = arith.constant 0 : index
    %c0_116 = arith.constant 0 : index
    %101 = vector.load %arg3[%c6, %c0_115, %c0_116] : memref<9x8x8xf32, #tpu.memory_space<vmem>>, vector<1x8x8xf32>
    %102 = vector.shape_cast %101 : vector<1x8x8xf32> to vector<8x8xf32>
    %cst_117 = arith.constant dense<0.000000e+00> : vector<8x716xf32>
    %103 = tpu.matmul %102, %100, %cst_117 {dimension_numbers = #tpu.dot_dimension_numbers<[1], [0], [0], [1], [0, 0, 1, 1], [], []>} : vector<8x8xf32>, vector<8x716xf32>, vector<8x716xf32> -> vector<8x716xf32>
    %104 = arith.addf %99, %103 : vector<8x716xf32>
    %c0_118 = arith.constant 0 : index
    %c62_119 = arith.constant 62 : index
    %105 = vector.load %arg12[%c0_118, %c62_119] : memref<32x800xf32, #tpu.memory_space<vmem>>, vector<8x716xf32>
    %c7 = arith.constant 7 : index
    %c0_120 = arith.constant 0 : index
    %c0_121 = arith.constant 0 : index
    %106 = vector.load %arg3[%c7, %c0_120, %c0_121] : memref<9x8x8xf32, #tpu.memory_space<vmem>>, vector<1x8x8xf32>
    %107 = vector.shape_cast %106 : vector<1x8x8xf32> to vector<8x8xf32>
    %cst_122 = arith.constant dense<0.000000e+00> : vector<8x716xf32>
    %108 = tpu.matmul %107, %105, %cst_122 {dimension_numbers = #tpu.dot_dimension_numbers<[1], [0], [0], [1], [0, 0, 1, 1], [], []>} : vector<8x8xf32>, vector<8x716xf32>, vector<8x716xf32> -> vector<8x716xf32>
    %109 = arith.addf %104, %108 : vector<8x716xf32>
    %c0_123 = arith.constant 0 : index
    %c63 = arith.constant 63 : index
    %110 = vector.load %arg12[%c0_123, %c63] : memref<32x800xf32, #tpu.memory_space<vmem>>, vector<8x716xf32>
    %c8_124 = arith.constant 8 : index
    %c0_125 = arith.constant 0 : index
    %c0_126 = arith.constant 0 : index
    %111 = vector.load %arg3[%c8_124, %c0_125, %c0_126] : memref<9x8x8xf32, #tpu.memory_space<vmem>>, vector<1x8x8xf32>
    %112 = vector.shape_cast %111 : vector<1x8x8xf32> to vector<8x8xf32>
    %cst_127 = arith.constant dense<0.000000e+00> : vector<8x716xf32>
    %113 = tpu.matmul %112, %110, %cst_127 {dimension_numbers = #tpu.dot_dimension_numbers<[1], [0], [0], [1], [0, 0, 1, 1], [], []>} : vector<8x8xf32>, vector<8x716xf32>, vector<8x716xf32> -> vector<8x716xf32>
    %114 = arith.addf %109, %113 : vector<8x716xf32>
    %c0_128 = arith.constant 0 : index
    %c0_129 = arith.constant 0 : index
    %115 = vector.load %arg4[%c0_128, %c0_129] : memref<8x1xf32, #tpu.memory_space<vmem>>, vector<8x1xf32>
    %116 = vector.broadcast %115 : vector<8x1xf32> to vector<8x716xf32>
    %117 = arith.addf %114, %116 : vector<8x716xf32>
    %cst_130 = arith.constant 0.000000e+00 : f32
    %118 = vector.broadcast %cst_130 : f32 to vector<8x716xf32>
    %119 = arith.maximumf %117, %118 : vector<8x716xf32>
    %120 = vector.broadcast %70 : vector<1x716xf32> to vector<8x716xf32>
    %121 = arith.mulf %119, %120 : vector<8x716xf32>
    %c8_131 = arith.constant 8 : index
    %c42_132 = arith.constant 42 : index
    %122 = vector.load %arg12[%c8_131, %c42_132] : memref<32x800xf32, #tpu.memory_space<vmem>>, vector<8x716xf32>
    tpu.vector_store %arg12[%c8_131, %c42_132], %121 {strides = array<i32>} : memref<32x800xf32, #tpu.memory_space<vmem>>, vector<8x716xf32>,
    %c0_133 = arith.constant 0 : index
    %c0_134 = arith.constant 0 : index
    %123 = vector.load %arg12[%c0_133, %c0_134] : memref<32x800xf32, #tpu.memory_space<vmem>>, vector<16x716xf32>
    %c0_135 = arith.constant 0 : index
    %c0_136 = arith.constant 0 : index
    %c0_137 = arith.constant 0 : index
    %124 = vector.load %arg5[%c0_135, %c0_136, %c0_137] : memref<9x8x16xf32, #tpu.memory_space<vmem>>, vector<1x8x16xf32>
    %125 = vector.shape_cast %124 : vector<1x8x16xf32> to vector<8x16xf32>
    %cst_138 = arith.constant dense<0.000000e+00> : vector<8x716xf32>
    %126 = tpu.matmul %125, %123, %cst_138 {dimension_numbers = #tpu.dot_dimension_numbers<[1], [0], [0], [1], [0, 0, 1, 1], [], []>} : vector<8x16xf32>, vector<16x716xf32>, vector<8x716xf32> -> vector<8x716xf32>
    %c0_139 = arith.constant 0 : index
    %c2_140 = arith.constant 2 : index
    %127 = vector.load %arg12[%c0_139, %c2_140] : memref<32x800xf32, #tpu.memory_space<vmem>>, vector<16x716xf32>
    %c1_141 = arith.constant 1 : index
    %c0_142 = arith.constant 0 : index
    %c0_143 = arith.constant 0 : index
    %128 = vector.load %arg5[%c1_141, %c0_142, %c0_143] : memref<9x8x16xf32, #tpu.memory_space<vmem>>, vector<1x8x16xf32>
    %129 = vector.shape_cast %128 : vector<1x8x16xf32> to vector<8x16xf32>
    %cst_144 = arith.constant dense<0.000000e+00> : vector<8x716xf32>
    %130 = tpu.matmul %129, %127, %cst_144 {dimension_numbers = #tpu.dot_dimension_numbers<[1], [0], [0], [1], [0, 0, 1, 1], [], []>} : vector<8x16xf32>, vector<16x716xf32>, vector<8x716xf32> -> vector<8x716xf32>
    %131 = arith.addf %126, %130 : vector<8x716xf32>
    %c0_145 = arith.constant 0 : index
    %c4_146 = arith.constant 4 : index
    %132 = vector.load %arg12[%c0_145, %c4_146] : memref<32x800xf32, #tpu.memory_space<vmem>>, vector<16x716xf32>
    %c2_147 = arith.constant 2 : index
    %c0_148 = arith.constant 0 : index
    %c0_149 = arith.constant 0 : index
    %133 = vector.load %arg5[%c2_147, %c0_148, %c0_149] : memref<9x8x16xf32, #tpu.memory_space<vmem>>, vector<1x8x16xf32>
    %134 = vector.shape_cast %133 : vector<1x8x16xf32> to vector<8x16xf32>
    %cst_150 = arith.constant dense<0.000000e+00> : vector<8x716xf32>
    %135 = tpu.matmul %134, %132, %cst_150 {dimension_numbers = #tpu.dot_dimension_numbers<[1], [0], [0], [1], [0, 0, 1, 1], [], []>} : vector<8x16xf32>, vector<16x716xf32>, vector<8x716xf32> -> vector<8x716xf32>
    %136 = arith.addf %131, %135 : vector<8x716xf32>
    %c0_151 = arith.constant 0 : index
    %c40 = arith.constant 40 : index
    %137 = vector.load %arg12[%c0_151, %c40] : memref<32x800xf32, #tpu.memory_space<vmem>>, vector<16x716xf32>
    %c3_152 = arith.constant 3 : index
    %c0_153 = arith.constant 0 : index
    %c0_154 = arith.constant 0 : index
    %138 = vector.load %arg5[%c3_152, %c0_153, %c0_154] : memref<9x8x16xf32, #tpu.memory_space<vmem>>, vector<1x8x16xf32>
    %139 = vector.shape_cast %138 : vector<1x8x16xf32> to vector<8x16xf32>
    %cst_155 = arith.constant dense<0.000000e+00> : vector<8x716xf32>
    %140 = tpu.matmul %139, %137, %cst_155 {dimension_numbers = #tpu.dot_dimension_numbers<[1], [0], [0], [1], [0, 0, 1, 1], [], []>} : vector<8x16xf32>, vector<16x716xf32>, vector<8x716xf32> -> vector<8x716xf32>
    %141 = arith.addf %136, %140 : vector<8x716xf32>
    %c0_156 = arith.constant 0 : index
    %c42_157 = arith.constant 42 : index
    %142 = vector.load %arg12[%c0_156, %c42_157] : memref<32x800xf32, #tpu.memory_space<vmem>>, vector<16x716xf32>
    %c4_158 = arith.constant 4 : index
    %c0_159 = arith.constant 0 : index
    %c0_160 = arith.constant 0 : index
    %143 = vector.load %arg5[%c4_158, %c0_159, %c0_160] : memref<9x8x16xf32, #tpu.memory_space<vmem>>, vector<1x8x16xf32>
    %144 = vector.shape_cast %143 : vector<1x8x16xf32> to vector<8x16xf32>
    %cst_161 = arith.constant dense<0.000000e+00> : vector<8x716xf32>
    %145 = tpu.matmul %144, %142, %cst_161 {dimension_numbers = #tpu.dot_dimension_numbers<[1], [0], [0], [1], [0, 0, 1, 1], [], []>} : vector<8x16xf32>, vector<16x716xf32>, vector<8x716xf32> -> vector<8x716xf32>
    %146 = arith.addf %141, %145 : vector<8x716xf32>
    %c0_162 = arith.constant 0 : index
    %c44 = arith.constant 44 : index
    %147 = vector.load %arg12[%c0_162, %c44] : memref<32x800xf32, #tpu.memory_space<vmem>>, vector<16x716xf32>
    %c5_163 = arith.constant 5 : index
    %c0_164 = arith.constant 0 : index
    %c0_165 = arith.constant 0 : index
    %148 = vector.load %arg5[%c5_163, %c0_164, %c0_165] : memref<9x8x16xf32, #tpu.memory_space<vmem>>, vector<1x8x16xf32>
    %149 = vector.shape_cast %148 : vector<1x8x16xf32> to vector<8x16xf32>
    %cst_166 = arith.constant dense<0.000000e+00> : vector<8x716xf32>
    %150 = tpu.matmul %149, %147, %cst_166 {dimension_numbers = #tpu.dot_dimension_numbers<[1], [0], [0], [1], [0, 0, 1, 1], [], []>} : vector<8x16xf32>, vector<16x716xf32>, vector<8x716xf32> -> vector<8x716xf32>
    %151 = arith.addf %146, %150 : vector<8x716xf32>
    %c0_167 = arith.constant 0 : index
    %c80_168 = arith.constant 80 : index
    %152 = vector.load %arg12[%c0_167, %c80_168] : memref<32x800xf32, #tpu.memory_space<vmem>>, vector<16x716xf32>
    %c6_169 = arith.constant 6 : index
    %c0_170 = arith.constant 0 : index
    %c0_171 = arith.constant 0 : index
    %153 = vector.load %arg5[%c6_169, %c0_170, %c0_171] : memref<9x8x16xf32, #tpu.memory_space<vmem>>, vector<1x8x16xf32>
    %154 = vector.shape_cast %153 : vector<1x8x16xf32> to vector<8x16xf32>
    %cst_172 = arith.constant dense<0.000000e+00> : vector<8x716xf32>
    %155 = tpu.matmul %154, %152, %cst_172 {dimension_numbers = #tpu.dot_dimension_numbers<[1], [0], [0], [1], [0, 0, 1, 1], [], []>} : vector<8x16xf32>, vector<16x716xf32>, vector<8x716xf32> -> vector<8x716xf32>
    %156 = arith.addf %151, %155 : vector<8x716xf32>
    %c0_173 = arith.constant 0 : index
    %c82_174 = arith.constant 82 : index
    %157 = vector.load %arg12[%c0_173, %c82_174] : memref<32x800xf32, #tpu.memory_space<vmem>>, vector<16x716xf32>
    %c7_175 = arith.constant 7 : index
    %c0_176 = arith.constant 0 : index
    %c0_177 = arith.constant 0 : index
    %158 = vector.load %arg5[%c7_175, %c0_176, %c0_177] : memref<9x8x16xf32, #tpu.memory_space<vmem>>, vector<1x8x16xf32>
    %159 = vector.shape_cast %158 : vector<1x8x16xf32> to vector<8x16xf32>
    %cst_178 = arith.constant dense<0.000000e+00> : vector<8x716xf32>
    %160 = tpu.matmul %159, %157, %cst_178 {dimension_numbers = #tpu.dot_dimension_numbers<[1], [0], [0], [1], [0, 0, 1, 1], [], []>} : vector<8x16xf32>, vector<16x716xf32>, vector<8x716xf32> -> vector<8x716xf32>
    %161 = arith.addf %156, %160 : vector<8x716xf32>
    %c0_179 = arith.constant 0 : index
    %c84 = arith.constant 84 : index
    %162 = vector.load %arg12[%c0_179, %c84] : memref<32x800xf32, #tpu.memory_space<vmem>>, vector<16x716xf32>
    %c8_180 = arith.constant 8 : index
    %c0_181 = arith.constant 0 : index
    %c0_182 = arith.constant 0 : index
    %163 = vector.load %arg5[%c8_180, %c0_181, %c0_182] : memref<9x8x16xf32, #tpu.memory_space<vmem>>, vector<1x8x16xf32>
    %164 = vector.shape_cast %163 : vector<1x8x16xf32> to vector<8x16xf32>
    %cst_183 = arith.constant dense<0.000000e+00> : vector<8x716xf32>
    %165 = tpu.matmul %164, %162, %cst_183 {dimension_numbers = #tpu.dot_dimension_numbers<[1], [0], [0], [1], [0, 0, 1, 1], [], []>} : vector<8x16xf32>, vector<16x716xf32>, vector<8x716xf32> -> vector<8x716xf32>
    %166 = arith.addf %161, %165 : vector<8x716xf32>
    %c0_184 = arith.constant 0 : index
    %c0_185 = arith.constant 0 : index
    %167 = vector.load %arg6[%c0_184, %c0_185] : memref<8x1xf32, #tpu.memory_space<vmem>>, vector<8x1xf32>
    %168 = vector.broadcast %167 : vector<8x1xf32> to vector<8x716xf32>
    %169 = arith.addf %166, %168 : vector<8x716xf32>
    %cst_186 = arith.constant 0.000000e+00 : f32
    %170 = vector.broadcast %cst_186 : f32 to vector<8x716xf32>
    %171 = arith.maximumf %169, %170 : vector<8x716xf32>
    %172 = vector.broadcast %70 : vector<1x716xf32> to vector<8x716xf32>
    %173 = arith.mulf %171, %172 : vector<8x716xf32>
    %c16_187 = arith.constant 16 : index
    %c42_188 = arith.constant 42 : index
    %174 = vector.load %arg12[%c16_187, %c42_188] : memref<32x800xf32, #tpu.memory_space<vmem>>, vector<8x716xf32>
    tpu.vector_store %arg12[%c16_187, %c42_188], %173 {strides = array<i32>} : memref<32x800xf32, #tpu.memory_space<vmem>>, vector<8x716xf32>,
    %c0_189 = arith.constant 0 : index
    %c21_190 = arith.constant 21 : index
    %175 = vector.load %arg12[%c0_189, %c21_190] : memref<32x800xf32, #tpu.memory_space<vmem>>, vector<24x716xf32>
    %c0_191 = arith.constant 0 : index
    %c0_192 = arith.constant 0 : index
    %c0_193 = arith.constant 0 : index
    %176 = vector.load %arg7[%c0_191, %c0_192, %c0_193] : memref<9x8x24xf32, #tpu.memory_space<vmem>>, vector<1x8x24xf32>
    %177 = vector.shape_cast %176 : vector<1x8x24xf32> to vector<8x24xf32>
    %cst_194 = arith.constant dense<0.000000e+00> : vector<8x716xf32>
    %178 = tpu.matmul %177, %175, %cst_194 {dimension_numbers = #tpu.dot_dimension_numbers<[1], [0], [0], [1], [0, 0, 1, 1], [], []>} : vector<8x24xf32>, vector<24x716xf32>, vector<8x716xf32> -> vector<8x716xf32>
    %c0_195 = arith.constant 0 : index
    %c22_196 = arith.constant 22 : index
    %179 = vector.load %arg12[%c0_195, %c22_196] : memref<32x800xf32, #tpu.memory_space<vmem>>, vector<24x716xf32>
    %c1_197 = arith.constant 1 : index
    %c0_198 = arith.constant 0 : index
    %c0_199 = arith.constant 0 : index
    %180 = vector.load %arg7[%c1_197, %c0_198, %c0_199] : memref<9x8x24xf32, #tpu.memory_space<vmem>>, vector<1x8x24xf32>
    %181 = vector.shape_cast %180 : vector<1x8x24xf32> to vector<8x24xf32>
    %cst_200 = arith.constant dense<0.000000e+00> : vector<8x716xf32>
    %182 = tpu.matmul %181, %179, %cst_200 {dimension_numbers = #tpu.dot_dimension_numbers<[1], [0], [0], [1], [0, 0, 1, 1], [], []>} : vector<8x24xf32>, vector<24x716xf32>, vector<8x716xf32> -> vector<8x716xf32>
    %183 = arith.addf %178, %182 : vector<8x716xf32>
    %c0_201 = arith.constant 0 : index
    %c23_202 = arith.constant 23 : index
    %184 = vector.load %arg12[%c0_201, %c23_202] : memref<32x800xf32, #tpu.memory_space<vmem>>, vector<24x716xf32>
    %c2_203 = arith.constant 2 : index
    %c0_204 = arith.constant 0 : index
    %c0_205 = arith.constant 0 : index
    %185 = vector.load %arg7[%c2_203, %c0_204, %c0_205] : memref<9x8x24xf32, #tpu.memory_space<vmem>>, vector<1x8x24xf32>
    %186 = vector.shape_cast %185 : vector<1x8x24xf32> to vector<8x24xf32>
    %cst_206 = arith.constant dense<0.000000e+00> : vector<8x716xf32>
    %187 = tpu.matmul %186, %184, %cst_206 {dimension_numbers = #tpu.dot_dimension_numbers<[1], [0], [0], [1], [0, 0, 1, 1], [], []>} : vector<8x24xf32>, vector<24x716xf32>, vector<8x716xf32> -> vector<8x716xf32>
    %188 = arith.addf %183, %187 : vector<8x716xf32>
    %c0_207 = arith.constant 0 : index
    %c41_208 = arith.constant 41 : index
    %189 = vector.load %arg12[%c0_207, %c41_208] : memref<32x800xf32, #tpu.memory_space<vmem>>, vector<24x716xf32>
    %c3_209 = arith.constant 3 : index
    %c0_210 = arith.constant 0 : index
    %c0_211 = arith.constant 0 : index
    %190 = vector.load %arg7[%c3_209, %c0_210, %c0_211] : memref<9x8x24xf32, #tpu.memory_space<vmem>>, vector<1x8x24xf32>
    %191 = vector.shape_cast %190 : vector<1x8x24xf32> to vector<8x24xf32>
    %cst_212 = arith.constant dense<0.000000e+00> : vector<8x716xf32>
    %192 = tpu.matmul %191, %189, %cst_212 {dimension_numbers = #tpu.dot_dimension_numbers<[1], [0], [0], [1], [0, 0, 1, 1], [], []>} : vector<8x24xf32>, vector<24x716xf32>, vector<8x716xf32> -> vector<8x716xf32>
    %193 = arith.addf %188, %192 : vector<8x716xf32>
    %c0_213 = arith.constant 0 : index
    %c42_214 = arith.constant 42 : index
    %194 = vector.load %arg12[%c0_213, %c42_214] : memref<32x800xf32, #tpu.memory_space<vmem>>, vector<24x716xf32>
    %c4_215 = arith.constant 4 : index
    %c0_216 = arith.constant 0 : index
    %c0_217 = arith.constant 0 : index
    %195 = vector.load %arg7[%c4_215, %c0_216, %c0_217] : memref<9x8x24xf32, #tpu.memory_space<vmem>>, vector<1x8x24xf32>
    %196 = vector.shape_cast %195 : vector<1x8x24xf32> to vector<8x24xf32>
    %cst_218 = arith.constant dense<0.000000e+00> : vector<8x716xf32>
    %197 = tpu.matmul %196, %194, %cst_218 {dimension_numbers = #tpu.dot_dimension_numbers<[1], [0], [0], [1], [0, 0, 1, 1], [], []>} : vector<8x24xf32>, vector<24x716xf32>, vector<8x716xf32> -> vector<8x716xf32>
    %198 = arith.addf %193, %197 : vector<8x716xf32>
    %c0_219 = arith.constant 0 : index
    %c43_220 = arith.constant 43 : index
    %199 = vector.load %arg12[%c0_219, %c43_220] : memref<32x800xf32, #tpu.memory_space<vmem>>, vector<24x716xf32>
    %c5_221 = arith.constant 5 : index
    %c0_222 = arith.constant 0 : index
    %c0_223 = arith.constant 0 : index
    %200 = vector.load %arg7[%c5_221, %c0_222, %c0_223] : memref<9x8x24xf32, #tpu.memory_space<vmem>>, vector<1x8x24xf32>
    %201 = vector.shape_cast %200 : vector<1x8x24xf32> to vector<8x24xf32>
    %cst_224 = arith.constant dense<0.000000e+00> : vector<8x716xf32>
    %202 = tpu.matmul %201, %199, %cst_224 {dimension_numbers = #tpu.dot_dimension_numbers<[1], [0], [0], [1], [0, 0, 1, 1], [], []>} : vector<8x24xf32>, vector<24x716xf32>, vector<8x716xf32> -> vector<8x716xf32>
    %203 = arith.addf %198, %202 : vector<8x716xf32>
    %c0_225 = arith.constant 0 : index
    %c61_226 = arith.constant 61 : index
    %204 = vector.load %arg12[%c0_225, %c61_226] : memref<32x800xf32, #tpu.memory_space<vmem>>, vector<24x716xf32>
    %c6_227 = arith.constant 6 : index
    %c0_228 = arith.constant 0 : index
    %c0_229 = arith.constant 0 : index
    %205 = vector.load %arg7[%c6_227, %c0_228, %c0_229] : memref<9x8x24xf32, #tpu.memory_space<vmem>>, vector<1x8x24xf32>
    %206 = vector.shape_cast %205 : vector<1x8x24xf32> to vector<8x24xf32>
    %cst_230 = arith.constant dense<0.000000e+00> : vector<8x716xf32>
    %207 = tpu.matmul %206, %204, %cst_230 {dimension_numbers = #tpu.dot_dimension_numbers<[1], [0], [0], [1], [0, 0, 1, 1], [], []>} : vector<8x24xf32>, vector<24x716xf32>, vector<8x716xf32> -> vector<8x716xf32>
    %208 = arith.addf %203, %207 : vector<8x716xf32>
    %c0_231 = arith.constant 0 : index
    %c62_232 = arith.constant 62 : index
    %209 = vector.load %arg12[%c0_231, %c62_232] : memref<32x800xf32, #tpu.memory_space<vmem>>, vector<24x716xf32>
    %c7_233 = arith.constant 7 : index
    %c0_234 = arith.constant 0 : index
    %c0_235 = arith.constant 0 : index
    %210 = vector.load %arg7[%c7_233, %c0_234, %c0_235] : memref<9x8x24xf32, #tpu.memory_space<vmem>>, vector<1x8x24xf32>
    %211 = vector.shape_cast %210 : vector<1x8x24xf32> to vector<8x24xf32>
    %cst_236 = arith.constant dense<0.000000e+00> : vector<8x716xf32>
    %212 = tpu.matmul %211, %209, %cst_236 {dimension_numbers = #tpu.dot_dimension_numbers<[1], [0], [0], [1], [0, 0, 1, 1], [], []>} : vector<8x24xf32>, vector<24x716xf32>, vector<8x716xf32> -> vector<8x716xf32>
    %213 = arith.addf %208, %212 : vector<8x716xf32>
    %c0_237 = arith.constant 0 : index
    %c63_238 = arith.constant 63 : index
    %214 = vector.load %arg12[%c0_237, %c63_238] : memref<32x800xf32, #tpu.memory_space<vmem>>, vector<24x716xf32>
    %c8_239 = arith.constant 8 : index
    %c0_240 = arith.constant 0 : index
    %c0_241 = arith.constant 0 : index
    %215 = vector.load %arg7[%c8_239, %c0_240, %c0_241] : memref<9x8x24xf32, #tpu.memory_space<vmem>>, vector<1x8x24xf32>
    %216 = vector.shape_cast %215 : vector<1x8x24xf32> to vector<8x24xf32>
    %cst_242 = arith.constant dense<0.000000e+00> : vector<8x716xf32>
    %217 = tpu.matmul %216, %214, %cst_242 {dimension_numbers = #tpu.dot_dimension_numbers<[1], [0], [0], [1], [0, 0, 1, 1], [], []>} : vector<8x24xf32>, vector<24x716xf32>, vector<8x716xf32> -> vector<8x716xf32>
    %218 = arith.addf %213, %217 : vector<8x716xf32>
    %c0_243 = arith.constant 0 : index
    %c0_244 = arith.constant 0 : index
    %219 = vector.load %arg8[%c0_243, %c0_244] : memref<8x1xf32, #tpu.memory_space<vmem>>, vector<8x1xf32>
    %220 = vector.broadcast %219 : vector<8x1xf32> to vector<8x716xf32>
    %221 = arith.addf %218, %220 : vector<8x716xf32>
    %cst_245 = arith.constant 0.000000e+00 : f32
    %222 = vector.broadcast %cst_245 : f32 to vector<8x716xf32>
    %223 = arith.maximumf %221, %222 : vector<8x716xf32>
    %224 = vector.broadcast %70 : vector<1x716xf32> to vector<8x716xf32>
    %225 = arith.mulf %223, %224 : vector<8x716xf32>
    %c24 = arith.constant 24 : index
    %c42_246 = arith.constant 42 : index
    %226 = vector.load %arg12[%c24, %c42_246] : memref<32x800xf32, #tpu.memory_space<vmem>>, vector<8x716xf32>
    tpu.vector_store %arg12[%c24, %c42_246], %225 {strides = array<i32>} : memref<32x800xf32, #tpu.memory_space<vmem>>, vector<8x716xf32>,
    %c0_247 = arith.constant 0 : index
    %c0_248 = arith.constant 0 : index
    %227 = vector.load %arg9[%c0_247, %c0_248] : memref<4x32xf32, #tpu.memory_space<vmem>>, vector<4x32xf32>
    %c0_249 = arith.constant 0 : index
    %c42_250 = arith.constant 42 : index
    %228 = vector.load %arg12[%c0_249, %c42_250] : memref<32x800xf32, #tpu.memory_space<vmem>>, vector<32x716xf32>
    %cst_251 = arith.constant dense<0.000000e+00> : vector<4x716xf32>
    %229 = tpu.matmul %227, %228, %cst_251 {dimension_numbers = #tpu.dot_dimension_numbers<[1], [0], [0], [1], [0, 0, 1, 1], [], []>} : vector<4x32xf32>, vector<32x716xf32>, vector<4x716xf32> -> vector<4x716xf32>
    %c0_252 = arith.constant 0 : index
    %c0_253 = arith.constant 0 : index
    %230 = vector.load %arg10[%c0_252, %c0_253] : memref<4x1xf32, #tpu.memory_space<vmem>>, vector<4x1xf32>
    %231 = vector.broadcast %230 : vector<4x1xf32> to vector<4x716xf32>
    %232 = arith.addf %229, %231 : vector<4x716xf32>
    %233 = vector.extract_strided_slice %232 {offsets = [0, 0], sizes = [4, 16], strides = [1, 1]} : vector<4x716xf32> to vector<4x16xf32>
    %c0_254 = arith.constant 0 : index
    %c0_255 = arith.constant 0 : index
    %234 = vector.load %arg1[%c0_254, %c0_255] : memref<8x256xf32, #tpu.memory_space<vmem>>, vector<4x16xf32>
    %235 = arith.addf %233, %234 : vector<4x16xf32>
    %c0_256 = arith.constant 0 : index
    %c0_257 = arith.constant 0 : index
    %236 = vector.load %arg11[%c0_256, %c0_257] : memref<8x256xf32, #tpu.memory_space<vmem>>, vector<4x16xf32>
    tpu.vector_store %arg11[%c0_256, %c0_257], %235 {strides = array<i32>} : memref<8x256xf32, #tpu.memory_space<vmem>>, vector<4x16xf32>,
    %237 = vector.extract_strided_slice %232 {offsets = [0, 20], sizes = [4, 16], strides = [1, 1]} : vector<4x716xf32> to vector<4x16xf32>
    %c0_258 = arith.constant 0 : index
    %c16_259 = arith.constant 16 : index
    %238 = vector.load %arg1[%c0_258, %c16_259] : memref<8x256xf32, #tpu.memory_space<vmem>>, vector<4x16xf32>
    %239 = arith.addf %237, %238 : vector<4x16xf32>
    %c0_260 = arith.constant 0 : index
    %c16_261 = arith.constant 16 : index
    %240 = vector.load %arg11[%c0_260, %c16_261] : memref<8x256xf32, #tpu.memory_space<vmem>>, vector<4x16xf32>
    tpu.vector_store %arg11[%c0_260, %c16_261], %239 {strides = array<i32>} : memref<8x256xf32, #tpu.memory_space<vmem>>, vector<4x16xf32>,
    %241 = vector.extract_strided_slice %232 {offsets = [0, 40], sizes = [4, 16], strides = [1, 1]} : vector<4x716xf32> to vector<4x16xf32>
    %c0_262 = arith.constant 0 : index
    %c32_263 = arith.constant 32 : index
    %242 = vector.load %arg1[%c0_262, %c32_263] : memref<8x256xf32, #tpu.memory_space<vmem>>, vector<4x16xf32>
    %243 = arith.addf %241, %242 : vector<4x16xf32>
    %c0_264 = arith.constant 0 : index
    %c32_265 = arith.constant 32 : index
    %244 = vector.load %arg11[%c0_264, %c32_265] : memref<8x256xf32, #tpu.memory_space<vmem>>, vector<4x16xf32>
    tpu.vector_store %arg11[%c0_264, %c32_265], %243 {strides = array<i32>} : memref<8x256xf32, #tpu.memory_space<vmem>>, vector<4x16xf32>,
    %245 = vector.extract_strided_slice %232 {offsets = [0, 60], sizes = [4, 16], strides = [1, 1]} : vector<4x716xf32> to vector<4x16xf32>
    %c0_266 = arith.constant 0 : index
    %c48_267 = arith.constant 48 : index
    %246 = vector.load %arg1[%c0_266, %c48_267] : memref<8x256xf32, #tpu.memory_space<vmem>>, vector<4x16xf32>
    %247 = arith.addf %245, %246 : vector<4x16xf32>
    %c0_268 = arith.constant 0 : index
    %c48_269 = arith.constant 48 : index
    %248 = vector.load %arg11[%c0_268, %c48_269] : memref<8x256xf32, #tpu.memory_space<vmem>>, vector<4x16xf32>
    tpu.vector_store %arg11[%c0_268, %c48_269], %247 {strides = array<i32>} : memref<8x256xf32, #tpu.memory_space<vmem>>, vector<4x16xf32>,
    %249 = vector.extract_strided_slice %232 {offsets = [0, 80], sizes = [4, 16], strides = [1, 1]} : vector<4x716xf32> to vector<4x16xf32>
    %c0_270 = arith.constant 0 : index
    %c64_271 = arith.constant 64 : index
    %250 = vector.load %arg1[%c0_270, %c64_271] : memref<8x256xf32, #tpu.memory_space<vmem>>, vector<4x16xf32>
    %251 = arith.addf %249, %250 : vector<4x16xf32>
    %c0_272 = arith.constant 0 : index
    %c64_273 = arith.constant 64 : index
    %252 = vector.load %arg11[%c0_272, %c64_273] : memref<8x256xf32, #tpu.memory_space<vmem>>, vector<4x16xf32>
    tpu.vector_store %arg11[%c0_272, %c64_273], %251 {strides = array<i32>} : memref<8x256xf32, #tpu.memory_space<vmem>>, vector<4x16xf32>,
    %253 = vector.extract_strided_slice %232 {offsets = [0, 100], sizes = [4, 16], strides = [1, 1]} : vector<4x716xf32> to vector<4x16xf32>
    %c0_274 = arith.constant 0 : index
    %c80_275 = arith.constant 80 : index
    %254 = vector.load %arg1[%c0_274, %c80_275] : memref<8x256xf32, #tpu.memory_space<vmem>>, vector<4x16xf32>
    %255 = arith.addf %253, %254 : vector<4x16xf32>
    %c0_276 = arith.constant 0 : index
    %c80_277 = arith.constant 80 : index
    %256 = vector.load %arg11[%c0_276, %c80_277] : memref<8x256xf32, #tpu.memory_space<vmem>>, vector<4x16xf32>
    tpu.vector_store %arg11[%c0_276, %c80_277], %255 {strides = array<i32>} : memref<8x256xf32, #tpu.memory_space<vmem>>, vector<4x16xf32>,
    %257 = vector.extract_strided_slice %232 {offsets = [0, 120], sizes = [4, 16], strides = [1, 1]} : vector<4x716xf32> to vector<4x16xf32>
    %c0_278 = arith.constant 0 : index
    %c96_279 = arith.constant 96 : index
    %258 = vector.load %arg1[%c0_278, %c96_279] : memref<8x256xf32, #tpu.memory_space<vmem>>, vector<4x16xf32>
    %259 = arith.addf %257, %258 : vector<4x16xf32>
    %c0_280 = arith.constant 0 : index
    %c96_281 = arith.constant 96 : index
    %260 = vector.load %arg11[%c0_280, %c96_281] : memref<8x256xf32, #tpu.memory_space<vmem>>, vector<4x16xf32>
    tpu.vector_store %arg11[%c0_280, %c96_281], %259 {strides = array<i32>} : memref<8x256xf32, #tpu.memory_space<vmem>>, vector<4x16xf32>,
    %261 = vector.extract_strided_slice %232 {offsets = [0, 140], sizes = [4, 16], strides = [1, 1]} : vector<4x716xf32> to vector<4x16xf32>
    %c0_282 = arith.constant 0 : index
    %c112_283 = arith.constant 112 : index
    %262 = vector.load %arg1[%c0_282, %c112_283] : memref<8x256xf32, #tpu.memory_space<vmem>>, vector<4x16xf32>
    %263 = arith.addf %261, %262 : vector<4x16xf32>
    %c0_284 = arith.constant 0 : index
    %c112_285 = arith.constant 112 : index
    %264 = vector.load %arg11[%c0_284, %c112_285] : memref<8x256xf32, #tpu.memory_space<vmem>>, vector<4x16xf32>
    tpu.vector_store %arg11[%c0_284, %c112_285], %263 {strides = array<i32>} : memref<8x256xf32, #tpu.memory_space<vmem>>, vector<4x16xf32>,
    %265 = vector.extract_strided_slice %232 {offsets = [0, 160], sizes = [4, 16], strides = [1, 1]} : vector<4x716xf32> to vector<4x16xf32>
    %c0_286 = arith.constant 0 : index
    %c128_287 = arith.constant 128 : index
    %266 = vector.load %arg1[%c0_286, %c128_287] : memref<8x256xf32, #tpu.memory_space<vmem>>, vector<4x16xf32>
    %267 = arith.addf %265, %266 : vector<4x16xf32>
    %c0_288 = arith.constant 0 : index
    %c128_289 = arith.constant 128 : index
    %268 = vector.load %arg11[%c0_288, %c128_289] : memref<8x256xf32, #tpu.memory_space<vmem>>, vector<4x16xf32>
    tpu.vector_store %arg11[%c0_288, %c128_289], %267 {strides = array<i32>} : memref<8x256xf32, #tpu.memory_space<vmem>>, vector<4x16xf32>,
    %269 = vector.extract_strided_slice %232 {offsets = [0, 180], sizes = [4, 16], strides = [1, 1]} : vector<4x716xf32> to vector<4x16xf32>
    %c0_290 = arith.constant 0 : index
    %c144_291 = arith.constant 144 : index
    %270 = vector.load %arg1[%c0_290, %c144_291] : memref<8x256xf32, #tpu.memory_space<vmem>>, vector<4x16xf32>
    %271 = arith.addf %269, %270 : vector<4x16xf32>
    %c0_292 = arith.constant 0 : index
    %c144_293 = arith.constant 144 : index
    %272 = vector.load %arg11[%c0_292, %c144_293] : memref<8x256xf32, #tpu.memory_space<vmem>>, vector<4x16xf32>
    tpu.vector_store %arg11[%c0_292, %c144_293], %271 {strides = array<i32>} : memref<8x256xf32, #tpu.memory_space<vmem>>, vector<4x16xf32>,
    %273 = vector.extract_strided_slice %232 {offsets = [0, 200], sizes = [4, 16], strides = [1, 1]} : vector<4x716xf32> to vector<4x16xf32>
    %c0_294 = arith.constant 0 : index
    %c160_295 = arith.constant 160 : index
    %274 = vector.load %arg1[%c0_294, %c160_295] : memref<8x256xf32, #tpu.memory_space<vmem>>, vector<4x16xf32>
    %275 = arith.addf %273, %274 : vector<4x16xf32>
    %c0_296 = arith.constant 0 : index
    %c160_297 = arith.constant 160 : index
    %276 = vector.load %arg11[%c0_296, %c160_297] : memref<8x256xf32, #tpu.memory_space<vmem>>, vector<4x16xf32>
    tpu.vector_store %arg11[%c0_296, %c160_297], %275 {strides = array<i32>} : memref<8x256xf32, #tpu.memory_space<vmem>>, vector<4x16xf32>,
    %277 = vector.extract_strided_slice %232 {offsets = [0, 220], sizes = [4, 16], strides = [1, 1]} : vector<4x716xf32> to vector<4x16xf32>
    %c0_298 = arith.constant 0 : index
    %c176_299 = arith.constant 176 : index
    %278 = vector.load %arg1[%c0_298, %c176_299] : memref<8x256xf32, #tpu.memory_space<vmem>>, vector<4x16xf32>
    %279 = arith.addf %277, %278 : vector<4x16xf32>
    %c0_300 = arith.constant 0 : index
    %c176_301 = arith.constant 176 : index
    %280 = vector.load %arg11[%c0_300, %c176_301] : memref<8x256xf32, #tpu.memory_space<vmem>>, vector<4x16xf32>
    tpu.vector_store %arg11[%c0_300, %c176_301], %279 {strides = array<i32>} : memref<8x256xf32, #tpu.memory_space<vmem>>, vector<4x16xf32>,
    %281 = vector.extract_strided_slice %232 {offsets = [0, 240], sizes = [4, 16], strides = [1, 1]} : vector<4x716xf32> to vector<4x16xf32>
    %c0_302 = arith.constant 0 : index
    %c192_303 = arith.constant 192 : index
    %282 = vector.load %arg1[%c0_302, %c192_303] : memref<8x256xf32, #tpu.memory_space<vmem>>, vector<4x16xf32>
    %283 = arith.addf %281, %282 : vector<4x16xf32>
    %c0_304 = arith.constant 0 : index
    %c192_305 = arith.constant 192 : index
    %284 = vector.load %arg11[%c0_304, %c192_305] : memref<8x256xf32, #tpu.memory_space<vmem>>, vector<4x16xf32>
    tpu.vector_store %arg11[%c0_304, %c192_305], %283 {strides = array<i32>} : memref<8x256xf32, #tpu.memory_space<vmem>>, vector<4x16xf32>,
    %285 = vector.extract_strided_slice %232 {offsets = [0, 260], sizes = [4, 16], strides = [1, 1]} : vector<4x716xf32> to vector<4x16xf32>
    %c0_306 = arith.constant 0 : index
    %c208_307 = arith.constant 208 : index
    %286 = vector.load %arg1[%c0_306, %c208_307] : memref<8x256xf32, #tpu.memory_space<vmem>>, vector<4x16xf32>
    %287 = arith.addf %285, %286 : vector<4x16xf32>
    %c0_308 = arith.constant 0 : index
    %c208_309 = arith.constant 208 : index
    %288 = vector.load %arg11[%c0_308, %c208_309] : memref<8x256xf32, #tpu.memory_space<vmem>>, vector<4x16xf32>
    tpu.vector_store %arg11[%c0_308, %c208_309], %287 {strides = array<i32>} : memref<8x256xf32, #tpu.memory_space<vmem>>, vector<4x16xf32>,
    %289 = vector.extract_strided_slice %232 {offsets = [0, 280], sizes = [4, 16], strides = [1, 1]} : vector<4x716xf32> to vector<4x16xf32>
    %c0_310 = arith.constant 0 : index
    %c224_311 = arith.constant 224 : index
    %290 = vector.load %arg1[%c0_310, %c224_311] : memref<8x256xf32, #tpu.memory_space<vmem>>, vector<4x16xf32>
    %291 = arith.addf %289, %290 : vector<4x16xf32>
    %c0_312 = arith.constant 0 : index
    %c224_313 = arith.constant 224 : index
    %292 = vector.load %arg11[%c0_312, %c224_313] : memref<8x256xf32, #tpu.memory_space<vmem>>, vector<4x16xf32>
    tpu.vector_store %arg11[%c0_312, %c224_313], %291 {strides = array<i32>} : memref<8x256xf32, #tpu.memory_space<vmem>>, vector<4x16xf32>,
    %293 = vector.extract_strided_slice %232 {offsets = [0, 300], sizes = [4, 16], strides = [1, 1]} : vector<4x716xf32> to vector<4x16xf32>
    %c0_314 = arith.constant 0 : index
    %c240_315 = arith.constant 240 : index
    %294 = vector.load %arg1[%c0_314, %c240_315] : memref<8x256xf32, #tpu.memory_space<vmem>>, vector<4x16xf32>
    %295 = arith.addf %293, %294 : vector<4x16xf32>
    %c0_316 = arith.constant 0 : index
    %c240_317 = arith.constant 240 : index
    %296 = vector.load %arg11[%c0_316, %c240_317] : memref<8x256xf32, #tpu.memory_space<vmem>>, vector<4x16xf32>
    tpu.vector_store %arg11[%c0_316, %c240_317], %295 {strides = array<i32>} : memref<8x256xf32, #tpu.memory_space<vmem>>, vector<4x16xf32>,
    %297 = vector.extract_strided_slice %232 {offsets = [0, 400], sizes = [4, 16], strides = [1, 1]} : vector<4x716xf32> to vector<4x16xf32>
    %c4_318 = arith.constant 4 : index
    %c0_319 = arith.constant 0 : index
    %298 = vector.load %arg1[%c4_318, %c0_319] : memref<8x256xf32, #tpu.memory_space<vmem>>, vector<4x16xf32>
    %299 = arith.addf %297, %298 : vector<4x16xf32>
    %c4_320 = arith.constant 4 : index
    %c0_321 = arith.constant 0 : index
    %300 = vector.load %arg11[%c4_320, %c0_321] : memref<8x256xf32, #tpu.memory_space<vmem>>, vector<4x16xf32>
    tpu.vector_store %arg11[%c4_320, %c0_321], %299 {strides = array<i32>} : memref<8x256xf32, #tpu.memory_space<vmem>>, vector<4x16xf32>,
    %301 = vector.extract_strided_slice %232 {offsets = [0, 420], sizes = [4, 16], strides = [1, 1]} : vector<4x716xf32> to vector<4x16xf32>
    %c4_322 = arith.constant 4 : index
    %c16_323 = arith.constant 16 : index
    %302 = vector.load %arg1[%c4_322, %c16_323] : memref<8x256xf32, #tpu.memory_space<vmem>>, vector<4x16xf32>
    %303 = arith.addf %301, %302 : vector<4x16xf32>
    %c4_324 = arith.constant 4 : index
    %c16_325 = arith.constant 16 : index
    %304 = vector.load %arg11[%c4_324, %c16_325] : memref<8x256xf32, #tpu.memory_space<vmem>>, vector<4x16xf32>
    tpu.vector_store %arg11[%c4_324, %c16_325], %303 {strides = array<i32>} : memref<8x256xf32, #tpu.memory_space<vmem>>, vector<4x16xf32>,
    %305 = vector.extract_strided_slice %232 {offsets = [0, 440], sizes = [4, 16], strides = [1, 1]} : vector<4x716xf32> to vector<4x16xf32>
    %c4_326 = arith.constant 4 : index
    %c32_327 = arith.constant 32 : index
    %306 = vector.load %arg1[%c4_326, %c32_327] : memref<8x256xf32, #tpu.memory_space<vmem>>, vector<4x16xf32>
    %307 = arith.addf %305, %306 : vector<4x16xf32>
    %c4_328 = arith.constant 4 : index
    %c32_329 = arith.constant 32 : index
    %308 = vector.load %arg11[%c4_328, %c32_329] : memref<8x256xf32, #tpu.memory_space<vmem>>, vector<4x16xf32>
    tpu.vector_store %arg11[%c4_328, %c32_329], %307 {strides = array<i32>} : memref<8x256xf32, #tpu.memory_space<vmem>>, vector<4x16xf32>,
    %309 = vector.extract_strided_slice %232 {offsets = [0, 460], sizes = [4, 16], strides = [1, 1]} : vector<4x716xf32> to vector<4x16xf32>
    %c4_330 = arith.constant 4 : index
    %c48_331 = arith.constant 48 : index
    %310 = vector.load %arg1[%c4_330, %c48_331] : memref<8x256xf32, #tpu.memory_space<vmem>>, vector<4x16xf32>
    %311 = arith.addf %309, %310 : vector<4x16xf32>
    %c4_332 = arith.constant 4 : index
    %c48_333 = arith.constant 48 : index
    %312 = vector.load %arg11[%c4_332, %c48_333] : memref<8x256xf32, #tpu.memory_space<vmem>>, vector<4x16xf32>
    tpu.vector_store %arg11[%c4_332, %c48_333], %311 {strides = array<i32>} : memref<8x256xf32, #tpu.memory_space<vmem>>, vector<4x16xf32>,
    %313 = vector.extract_strided_slice %232 {offsets = [0, 480], sizes = [4, 16], strides = [1, 1]} : vector<4x716xf32> to vector<4x16xf32>
    %c4_334 = arith.constant 4 : index
    %c64_335 = arith.constant 64 : index
    %314 = vector.load %arg1[%c4_334, %c64_335] : memref<8x256xf32, #tpu.memory_space<vmem>>, vector<4x16xf32>
    %315 = arith.addf %313, %314 : vector<4x16xf32>
    %c4_336 = arith.constant 4 : index
    %c64_337 = arith.constant 64 : index
    %316 = vector.load %arg11[%c4_336, %c64_337] : memref<8x256xf32, #tpu.memory_space<vmem>>, vector<4x16xf32>
    tpu.vector_store %arg11[%c4_336, %c64_337], %315 {strides = array<i32>} : memref<8x256xf32, #tpu.memory_space<vmem>>, vector<4x16xf32>,
    %317 = vector.extract_strided_slice %232 {offsets = [0, 500], sizes = [4, 16], strides = [1, 1]} : vector<4x716xf32> to vector<4x16xf32>
    %c4_338 = arith.constant 4 : index
    %c80_339 = arith.constant 80 : index
    %318 = vector.load %arg1[%c4_338, %c80_339] : memref<8x256xf32, #tpu.memory_space<vmem>>, vector<4x16xf32>
    %319 = arith.addf %317, %318 : vector<4x16xf32>
    %c4_340 = arith.constant 4 : index
    %c80_341 = arith.constant 80 : index
    %320 = vector.load %arg11[%c4_340, %c80_341] : memref<8x256xf32, #tpu.memory_space<vmem>>, vector<4x16xf32>
    tpu.vector_store %arg11[%c4_340, %c80_341], %319 {strides = array<i32>} : memref<8x256xf32, #tpu.memory_space<vmem>>, vector<4x16xf32>,
    %321 = vector.extract_strided_slice %232 {offsets = [0, 520], sizes = [4, 16], strides = [1, 1]} : vector<4x716xf32> to vector<4x16xf32>
    %c4_342 = arith.constant 4 : index
    %c96_343 = arith.constant 96 : index
    %322 = vector.load %arg1[%c4_342, %c96_343] : memref<8x256xf32, #tpu.memory_space<vmem>>, vector<4x16xf32>
    %323 = arith.addf %321, %322 : vector<4x16xf32>
    %c4_344 = arith.constant 4 : index
    %c96_345 = arith.constant 96 : index
    %324 = vector.load %arg11[%c4_344, %c96_345] : memref<8x256xf32, #tpu.memory_space<vmem>>, vector<4x16xf32>
    tpu.vector_store %arg11[%c4_344, %c96_345], %323 {strides = array<i32>} : memref<8x256xf32, #tpu.memory_space<vmem>>, vector<4x16xf32>,
    %325 = vector.extract_strided_slice %232 {offsets = [0, 540], sizes = [4, 16], strides = [1, 1]} : vector<4x716xf32> to vector<4x16xf32>
    %c4_346 = arith.constant 4 : index
    %c112_347 = arith.constant 112 : index
    %326 = vector.load %arg1[%c4_346, %c112_347] : memref<8x256xf32, #tpu.memory_space<vmem>>, vector<4x16xf32>
    %327 = arith.addf %325, %326 : vector<4x16xf32>
    %c4_348 = arith.constant 4 : index
    %c112_349 = arith.constant 112 : index
    %328 = vector.load %arg11[%c4_348, %c112_349] : memref<8x256xf32, #tpu.memory_space<vmem>>, vector<4x16xf32>
    tpu.vector_store %arg11[%c4_348, %c112_349], %327 {strides = array<i32>} : memref<8x256xf32, #tpu.memory_space<vmem>>, vector<4x16xf32>,
    %329 = vector.extract_strided_slice %232 {offsets = [0, 560], sizes = [4, 16], strides = [1, 1]} : vector<4x716xf32> to vector<4x16xf32>
    %c4_350 = arith.constant 4 : index
    %c128_351 = arith.constant 128 : index
    %330 = vector.load %arg1[%c4_350, %c128_351] : memref<8x256xf32, #tpu.memory_space<vmem>>, vector<4x16xf32>
    %331 = arith.addf %329, %330 : vector<4x16xf32>
    %c4_352 = arith.constant 4 : index
    %c128_353 = arith.constant 128 : index
    %332 = vector.load %arg11[%c4_352, %c128_353] : memref<8x256xf32, #tpu.memory_space<vmem>>, vector<4x16xf32>
    tpu.vector_store %arg11[%c4_352, %c128_353], %331 {strides = array<i32>} : memref<8x256xf32, #tpu.memory_space<vmem>>, vector<4x16xf32>,
    %333 = vector.extract_strided_slice %232 {offsets = [0, 580], sizes = [4, 16], strides = [1, 1]} : vector<4x716xf32> to vector<4x16xf32>
    %c4_354 = arith.constant 4 : index
    %c144_355 = arith.constant 144 : index
    %334 = vector.load %arg1[%c4_354, %c144_355] : memref<8x256xf32, #tpu.memory_space<vmem>>, vector<4x16xf32>
    %335 = arith.addf %333, %334 : vector<4x16xf32>
    %c4_356 = arith.constant 4 : index
    %c144_357 = arith.constant 144 : index
    %336 = vector.load %arg11[%c4_356, %c144_357] : memref<8x256xf32, #tpu.memory_space<vmem>>, vector<4x16xf32>
    tpu.vector_store %arg11[%c4_356, %c144_357], %335 {strides = array<i32>} : memref<8x256xf32, #tpu.memory_space<vmem>>, vector<4x16xf32>,
    %337 = vector.extract_strided_slice %232 {offsets = [0, 600], sizes = [4, 16], strides = [1, 1]} : vector<4x716xf32> to vector<4x16xf32>
    %c4_358 = arith.constant 4 : index
    %c160_359 = arith.constant 160 : index
    %338 = vector.load %arg1[%c4_358, %c160_359] : memref<8x256xf32, #tpu.memory_space<vmem>>, vector<4x16xf32>
    %339 = arith.addf %337, %338 : vector<4x16xf32>
    %c4_360 = arith.constant 4 : index
    %c160_361 = arith.constant 160 : index
    %340 = vector.load %arg11[%c4_360, %c160_361] : memref<8x256xf32, #tpu.memory_space<vmem>>, vector<4x16xf32>
    tpu.vector_store %arg11[%c4_360, %c160_361], %339 {strides = array<i32>} : memref<8x256xf32, #tpu.memory_space<vmem>>, vector<4x16xf32>,
    %341 = vector.extract_strided_slice %232 {offsets = [0, 620], sizes = [4, 16], strides = [1, 1]} : vector<4x716xf32> to vector<4x16xf32>
    %c4_362 = arith.constant 4 : index
    %c176_363 = arith.constant 176 : index
    %342 = vector.load %arg1[%c4_362, %c176_363] : memref<8x256xf32, #tpu.memory_space<vmem>>, vector<4x16xf32>
    %343 = arith.addf %341, %342 : vector<4x16xf32>
    %c4_364 = arith.constant 4 : index
    %c176_365 = arith.constant 176 : index
    %344 = vector.load %arg11[%c4_364, %c176_365] : memref<8x256xf32, #tpu.memory_space<vmem>>, vector<4x16xf32>
    tpu.vector_store %arg11[%c4_364, %c176_365], %343 {strides = array<i32>} : memref<8x256xf32, #tpu.memory_space<vmem>>, vector<4x16xf32>,
    %345 = vector.extract_strided_slice %232 {offsets = [0, 640], sizes = [4, 16], strides = [1, 1]} : vector<4x716xf32> to vector<4x16xf32>
    %c4_366 = arith.constant 4 : index
    %c192_367 = arith.constant 192 : index
    %346 = vector.load %arg1[%c4_366, %c192_367] : memref<8x256xf32, #tpu.memory_space<vmem>>, vector<4x16xf32>
    %347 = arith.addf %345, %346 : vector<4x16xf32>
    %c4_368 = arith.constant 4 : index
    %c192_369 = arith.constant 192 : index
    %348 = vector.load %arg11[%c4_368, %c192_369] : memref<8x256xf32, #tpu.memory_space<vmem>>, vector<4x16xf32>
    tpu.vector_store %arg11[%c4_368, %c192_369], %347 {strides = array<i32>} : memref<8x256xf32, #tpu.memory_space<vmem>>, vector<4x16xf32>,
    %349 = vector.extract_strided_slice %232 {offsets = [0, 660], sizes = [4, 16], strides = [1, 1]} : vector<4x716xf32> to vector<4x16xf32>
    %c4_370 = arith.constant 4 : index
    %c208_371 = arith.constant 208 : index
    %350 = vector.load %arg1[%c4_370, %c208_371] : memref<8x256xf32, #tpu.memory_space<vmem>>, vector<4x16xf32>
    %351 = arith.addf %349, %350 : vector<4x16xf32>
    %c4_372 = arith.constant 4 : index
    %c208_373 = arith.constant 208 : index
    %352 = vector.load %arg11[%c4_372, %c208_373] : memref<8x256xf32, #tpu.memory_space<vmem>>, vector<4x16xf32>
    tpu.vector_store %arg11[%c4_372, %c208_373], %351 {strides = array<i32>} : memref<8x256xf32, #tpu.memory_space<vmem>>, vector<4x16xf32>,
    %353 = vector.extract_strided_slice %232 {offsets = [0, 680], sizes = [4, 16], strides = [1, 1]} : vector<4x716xf32> to vector<4x16xf32>
    %c4_374 = arith.constant 4 : index
    %c224_375 = arith.constant 224 : index
    %354 = vector.load %arg1[%c4_374, %c224_375] : memref<8x256xf32, #tpu.memory_space<vmem>>, vector<4x16xf32>
    %355 = arith.addf %353, %354 : vector<4x16xf32>
    %c4_376 = arith.constant 4 : index
    %c224_377 = arith.constant 224 : index
    %356 = vector.load %arg11[%c4_376, %c224_377] : memref<8x256xf32, #tpu.memory_space<vmem>>, vector<4x16xf32>
    tpu.vector_store %arg11[%c4_376, %c224_377], %355 {strides = array<i32>} : memref<8x256xf32, #tpu.memory_space<vmem>>, vector<4x16xf32>,
    %357 = vector.extract_strided_slice %232 {offsets = [0, 700], sizes = [4, 16], strides = [1, 1]} : vector<4x716xf32> to vector<4x16xf32>
    %c4_378 = arith.constant 4 : index
    %c240_379 = arith.constant 240 : index
    %358 = vector.load %arg1[%c4_378, %c240_379] : memref<8x256xf32, #tpu.memory_space<vmem>>, vector<4x16xf32>
    %359 = arith.addf %357, %358 : vector<4x16xf32>
    %c4_380 = arith.constant 4 : index
    %c240_381 = arith.constant 240 : index
    %360 = vector.load %arg11[%c4_380, %c240_381] : memref<8x256xf32, #tpu.memory_space<vmem>>, vector<4x16xf32>
    tpu.vector_store %arg11[%c4_380, %c240_381], %359 {strides = array<i32>} : memref<8x256xf32, #tpu.memory_space<vmem>>, vector<4x16xf32>,
    return
  }
  func.func @transform_0(%arg0: i32) -> (i32, i32) {
    %c0_i32 = arith.constant 0 : i32
    %c0_i32_0 = arith.constant 0 : i32
    return %arg0, %c0_i32 : i32, i32
  }
  func.func @transform_1(%arg0: i32) -> (i32, i32) {
    %c0_i32 = arith.constant 0 : i32
    %c0_i32_0 = arith.constant 0 : i32
    %c0_i32_1 = arith.constant 0 : i32
    return %c0_i32, %c0_i32_0 : i32, i32
  }
  func.func @transform_2(%arg0: i32) -> (i32, i32, i32) {
    %c0_i32 = arith.constant 0 : i32
    %c0_i32_0 = arith.constant 0 : i32
    %c0_i32_1 = arith.constant 0 : i32
    %c0_i32_2 = arith.constant 0 : i32
    return %c0_i32, %c0_i32_0, %c0_i32_1 : i32, i32, i32
  }
  func.func @transform_3(%arg0: i32) -> (i32, i32) {
    %c0_i32 = arith.constant 0 : i32
    %c0_i32_0 = arith.constant 0 : i32
    %c0_i32_1 = arith.constant 0 : i32
    return %c0_i32, %c0_i32_0 : i32, i32
  }
  func.func @transform_4(%arg0: i32) -> (i32, i32, i32) {
    %c0_i32 = arith.constant 0 : i32
    %c0_i32_0 = arith.constant 0 : i32
    %c0_i32_1 = arith.constant 0 : i32
    %c0_i32_2 = arith.constant 0 : i32
    return %c0_i32, %c0_i32_0, %c0_i32_1 : i32, i32, i32
  }
  func.func @transform_5(%arg0: i32) -> (i32, i32) {
    %c0_i32 = arith.constant 0 : i32
    %c0_i32_0 = arith.constant 0 : i32
    %c0_i32_1 = arith.constant 0 : i32
    return %c0_i32, %c0_i32_0 : i32, i32
  }
  func.func @transform_6(%arg0: i32) -> (i32, i32, i32) {
    %c0_i32 = arith.constant 0 : i32
    %c0_i32_0 = arith.constant 0 : i32
    %c0_i32_1 = arith.constant 0 : i32
    %c0_i32_2 = arith.constant 0 : i32
    return %c0_i32, %c0_i32_0, %c0_i32_1 : i32, i32, i32
  }
  func.func @transform_7(%arg0: i32) -> (i32, i32) {
    %c0_i32 = arith.constant 0 : i32
    %c0_i32_0 = arith.constant 0 : i32
    %c0_i32_1 = arith.constant 0 : i32
    return %c0_i32, %c0_i32_0 : i32, i32
  }
  func.func @transform_8(%arg0: i32) -> (i32, i32) {
    %c0_i32 = arith.constant 0 : i32
    %c0_i32_0 = arith.constant 0 : i32
    %c0_i32_1 = arith.constant 0 : i32
    return %c0_i32, %c0_i32_0 : i32, i32
  }
  func.func @transform_9(%arg0: i32) -> (i32, i32) {
    %c0_i32 = arith.constant 0 : i32
    %c0_i32_0 = arith.constant 0 : i32
    %c0_i32_1 = arith.constant 0 : i32
    return %c0_i32, %c0_i32_0 : i32, i32
  }
  func.func @transform_10(%arg0: i32) -> (i32, i32) {
    %c0_i32 = arith.constant 0 : i32
    %c0_i32_0 = arith.constant 0 : i32
    return %arg0, %c0_i32 : i32, i32
  }
}

</mosaic_0001>

<bundles_post_ra>
// kernel: tpu_custom_call.1
= control target key start
LH: loop header
LB: loop body
LE: loop exit
PB: predicated region body
PF: predicated region fallthrough
CT: control target
= control target key end

     0   :  { %s12884_s0 = inlined_call_operand.hbm [shape: f32[16,256], index: 0, kind: input, shape index: {}]   ;;  %s12885_s1 = inlined_call_operand.vmem [shape: f32[1,716], index: 1, kind: input, shape index: {}]   ;;  %s12886_s2 = inlined_call_operand.vmem [shape: f32[9,8,8], index: 2, kind: input, shape index: {}]   ;;  %s12887_s3 = inlined_call_operand.vmem [shape: f32[8,1], index: 3, kind: input, shape index: {}]   ;;  %s12888_s4 = inlined_call_operand.vmem [shape: f32[9,8,16], index: 4, kind: input, shape index: {}]   ;;  %s12889_s5 = inlined_call_operand.vmem [shape: f32[8,1], index: 5, kind: input, shape index: {}]   ;;  %s12890_s6 = inlined_call_operand.vmem [shape: f32[9,8,24], index: 6, kind: input, shape index: {}]   ;;  %s12891_s7 = inlined_call_operand.vmem [shape: f32[8,1], index: 7, kind: input, shape index: {}]   ;;  %s12892_s8 = inlined_call_operand.vmem [shape: f32[4,32], index: 8, kind: input, shape index: {}]   ;;  %s12893_s9 = inlined_call_operand.vmem [shape: f32[4,1], index: 9, kind: input, shape index: {}]   ;;  %s12894_s10 = inlined_call_operand.hbm [shape: f32[16,256], index: 10, kind: output, shape index: {}]  }
   0x1   :  { %12961 = sst [smem:[#allocation29_spill]] %s12884_s0 }
   0x2   :  { %12962 = sst [smem:[#allocation30_spill]] %s12885_s1 }
   0x3   :  { %15 = vsyncpa [#allocation4], 0 }
   0x4   :  { %17 = vsyncpa [#allocation4 + $0x1], 0 }
   0x5   :  { %18 = vsyncpa [#allocation5], 0 }
   0x6   :  { %20 = vsyncpa [#allocation5 + $0x1], 0  ;;  %s10591_s13 = smov 0   ;;  %s10593_s14 = smov 0  }
   0x7   :  { %s10595_s15 = smov 0   ;;  %s10597_s16 = smov 0  }
   0x8 LB: > { %s10612_s17 = sadd.s32 4294967295, %s10472_s16   ;;  %s9135_s18 = sadd.s32 4294967294, %s10472_s16   ;;  %s10472_s16 = sphi %s10597_s16, %s13054_s16   ;;  %s10468_s15 = sphi %s10595_s15, %s13053_s15   ;;  %s10464_s14 = sphi %s10593_s14, %s13052_s14   ;;  %s10460_s13 = sphi %s10591_s13, %s13051_s13  }
   0x9   : > { %s10616_s19 = sadd.s32 1, %s10472_s16   ;;  %s33_s20 = sadd.s32 1, %s10468_s15 }
   0xa   : > { %s30_s21 = ssub.s32 %s10472_s16, %s10616_s19  ;;  %p40_p0 = scmp.ne.s32.totalorder %s10468_s15, %s10464_s14 }
   0xb   : > { %p31_p1 = scmp.eq.s32.totalorder %s30_s21, 0  ;;  %p41_p2 = scmp.eq.s32.totalorder %s10472_s16, 0 }
   0xc   : > { %p46_p3 = scmp.ne.s32.totalorder %s10464_s14, %s10460_s13  ;;  %p47_p4 = scmp.eq.s32.totalorder %s10612_s17, 0 }
   0xd   : > { %s10628_s22 = scalar_select %p31_p1, %s10468_s15, %s33_s20  }
   0xe   : > { %p10630_p5 = por %p41_p2, %p40_p0  ;;  %p10634_p6 = por %p47_p4, %p46_p3 }
   0xf   : > { %12963 = sst [smem:[#allocation9_spill]] %s10628_s22  ;;  %p259_p7 = scmp.eq.s32.totalorder %s10612_s17, 1 }
  0x10   : > { %p265_p8 = scmp.eq.s32.totalorder %s9135_s18, 1  ;;  %p9655_p10 = scmp.lt.s32.totalorder %s10472_s16, 2 }
  0x11   : > { %p10641_p11 = por %p259_p7, %p40_p0  ;;  %s312_s27 = sand.u32 1, %s10468_s15  }
  0x12   : > { %p10645_p12 = por %p265_p8, %p46_p3  ;;  %s9257_s28 = sshll.u32 %s10472_s16, 8 }
  0x13   : > { %s12966_s25 = scalar_select %p10641_p11, 1, 0 }
  0x14   : > { %s12967_s26 = scalar_select %p10645_p12, 1, 0 }
  0x15   : > { %s9138_s29 = sshll.u32 %s312_s27, 4  ;;  %s12968_s0 = sld [smem:[#allocation29_spill]] }
  0x16   : > { %s316_s18 = scalar_lea.vmem [#allocation3], %s9138_s29  ;;  %p10658_p13 = pnand %p9655_p10, %p10630_p5 }
  0x17   : > { %s324_s20 = sshll.u32 %s316_s18, 4  ;;  %s313_s30 = scalar_lea.sflag [#allocation4], %s312_s27  ;;  %s10662_s20 = int_to_ptr.vmem [resolvable:$true] %s324_s20 }
  0x18   : > { %p10378_p3 = pneg %p10658_p13 }
  0x1b   : > { %s10654_s12 = scalar_lea.hbm %s12968_s0, %s9257_s28  ;;  %s10381_s11 = scalar_lea.hbm %s12968_s0, 512 }
  0x1c   : > { %s10376_s28 = scalar_lea.hbm %s10654_s12, 256  ;;  %p10382_p5 = scmp.lt.u32.totalorder %s10654_s12, %s12968_s0 }
  0x1d   : > { %p10377_p2 = scmp.ne.s32.totalorder %s10654_s12, %s10376_s28  ;;  %p10383_p8 = scmp.lt.u32.totalorder %s10381_s11, %s10376_s28 }
  0x1e   : > { %p10385_p9 = scmp.lt.u32.totalorder %s10376_s28, %s10654_s12 }
  0x1f   : > { %p10379_p4 = pnand %p10378_p3, %p10377_p2  ;;  %p10384_p10 = por %p10383_p8, %p10382_p5 }
  0x21   : > { %p10380_p7 = pneg %p10379_p4  ;;  %p10386_p0 = por %p10385_p9, %p10384_p10 }
  0x23   : > { %p10387_p1 = pnand %p10386_p0, %p10380_p7 }
  0x25   : > { %10390 = shalt.err (!%p10387_p1)
}
  0x26   : > { %s10391_s27 = scalar_lea.vmem %s10662_s20, 256  ;;  %s10474_s23 = smov [#allocation3]  }
  0x27   : > { %p10392_p2 = scmp.ne.s32.totalorder %s10662_s20, %s10391_s27  ;;  %s10396_s29 = sshll.u32 %s10474_s23, 4  ;;  %s10397_s29 = int_to_ptr.vmem [resolvable:$false] %s10396_s29 }
  0x28   : > { %s10398_s22 = scalar_lea.vmem %s10397_s29, 512  ;;  %p10399_p11 = scmp.lt.s32.totalorder %s10662_s20, %s10397_s29 }
  0x29   : > { %p10394_p4 = pnand %p10392_p2, %p10378_p3  ;;  %p10400_p5 = scmp.lt.s32.totalorder %s10398_s22, %s10391_s27 }
  0x2b   : > { %p10395_p12 = pneg %p10394_p4  ;;  %p10401_p8 = por %p10400_p5, %p10399_p11 }
  0x2d   : > { %p10402_p9 = pnand %p10401_p8, %p10395_p12 }
  0x2f   : > { %10405 = shalt.err (!%p10402_p9)
}
  0x30   : > { %9650 = dma.hbm_to_vmem [thread:$0]  (!%p10658_p13), %s10654_s12, 256, %s10662_s20, %s313_s30  }
  0x31   : > { %p12970_p0 = scmp.lt.s32.totalorder %s10472_s16, 3  ;;  %p12971_p1 = scmp.ge.s32.totalorder %s10472_s16, 1 }
  0x33   : > { %p330_p3 = pnand %p12971_p1, %p12970_p0 }
  0x35   : > { %333 = sbr.rel (%p330_p3) target bundleno = 2532 (0x9e4), region = 60 }
  0x3c   : > { %s10696_s28 = sand.u32 1, %s10464_s14  }
  0x3d   : > { %s12896_s11 = sshll.u32 %s10696_s28, 4  ;;  %s336_s18 = scalar_lea.sflag [#allocation4], %s10696_s28 }
  0x3e   : > { %s10702_s21 = scalar_lea.vmem [#allocation3], %s12896_s11 }
  0x3f   : > { %10451 = dma.done.wait (%p10634_p6), %s336_s18, 256  }
  0x40   : > { %10453 = vsyncadd (%p10634_p6), %s336_s18, 4294967040  ;;  %v12920_v0 = vmov 0.0   ;;  %v467_v1 = vld [vmem:[%s10702_s21 + $0x8] sm:$0xf]  ;;  %v423_v2 = vld [vmem:[%s10702_s21] sm:$0xf] }
  0x41   : > { %378 = vst [vmem:[#allocation2 + $0x10] sm:$0xff] %v12920_v0  ;;  %376 = vst [vmem:[#allocation2] sm:$0xff] %v12920_v0  ;;  %745 = vmatprep.mubr.f32.mxu1 %v12920_v0  ;;  %887 = vmatprep.mubr.f32.mxu0 %v12920_v0  ;;  %s10476_s24 = smov 82   ;;  %s10477_s12 = smov 58   ;;  %v439_v3 = vld [vmem:[%s10702_s21] sm:$0xf] }
  0x42   : > { %377 = vst [vmem:[#allocation2 + $0x8] sm:$0xff] %v12920_v0  ;;  %379 = vst [vmem:[#allocation2 + $0x18] sm:$0xff] %v12920_v0  ;;  %469 = vrot.lane.b32.xlu1 %v467_v1, %s10476_s24  ;;  %425 = vrot.lane.b32.xlu0 %v423_v2, %s10477_s12  ;;  %v432_v4 = vld [vmem:[%s10702_s21] sm:$0xf]  ;;  %s12900_s20 = smov 66   ;;  %s10479_s30 = smov 62  }
  0x43   : > { %380 = vst [vmem:[#allocation2 + $0x20] sm:$0xff] %v12920_v0  ;;  %381 = vst [vmem:[#allocation2 + $0x28] sm:$0xff] %v12920_v0  ;;  %v476_v5 = vld [vmem:[%s10702_s21 + $0x8] sm:$0xf]  ;;  %v395_v6 = vld [vmem:[%s10702_s21] sm:$0xf] }
  0x44   : > { %s10480_s27 = smov 86   ;;  %s12897_s23 = smov 42   ;;  %v446_v7 = vld [vmem:[%s10702_s21] sm:$0xf]  ;;  %v483_v8 = vld [vmem:[%s10702_s21 + $0x8] sm:$0xf] }
  0x45   : > { %s10482_s29 = smov 70   ;;  %s12899_s22 = smov 90   ;;  %v402_v9 = vld [vmem:[%s10702_s21] sm:$0xf]  ;;  %v453_v10 = vld [vmem:[%s10702_s21 + $0x8] sm:$0xf] }
  0x46   : > { %441 = vrot.lane.b32.xlu1 %v439_v3, %s12900_s20  ;;  %434 = vrot.lane.b32.xlu0 %v432_v4, %s10479_s30  ;;  %v535_v11 = vld [vmem:[%s10702_s21] sm:$0xf0]  ;;  %s12902_s18 = smov 46   ;;  %s10485_s11 = smov 74   ;;  %v490_v13 = vld [vmem:[%s10702_s21 + $0x8] sm:$0xf] }
  0x47   : > { %v537_v12 = vrot.slane %v535_v11, 4  ;;  %v409_v14 = vld [vmem:[%s10702_s21] sm:$0xf]  ;;  %v460_v15 = vld [vmem:[%s10702_s21 + $0x8] sm:$0xf]  ;;  %s10488_s20 = smov 78  }
  0x48   : > { %v545_v16 = vld [vmem:[%s10702_s21] sm:$0xf0]  ;;  %v497_v18 = vld [vmem:[%s10702_s21 + $0x8] sm:$0xf]  ;;  %v416_v19 = vld [vmem:[%s10702_s21] sm:$0xf] }
  0x49   : > { %v547_v17 = vrot.slane %v545_v16, 4  ;;  %v504_v20 = vld [vmem:[%s10702_s21 + $0x8] sm:$0xf]  ;;  %v553_v21 = vld [vmem:[%s10702_s21] sm:$0xf0]  ;;  %vm382_vm0 = vcmask 261120  }
  0x4a   : > { %478 = vrot.lane.b32.xlu0 %v476_v5, %s10480_s27  ;;  %397 = vrot.lane.b32.xlu1 %v395_v6, %s12897_s23  ;;  %s12904_s23 = smov 94   ;;  %v511_v22 = vld [vmem:[%s10702_s21] sm:$0xf0]  ;;  %v555_v23 = vrot.slane %v553_v21, 4  ;;  %v593_v26 = vld [vmem:[%s10702_s21 + $0x8] sm:$0xf0] }
  0x4b   : > { %v513_v24 = vrot.slane %v511_v22, 4  ;;  %v561_v25 = vld [vmem:[%s10702_s21] sm:$0xf0]  ;;  %v595_v28 = vrot.slane %v593_v26, 4  ;;  %v601_v33 = vld [vmem:[%s10702_s21 + $0x8] sm:$0xf0] }
  0x4c   : > { %v563_v27 = vrot.slane %v561_v25, 4  ;;  %v519_v29 = vld [vmem:[%s10702_s21] sm:$0xf0]  ;;  %v603_v35 = vrot.slane %v601_v33, 4  ;;  %v577_v37 = vld [vmem:[%s10702_s21 + $0x8] sm:$0xf0] }
  0x4d   : > { %v569_v30 = vld [vmem:[%s10702_s21] sm:$0xf0]  ;;  %v521_v31 = vrot.slane %v519_v29, 4  ;;  %v609_v38 = vld [vmem:[%s10702_s21 + $0x8] sm:$0xf0]  ;;  %v579_v39 = vrot.slane %v577_v37, 4 }
  0x4e   : > { %448 = vrot.lane.b32.xlu0 %v446_v7, %s10482_s29  ;;  %485 = vrot.lane.b32.xlu1 %v483_v8, %s12899_s22  ;;  %s10487_s22 = smov 50   ;;  %v571_v32 = vrot.slane %v569_v30, 4  ;;  %v527_v34 = vld [vmem:[%s10702_s21] sm:$0xf0]  ;;  %v611_v40 = vrot.slane %v609_v38, 4  ;;  %383 = vst.msk [vmem:[#allocation2 + $0x30] sm:$0xff] %vm382_vm0, %v12920_v0 }
  0x4f   : > { %v529_v36 = vrot.slane %v527_v34, 4  ;;  %v585_v41 = vld [vmem:[%s10702_s21 + $0x8] sm:$0xf0]  ;;  %390 = vst.msk [vmem:[#allocation2 + $0x68] sm:$0xff] %vm382_vm0, %v12920_v0  ;;  %392 = vst.msk [vmem:[#allocation2 + $0xa0] sm:$0xff] %vm382_vm0, %v12920_v0  ;;  %vm474_vm1 = vcmask 11264  }
  0x50   : > { %v616_v42 = vld [vmem:[%s10702_s21 + $0x8] sm:$0xf0]  ;;  %v587_v43 = vrot.slane %v585_v41, 4  ;;  %vm430_vm2 = vcmask 76800   ;;  %vm437_vm3 = vcmask 240752   ;;  %vm444_vm4 = vcmask 404752  }
  0x51   : > { %v618_v44 = vrot.slane %v616_v42, 4  ;;  %v623_v45 = vld [vmem:[%s10702_s21 + $0x8] sm:$0xf0]  ;;  %vm481_vm5 = vcmask 175152   ;;  %vm400_vm6 = vcmask 470352   ;;  %vm451_vm7 = vcmask 568752  }
  0x52   : > { %404 = vrot.lane.b32.xlu0 %v402_v9, %s12902_s18  ;;  %455 = vrot.lane.b32.xlu1 %v453_v10, %s10485_s11  ;;  %s10489_s18 = smov 98   ;;  %v630_v46 = vld [vmem:[%s10702_s21 + $0x8] sm:$0xf0]  ;;  %v625_v47 = vrot.slane %v623_v45, 4  ;;  %vm488_vm8 = vcmask 339152   ;;  %vm407_vm9 = vcmask 634352  }
  0x53   : > { %v632_v48 = vrot.slane %v630_v46, 4  ;;  %vm458_vm10 = vcmask 732752   ;;  %vm495_vm11 = vcmask 503152   ;;  %vm543_vm12 = vcmask 44032   ;;  %s12975_s1 = sld [smem:[#allocation30_spill]]  ;;  %s13039_s0 = smov 112  }
  0x54   : > { %vm414_vm13 = vcmask 798352   ;;  %vm465_vm14 = vcmask 896752   ;;  %vm472_vm15 = vcmask 1044368   ;;  %v10502_v37 = vmov 0   ;;  %p13047_p11 = scmp.ne.s32.totalorder %s12966_s25, 0 }
  0x55   : > { %9749 = vset.pattern.permute.xlu1 %v10502_v37  ;;  %10290 = vset.pattern.permute.xlu0 %v10502_v37  ;;  %v9151_v37 = vld [vmem:[%s12886_s2 + $0x10] sm:$0xff] }
  0x56   : > { %492 = vrot.lane.b32.xlu0 %v490_v13, %s12904_s23  ;;  %538 = vrot.lane.b32.xlu1 %v537_v12, %s10482_s29  ;;  %s10490_s29 = smov 54   ;;  %s10491_s23 = smov 102  }
  0x5a   : > { %411 = vrot.lane.b32.xlu0 %v409_v14, %s10487_s22  ;;  %462 = vrot.lane.b32.xlu1 %v460_v15, %s10488_s20  ;;  %s10495_s22 = smov 118  }
  0x5e   : > { %499 = vrot.lane.b32.xlu0 %v497_v18, %s10489_s18  ;;  %548 = vrot.lane.b32.xlu1 %v547_v17, %s10485_s11  ;;  %s12972_s11 = smov 66  }
  0x62   : > { %418 = vrot.lane.b32.xlu0 %v416_v19, %s10490_s29  ;;  %506 = vrot.lane.b32.xlu1 %v504_v20, %s10491_s23  ;;  %s10497_s29 = smov 105  }
  0x66   : > { %556 = vrot.lane.b32.xlu0 %v555_v23, %s10488_s20  ;;  %514 = vrot.lane.b32.xlu1 %v513_v24, %s10477_s12  ;;  %s12905_s12 = smov 106   ;;  %s12974_s20 = smov 94  }
  0x6a   : > { %564 = vrot.lane.b32.xlu0 %v563_v27, %s10476_s24  ;;  %596 = vrot.lane.b32.xlu1 %v595_v28, %s10489_s18  ;;  %s12973_s24 = smov 90   ;;  %s10496_s18 = smov 107  }
  0x6e   : > { %522 = vrot.lane.b32.xlu0 %v521_v31, %s10479_s30  ;;  %572 = vrot.lane.b32.xlu1 %v571_v32, %s10480_s27  ;;  %s10493_s30 = smov 110   ;;  %v10826_v31 = vld [vmem:[#allocation2 + $0x30] sm:$0xff] }
  0x72   : > { %604 = vrot.lane.b32.xlu0 %v603_v35, %s10491_s23  ;;  %530 = vrot.lane.b32.xlu1 %v529_v36, %s12972_s11  ;;  %s10494_s23 = smov 114   ;;  %v10892_v36 = vld [vmem:[#allocation2 + $0x30] sm:$0xff] }
  0x76   : > { %580 = vrot.lane.b32.xlu0 %v579_v39, %s12973_s24  ;;  %612 = vrot.lane.b32.xlu1 %v611_v40, %s12905_s12  ;;  %s10498_s24 = smov 87   ;;  %v2893_v40 = vld [vmem:[%s12887_s3] sm:$0xff] }
  0x7a   : > { %588 = vrot.lane.b32.xlu0 %v587_v43, %s12974_s20  ;;  %619 = vrot.lane.b32.xlu1 %v618_v44, %s10493_s30  ;;  %s10499_s20 = smov 85   ;;  %s12909_s30 = smov 67  }
  0x7e   : > { %626 = vrot.lane.b32.xlu0 %v625_v47, %s10494_s23  ;;  %633 = vrot.lane.b32.xlu1 %v632_v48, %s10495_s22  ;;  %s12907_s23 = smov 65   ;;  %s10503_s22 = smov 126  }
  0xb4   : > { %v470_v49 = vpop.permute.xlu1 %469  ;;  %v426_v50 = vpop.permute.xlu0 %425 }
  0xb5   : > { %475 = vst.msk [vmem:[#allocation2 + $0x10] sm:$0xf] %vm474_vm1, %v470_v49  ;;  %vm502_vm1 = vcmask 667152  }
  0xb6   : > { %431 = vst.msk [vmem:[#allocation2 + $0x8] sm:$0xf] %vm430_vm2, %v426_v50  ;;  %vm551_vm2 = vcmask 207952  }
  0xb8   : > { %v442_v51 = vpop.permute.xlu1 %441  ;;  %v435_v52 = vpop.permute.xlu0 %434 }
  0xb9   : > { %438 = vst.msk [vmem:[#allocation2 + $0x8] sm:$0xf] %vm437_vm3, %v435_v52  ;;  %vm421_vm3 = vcmask 962352  }
  0xba   : > { %445 = vst.msk [vmem:[#allocation2 + $0x8] sm:$0xf] %vm444_vm4, %v442_v51  ;;  %vm509_vm4 = vcmask 831152  }
  0xbc   : > { %v479_v53 = vpop.permute.xlu0 %478  ;;  %v398_v54 = vpop.permute.xlu1 %397 }
  0xbd   : > { %482 = vst.msk [vmem:[#allocation2 + $0x10] sm:$0xf] %vm481_vm5, %v479_v53  ;;  %vm428_vm5 = vcmask 1044432  }
  0xbe   : > { %401 = vst.msk [vmem:[#allocation2] sm:$0xf] %vm400_vm6, %v398_v54 }
  0xc0   : > { %v449_v55 = vpop.permute.xlu0 %448  ;;  %v486_v56 = vpop.permute.xlu1 %485 }
  0xc1   : > { %452 = vst.msk [vmem:[#allocation2 + $0x8] sm:$0xf] %vm451_vm7, %v449_v55  ;;  %vm559_vm7 = vcmask 371952  }
  0xc2   : > { %489 = vst.msk [vmem:[#allocation2 + $0x10] sm:$0xf] %vm488_vm8, %v486_v56  ;;  %vm517_vm8 = vcmask 601552  }
  0xc4   : > { %v405_v57 = vpop.permute.xlu0 %404  ;;  %v456_v58 = vpop.permute.xlu1 %455 }
  0xc5   : > { %408 = vst.msk [vmem:[#allocation2] sm:$0xf] %vm407_vm9, %v405_v57 }
  0xc6   : > { %459 = vst.msk [vmem:[#allocation2 + $0x8] sm:$0xf] %vm458_vm10, %v456_v58  ;;  %vm567_vm10 = vcmask 535952  }
  0xc8   : > { %v493_v59 = vpop.permute.xlu0 %492  ;;  %v539_v60 = vpop.permute.xlu1 %538 }
  0xc9   : > { %496 = vst.msk [vmem:[#allocation2 + $0x10] sm:$0xf] %vm495_vm11, %v493_v59  ;;  %vm599_vm11 = vcmask 142352  }
  0xca   : > { %544 = vst.msk [vmem:[#allocation2 + $0x20] sm:$0xf] %vm543_vm12, %v539_v60  ;;  %vm525_vm12 = vcmask 765552  }
  0xcc   : > { %v412_v61 = vpop.permute.xlu0 %411  ;;  %v463_v62 = vpop.permute.xlu1 %462 }
  0xcd   : > { %415 = vst.msk [vmem:[#allocation2] sm:$0xf] %vm414_vm13, %v412_v61 }
  0xce   : > { %466 = vst.msk [vmem:[#allocation2 + $0x8] sm:$0xf] %vm465_vm14, %v463_v62  ;;  %vm575_vm14 = vcmask 699952  }
  0xcf   : > { %473 = vst.msk [vmem:[#allocation2 + $0x8] sm:$0xf] %vm472_vm15, %v470_v49  ;;  %vm607_vm15 = vcmask 306352  }
  0xd0   : > { %v500_v63 = vpop.permute.xlu0 %499  ;;  %v549_v1 = vpop.permute.xlu1 %548 }
  0xd1   : > { %503 = vst.msk [vmem:[#allocation2 + $0x10] sm:$0xf] %vm502_vm1, %v500_v63  ;;  %vm533_vm1 = vcmask 929552  }
  0xd2   : > { %552 = vst.msk [vmem:[#allocation2 + $0x20] sm:$0xf] %vm551_vm2, %v549_v1  ;;  %vm541_vm2 = vcmask 1044400  }
  0xd4   : > { %v419_v2 = vpop.permute.xlu0 %418  ;;  %v507_v3 = vpop.permute.xlu1 %506 }
  0xd5   : > { %422 = vst.msk [vmem:[#allocation2] sm:$0xf] %vm421_vm3, %v419_v2 }
  0xd6   : > { %510 = vst.msk [vmem:[#allocation2 + $0x10] sm:$0xf] %vm509_vm4, %v507_v3  ;;  %v10783_v12 = vld [vmem:[#allocation2 + $0x8] sm:$0xff]  ;;  %vm583_vm4 = vcmask 863952  }
  0xd7   : > { %429 = vst.msk [vmem:[#allocation2] sm:$0xf] %vm428_vm5, %v426_v50  ;;  %v10790_v14 = vld [vmem:[#allocation2 + $0x8] sm:$0xff]  ;;  %vm591_vm5 = vcmask 1027952  }
  0xd8   : > { %v557_v4 = vpop.permute.xlu0 %556  ;;  %v515_v5 = vpop.permute.xlu1 %514  ;;  %v10808_v27 = vld [vmem:[#allocation2 + $0x8] sm:$0xff] }
  0xd9   : > { %560 = vst.msk [vmem:[#allocation2 + $0x20] sm:$0xf] %vm559_vm7, %v557_v4  ;;  %v9144_v50 = vld [vmem:[%s12886_s2 + $0x8] sm:$0xff]  ;;  %vm1396_vm7 = vcmask 711680  }
  0xda   : > { %518 = vst.msk [vmem:[#allocation2 + $0x18] sm:$0xf] %vm517_vm8, %v515_v5  ;;  %vm1644_vm8 = vcmask 703488  }
  0xdc   : > { %v565_v6 = vpop.permute.xlu0 %564  ;;  %v597_v7 = vpop.permute.xlu1 %596 }
  0xdd   : > { %v10775_v8 = vld [vmem:[#allocation2 + $0x10] sm:$0xff]  ;;  %568 = vst.msk [vmem:[#allocation2 + $0x20] sm:$0xf] %vm567_vm10, %v565_v6  ;;  %vm1892_vm10 = vcmask 695296  }
  0xde   : > { %v5495_v9 = vld [vmem:[#allocation2 + $0x10] sm:$0xff]  ;;  %600 = vst.msk [vmem:[#allocation2 + $0x28] sm:$0xf] %vm599_vm11, %v597_v7  ;;  %657 = vrot.lane.b32.xlu1 %v10775_v8, %s12905_s12  ;;  %v10781_v11 = vld [vmem:[#allocation2] sm:$0xff]  ;;  %vm2156_vm11 = vcmask 547840  }
  0xdf   : > { %v10777_v10 = vld [vmem:[#allocation2 + $0x10] sm:$0xff]  ;;  %653 = vrot.lane.b32.xlu0 %v10781_v11, %s12905_s12  ;;  %v10788_v13 = vpack.i.bf16 %v5495_v9, %v10783_v12 }
  0xe0   : > { %v523_v16 = vpop.permute.xlu0 %522  ;;  %v573_v17 = vpop.permute.xlu1 %572 }
  0xe1   : > { %526 = vst.msk [vmem:[#allocation2 + $0x18] sm:$0xf] %vm525_vm12, %v523_v16  ;;  %v644_v16 = vld [vmem:[%s12886_s2] sm:$0xff]  ;;  %vm2407_vm12 = vcmask 539648  }
  0xe2   : > { %576 = vst.msk [vmem:[#allocation2 + $0x20] sm:$0xf] %vm575_vm14, %v573_v17  ;;  %vm2658_vm14 = vcmask 531456  }
  0xe3   : > { %894 = vrot.lane.b32.xlu0 %v10781_v11, %s10496_s18 }
  0xe4   : > { %v605_v18 = vpop.permute.xlu0 %604  ;;  %v531_v19 = vpop.permute.xlu1 %530 }
  0xe5   : > { %608 = vst.msk [vmem:[#allocation2 + $0x28] sm:$0xf] %vm607_vm15, %v605_v18  ;;  %vm384_vm15 = vcmask 343040  }
  0xe6   : > { %534 = vst.msk [vmem:[#allocation2 + $0x18] sm:$0xf] %vm533_vm1, %v531_v19  ;;  %vm388_vm1 = vcmask 1048496  }
  0xe7   : > { %542 = vst.msk [vmem:[#allocation2 + $0x18] sm:$0xf] %vm541_vm2, %v539_v60  ;;  %1136 = vrot.lane.b32.xlu0 %v10781_v11, %s10497_s29  ;;  %vm2977_vm2 = vcmask 1047888  }
  0xe8   : > { %v581_v20 = vpop.permute.xlu0 %580  ;;  %v613_v21 = vpop.permute.xlu1 %612  ;;  %385 = vst.msk [vmem:[#allocation2 + $0x38] sm:$0xff] %vm384_vm15, %v12920_v0  ;;  %386 = vst.msk [vmem:[#allocation2 + $0x70] sm:$0xff] %vm384_vm15, %v12920_v0 }
  0xe9   : > { %584 = vst.msk [vmem:[#allocation2 + $0x20] sm:$0xf] %vm583_vm4, %v581_v20  ;;  %vm2983_vm4 = vcmask 965632  }
  0xea   : > { %615 = vst.msk [vmem:[#allocation2 + $0x28] sm:$0xf] %vm400_vm6, %v613_v21  ;;  %vm665_vm6 = vcmask 867328  }
  0xeb   : > { %1384 = vrot.lane.b32.xlu0 %v10781_v11, %s10498_s24  ;;  %387 = vst.msk [vmem:[#allocation2 + $0xa8] sm:$0xff] %vm384_vm15, %v12920_v0 }
  0xec   : > { %v589_v22 = vpop.permute.xlu0 %588  ;;  %v620_v23 = vpop.permute.xlu1 %619  ;;  %389 = vst.msk [vmem:[#allocation2 + $0x60] sm:$0xff] %vm388_vm1, %v12920_v0  ;;  %391 = vst.msk [vmem:[#allocation2 + $0x98] sm:$0xff] %vm388_vm1, %v12920_v0 }
  0xed   : > { %592 = vst.msk [vmem:[#allocation2 + $0x20] sm:$0xf] %vm591_vm5, %v589_v22  ;;  %vm3036_vm5 = vcmask 1031168  }
  0xee   : > { %v10801_v24 = vld [vmem:[#allocation2 + $0x18] sm:$0xff]  ;;  %622 = vst.msk [vmem:[#allocation2 + $0x28] sm:$0xf] %vm407_vm9, %v620_v23  ;;  %vm677_vm9 = vcmask 64512  }
  0xef   : > { %659 = vrot.lane.b32.xlu1 %v10801_v24, %s12905_s12  ;;  %1632 = vrot.lane.b32.xlu0 %v10781_v11, %s10480_s27  ;;  %v10818_v29 = vld [vmem:[#allocation2 + $0x18] sm:$0xff]  ;;  %393 = vst.msk [vmem:[#allocation2 + $0xd0] sm:$0xff] %vm388_vm1, %v12920_v0  ;;  %vm3518_vm1 = vcmask 1014784  }
  0xf0   : > { %v627_v25 = vpop.permute.xlu0 %626  ;;  %v634_v26 = vpop.permute.xlu1 %633 }
  0xf1   : > { %629 = vst.msk [vmem:[#allocation2 + $0x28] sm:$0xf] %vm414_vm13, %v627_v25  ;;  %vm906_vm13 = vcmask 875520  }
  0xf2   : > { %636 = vst.msk [vmem:[#allocation2 + $0x28] sm:$0xf] %vm421_vm3, %v634_v26  ;;  %vm1148_vm3 = vcmask 859136  }
  0xf3   : > { %898 = vrot.lane.b32.xlu1 %v10775_v8, %s10496_s18  ;;  %655 = vrot.lane.b32.xlu0 %v10808_v27, %s12905_s12 }
  0xf4   : > { %v10816_v28 = vld [vmem:[#allocation2 + $0x20] sm:$0xff] }
  0xf5   : > { %v10848_v34 = vld [vmem:[#allocation2 + $0x20] sm:$0xff] }
  0xf7   : > { %900 = vrot.lane.b32.xlu1 %v10801_v24, %s10496_s18  ;;  %896 = vrot.lane.b32.xlu0 %v10808_v27, %s10496_s18 }
  0xf9   : > { %v10828_v32 = vld [vmem:[#allocation2 + $0x28] sm:$0xff] }
  0xfa   : > { %v10858_v35 = vld [vmem:[#allocation2 + $0x28] sm:$0xff] }
  0xfb   : > { %1140 = vrot.lane.b32.xlu1 %v10775_v8, %s10497_s29  ;;  %1138 = vrot.lane.b32.xlu0 %v10808_v27, %s10497_s29 }
  0xff   : > { %1142 = vrot.lane.b32.xlu1 %v10801_v24, %s10497_s29  ;;  %1386 = vrot.lane.b32.xlu0 %v10808_v27, %s10498_s24 }
 0x103   : > { %1388 = vrot.lane.b32.xlu1 %v10775_v8, %s10498_s24  ;;  %1634 = vrot.lane.b32.xlu0 %v10808_v27, %s10480_s27 }
 0x107   : > { %1390 = vrot.lane.b32.xlu1 %v10801_v24, %s10498_s24  ;;  %1882 = vrot.lane.b32.xlu0 %v10808_v27, %s10499_s20 }
 0x10b   : > { %1636 = vrot.lane.b32.xlu1 %v10775_v8, %s10480_s27  ;;  %661 = vrot.lane.b32.xlu0 %v10848_v34, %s12905_s12 }
 0x10f   : > { %1638 = vrot.lane.b32.xlu1 %v10801_v24, %s10480_s27  ;;  %1880 = vrot.lane.b32.xlu0 %v10781_v11, %s10499_s20 }
 0x113   : > { %663 = vrot.lane.b32.xlu1 %v10858_v35, %s12905_s12  ;;  %902 = vrot.lane.b32.xlu0 %v10848_v34, %s10496_s18  ;;  %s12915_s12 = smov 124  }
 0x117   : > { %1884 = vrot.lane.b32.xlu1 %v10775_v8, %s10499_s20  ;;  %2144 = vrot.lane.b32.xlu0 %v10808_v27, %s12909_s30 }
 0x11b   : > { %904 = vrot.lane.b32.xlu1 %v10858_v35, %s10496_s18  ;;  %1144 = vrot.lane.b32.xlu0 %v10848_v34, %s10497_s29 }
 0x11f   : > { %1146 = vrot.lane.b32.xlu1 %v10858_v35, %s10497_s29  ;;  %1392 = vrot.lane.b32.xlu0 %v10848_v34, %s10498_s24 }
 0x123   : > { %1394 = vrot.lane.b32.xlu1 %v10858_v35, %s10498_s24  ;;  %1640 = vrot.lane.b32.xlu0 %v10848_v34, %s10480_s27 }
 0x127   : > { %1642 = vrot.lane.b32.xlu1 %v10858_v35, %s10480_s27  ;;  %1888 = vrot.lane.b32.xlu0 %v10848_v34, %s10499_s20 }
 0x12b   : > { %1886 = vrot.lane.b32.xlu1 %v10801_v24, %s10499_s20  ;;  %2142 = vrot.lane.b32.xlu0 %v10781_v11, %s12909_s30 }
 0x12f   : > { %1890 = vrot.lane.b32.xlu1 %v10858_v35, %s10499_s20  ;;  %2150 = vrot.lane.b32.xlu0 %v10848_v34, %s12909_s30 }
 0x133   : > { %2146 = vrot.lane.b32.xlu1 %v10775_v8, %s12909_s30  ;;  %2154 = vrot.lane.b32.xlu0 %v10892_v36, %s12909_s30 }
 0x137   : > { %2148 = vrot.lane.b32.xlu1 %v10801_v24, %s12909_s30  ;;  %2397 = vrot.lane.b32.xlu0 %v10775_v8, %s12972_s11 }
 0x13b   : > { %2152 = vrot.lane.b32.xlu1 %v10858_v35, %s12909_s30  ;;  %2399 = vrot.lane.b32.xlu0 %v10801_v24, %s12972_s11  ;;  %s12911_s30 = smov 88  }
 0x13f   : > { %2395 = vrot.lane.b32.xlu1 %v10808_v27, %s12972_s11  ;;  %2403 = vrot.lane.b32.xlu0 %v10858_v35, %s12972_s11 }
 0x143   : > { %2393 = vrot.lane.b32.xlu1 %v10781_v11, %s12972_s11  ;;  %2646 = vrot.lane.b32.xlu0 %v10808_v27, %s12907_s23 }
 0x147   : > { %2401 = vrot.lane.b32.xlu1 %v10848_v34, %s12972_s11  ;;  %2644 = vrot.lane.b32.xlu0 %v10781_v11, %s12907_s23 }
 0x14b   : > { %2405 = vrot.lane.b32.xlu1 %v10892_v36, %s12972_s11  ;;  %2652 = vrot.lane.b32.xlu0 %v10848_v34, %s12907_s23 }
 0x14f   : > { %2648 = vrot.lane.b32.xlu1 %v10775_v8, %s12907_s23  ;;  %2656 = vrot.lane.b32.xlu0 %v10892_v36, %s12907_s23 }
 0x150   : > { %v658_v42 = vpop.permute.xlu1 %657 }
 0x151   : > { %v654_v38 = vpop.permute.xlu0 %653 }
 0x153   : > { %2650 = vrot.lane.b32.xlu1 %v10801_v24, %s12907_s23 }
 0x155   : > { %v895_v39 = vpop.permute.xlu0 %894 }
 0x157   : > { %2654 = vrot.lane.b32.xlu1 %v10858_v35, %s12907_s23  ;;  %s12980_s23 = smov 42  }
 0x159   : > { %v10933_v41 = vpop.permute.xlu0 %1136 }
 0x15b   : > { %2896 = vperm.xlu1 %9749, %v2893_v40  }
 0x15d   : > { %v10935_v43 = vpop.permute.xlu0 %1384 }
 0x161   : > { %v660_v44 = vpop.permute.xlu1 %659  ;;  %v10937_v45 = vpop.permute.xlu0 %1632 }
 0x162   : > { %v668_v1 = vsel %vm665_vm6, %v658_v42, %v660_v44 }
 0x165   : > { %v899_v46 = vpop.permute.xlu1 %898  ;;  %v656_v47 = vpop.permute.xlu0 %655 }
 0x166   : > { %v667_v48 = vsel %vm665_vm6, %v656_v47, %v658_v42  ;;  %v666_v49 = vsel %vm665_vm6, %v654_v38, %v656_v47 }
 0x167   : > { %681 = vmatprep.subr.mxu1 %v667_v48 }
 0x168   : > { %682 = vmatpush1.msra.mxu1 %v666_v49 }
 0x169   : > { %v901_v51 = vpop.permute.xlu1 %900  ;;  %v897_v52 = vpop.permute.xlu0 %896  ;;  %9145 = vmatmul.mubr.msk.f32.vlgmr.msra.gmra.mrb[0].mxu1 %vm677_vm9, %v9144_v50 }
 0x16a   : > { %816 = vmatprep.mubr.f32.mxu1 %v12920_v0  ;;  %v908_v9 = vsel %vm906_vm13, %v897_v52, %v899_v46  ;;  %v909_v17 = vsel %vm906_vm13, %v899_v46, %v901_v51  ;;  %v907_v18 = vsel %vm906_vm13, %v895_v39, %v897_v52 }
 0x16d   : > { %v1141_v53 = vpop.permute.xlu1 %1140  ;;  %v1139_v54 = vpop.permute.xlu0 %1138 }
 0x16e   : > { %v1150_v26 = vsel %vm1148_vm3, %v1139_v54, %v1141_v53  ;;  %v1149_v39 = vsel %vm1148_vm3, %v10933_v41, %v1139_v54 }
 0x171   : > { %v1143_v55 = vpop.permute.xlu1 %1142  ;;  %v10946_v56 = vpop.permute.xlu0 %1386 }
 0x172   : > { %v1151_v38 = vsel %vm1148_vm3, %v1141_v53, %v1143_v55  ;;  %v1397_v52 = vsel %vm1396_vm7, %v10935_v43, %v10946_v56 }
 0x175   : > { %v10948_v57 = vpop.permute.xlu1 %1388  ;;  %v10950_v58 = vpop.permute.xlu0 %1634 }
 0x176   : > { %v1398_v48 = vsel %vm1396_vm7, %v10946_v56, %v10948_v57 }
 0x179   : > { %v1391_v59 = vpop.permute.xlu1 %1390  ;;  %v10952_v60 = vpop.permute.xlu0 %1882 }
 0x17a   : > { %v1399_v47 = vsel %vm1396_vm7, %v10948_v57, %v1391_v59 }
 0x17d   : > { %v10954_v61 = vpop.permute.xlu1 %1636  ;;  %v662_v62 = vpop.permute.xlu0 %661 }
 0x17e   : > { %v669_v63 = vsel %vm665_vm6, %v660_v44, %v662_v62  ;;  %v1646_v56 = vsel %vm1644_vm8, %v10950_v58, %v10954_v61 }
 0x17f   : > { %752 = vmatprep.subr.mxu1 %v669_v63  ;;  %v9159_v63 = vld [vmem:[%s12886_s2 + $0x20] sm:$0xff] }
 0x180   : > { %753 = vmatpush1.msra.mxu1 %v668_v1  ;;  %v1645_v1 = vsel %vm1644_vm8, %v10937_v45, %v10950_v58 }
 0x181   : > { %v10958_v2 = vpop.permute.xlu1 %1638  ;;  %9146 = vmatmul.mubr.msk.f32.vlgmr.msra.gmra.mrb[2].mxu1 %vm677_vm9, %v9144_v50  ;;  %v10961_v3 = vpop.permute.xlu0 %1880 }
 0x182   : > { %1056 = vmatprep.mubr.f32.mxu1 %v12920_v0 }
 0x185   : > { %v664_v4 = vpop.permute.xlu1 %663  ;;  %v903_v5 = vpop.permute.xlu0 %902 }
 0x186   : > { %823 = vmatprep.subr.mxu0 %v664_v4  ;;  %v670_v6 = vsel %vm665_vm6, %v662_v62, %v664_v4  ;;  %v910_v7 = vsel %vm906_vm13, %v901_v51, %v903_v5  ;;  %v9155_v51 = vld [vmem:[%s12886_s2 + $0x18] sm:$0xff] }
 0x187   : > { %824 = vmatpush1.msra.mxu0 %v670_v6  ;;  %992 = vmatprep.subr.mxu1 %v910_v7  ;;  %v9163_v7 = vld [vmem:[%s12886_s2 + $0x28] sm:$0xff] }
 0x188   : > { %9147 = vmatmul.mubr.msk.f32.vlgmr.msra.gmra.mrb[0].mxu0 %vm677_vm9, %v9144_v50  ;;  %921 = vmatprep.subr.mxu0 %v908_v9  ;;  %v1893_v9 = vsel %vm1892_vm10, %v10961_v3, %v10952_v60 }
 0x189   : > { %993 = vmatpush1.msra.mxu1 %v909_v17  ;;  %v10973_v19 = vpop.permute.xlu1 %1884  ;;  %922 = vmatpush1.msra.mxu0 %v907_v18  ;;  %v10975_v20 = vpop.permute.xlu0 %2144 }
 0x18a   : > { %9149 = vmatmul.mubr.msk.f32.vlgmr.msra.gmra.mrb[2].mxu1 %vm677_vm9, %v644_v16  ;;  %985 = vmatprep.mubr.f32.mxu0 %v12920_v0  ;;  %v1894_v58 = vsel %vm1892_vm10, %v10952_v60, %v10973_v19 }
 0x18b   : > { %1298 = vmatprep.mubr.f32.mxu1 %v12920_v0 }
 0x18c   : > { %9148 = vmatmul.mubr.msk.f32.vlgmr.msra.gmra.mrb[2].mxu0 %vm677_vm9, %v644_v16 }
 0x18d   : > { %v905_v21 = vpop.permute.xlu1 %904  ;;  %v1145_v22 = vpop.permute.xlu0 %1144  ;;  %1127 = vmatprep.mubr.f32.mxu0 %v12920_v0 }
 0x18e   : > { %1063 = vmatprep.subr.mxu0 %v905_v21  ;;  %v911_v23 = vsel %vm906_vm13, %v903_v5, %v905_v21  ;;  %v1152_v25 = vsel %vm1148_vm3, %v1143_v55, %v1145_v22  ;;  %v1647_v55 = vsel %vm1644_vm8, %v10954_v61, %v10958_v2 }
 0x18f   : > { %1064 = vmatpush1.msra.mxu0 %v911_v23  ;;  %1234 = vmatprep.subr.mxu1 %v1152_v25 }
 0x190   : > { %9150 = vmatmul.mubr.msk.f32.vlgmr.msra.gmra.mrb[0].mxu0 %vm677_vm9, %v644_v16  ;;  %1163 = vmatprep.subr.mxu0 %v1150_v26 }
 0x191   : > { %1235 = vmatpush1.msra.mxu1 %v1151_v38  ;;  %v1147_v40 = vpop.permute.xlu1 %1146  ;;  %1164 = vmatpush1.msra.mxu0 %v1149_v39  ;;  %v1393_v42 = vpop.permute.xlu0 %1392  ;;  %v9167_v38 = vld [vmem:[%s12886_s2 + $0x30] sm:$0xff] }
 0x192   : > { %9153 = vmatmul.mubr.msk.f32.vlgmr.msra.gmra.mrb[2].mxu1 %vm677_vm9, %v9151_v37  ;;  %1305 = vmatprep.subr.mxu0 %v1147_v40  ;;  %v1400_v44 = vsel %vm1396_vm7, %v1391_v59, %v1393_v42  ;;  %v1153_v46 = vsel %vm1148_vm3, %v1145_v22, %v1147_v40 }
 0x193   : > { %1227 = vmatprep.mubr.f32.mxu0 %v12920_v0  ;;  %1482 = vmatprep.subr.mxu1 %v1400_v44 }
 0x194   : > { %9152 = vmatmul.mubr.msk.f32.vlgmr.msra.gmra.mrb[2].mxu0 %vm677_vm9, %v9151_v37  ;;  %1483 = vmatpush1.msra.mxu1 %v1399_v47  ;;  %v9171_v47 = vld [vmem:[%s12886_s2 + $0x38] sm:$0xff] }
 0x195   : > { %1306 = vmatpush1.msra.mxu0 %v1153_v46  ;;  %v1395_v41 = vpop.permute.xlu1 %1394  ;;  %v1641_v49 = vpop.permute.xlu0 %1640  ;;  %1369 = vmatprep.mubr.f32.mxu0 %v12920_v0 }
 0x196   : > { %1411 = vmatprep.subr.mxu0 %v1398_v48  ;;  %v1648_v50 = vsel %vm1644_vm8, %v10958_v2, %v1641_v49  ;;  %1546 = vmatprep.mubr.f32.mxu1 %v12920_v0  ;;  %v1401_v57 = vsel %vm1396_vm7, %v1393_v42, %v1395_v41 }
 0x197   : > { %1730 = vmatprep.subr.mxu1 %v1648_v50 }
 0x198   : > { %9154 = vmatmul.mubr.msk.f32.vlgmr.msra.gmra.mrb[0].mxu0 %vm677_vm9, %v9151_v37 }
 0x199   : > { %1412 = vmatpush1.msra.mxu0 %v1397_v52  ;;  %v1643_v53 = vpop.permute.xlu1 %1642  ;;  %v1889_v54 = vpop.permute.xlu0 %1888  ;;  %1475 = vmatprep.mubr.f32.mxu0 %v12920_v0 }
 0x19a   : > { %9157 = vmatmul.mubr.msk.f32.vlgmr.msra.gmra.mrb[2].mxu1 %vm677_vm9, %v9155_v51  ;;  %1553 = vmatprep.subr.mxu0 %v1395_v41  ;;  %v1649_v5 = vsel %vm1644_vm8, %v1641_v49, %v1643_v53 }
 0x19b   : > { %1731 = vmatpush1.msra.mxu1 %v1647_v55  ;;  %1794 = vmatprep.mubr.f32.mxu1 %v12920_v0  ;;  %v9175_v55 = vld [vmem:[%s12886_s2 + $0x40] sm:$0xff] }
 0x19c   : > { %9156 = vmatmul.mubr.msk.f32.vlgmr.msra.gmra.mrb[2].mxu0 %vm677_vm9, %v9155_v51 }
 0x19d   : > { %1554 = vmatpush1.msra.mxu0 %v1401_v57  ;;  %v1887_v43 = vpop.permute.xlu1 %1886  ;;  %v2143_v59 = vpop.permute.xlu0 %2142  ;;  %1617 = vmatprep.mubr.f32.mxu0 %v12920_v0 }
 0x19e   : > { %1659 = vmatprep.subr.mxu0 %v1646_v56  ;;  %v1896_v62 = vsel %vm1892_vm10, %v1887_v43, %v1889_v54  ;;  %v1895_v4 = vsel %vm1892_vm10, %v10973_v19, %v1887_v43  ;;  %v2157_v23 = vsel %vm2156_vm11, %v2143_v59, %v10975_v20 }
 0x19f   : > { %1978 = vmatprep.subr.mxu1 %v1896_v62 }
 0x1a0   : > { %9158 = vmatmul.mubr.msk.f32.vlgmr.msra.gmra.mrb[0].mxu0 %vm677_vm9, %v9155_v51 }
 0x1a1   : > { %1660 = vmatpush1.msra.mxu0 %v1645_v1  ;;  %v1891_v2 = vpop.permute.xlu1 %1890  ;;  %v2151_v61 = vpop.permute.xlu0 %2150  ;;  %1723 = vmatprep.mubr.f32.mxu0 %v12920_v0 }
 0x1a2   : > { %9161 = vmatmul.mubr.msk.f32.vlgmr.msra.gmra.mrb[2].mxu1 %vm677_vm9, %v9159_v63  ;;  %1801 = vmatprep.subr.mxu0 %v1643_v53  ;;  %v1897_v60 = vsel %vm1892_vm10, %v1889_v54, %v1891_v2 }
 0x1a3   : > { %1979 = vmatpush1.msra.mxu1 %v1895_v4  ;;  %2042 = vmatprep.mubr.f32.mxu1 %v12920_v0 }
 0x1a4   : > { %9160 = vmatmul.mubr.msk.f32.vlgmr.msra.gmra.mrb[2].mxu0 %vm677_vm9, %v9159_v63 }
 0x1a5   : > { %1802 = vmatpush1.msra.mxu0 %v1649_v5  ;;  %v2147_v45 = vpop.permute.xlu1 %2146  ;;  %v2155_v6 = vpop.permute.xlu0 %2154  ;;  %1865 = vmatprep.mubr.f32.mxu0 %v12920_v0 }
 0x1a6   : > { %1907 = vmatprep.subr.mxu0 %v1894_v58  ;;  %v2158_v21 = vsel %vm2156_vm11, %v10975_v20, %v2147_v45 }
 0x1a8   : > { %9162 = vmatmul.mubr.msk.f32.vlgmr.msra.gmra.mrb[0].mxu0 %vm677_vm9, %v9159_v63 }
 0x1a9   : > { %1908 = vmatpush1.msra.mxu0 %v1893_v9  ;;  %v2149_v16 = vpop.permute.xlu1 %2148  ;;  %v2398_v17 = vpop.permute.xlu0 %2397  ;;  %1971 = vmatprep.mubr.f32.mxu0 %v12920_v0 }
 0x1aa   : > { %2049 = vmatprep.subr.mxu0 %v1891_v2  ;;  %v2160_v18 = vsel %vm2156_vm11, %v2149_v16, %v2151_v61  ;;  %9165 = vmatmul.mubr.msk.f32.vlgmr.msra.gmra.mrb[2].mxu1 %vm677_vm9, %v9163_v7  ;;  %v2159_v19 = vsel %vm2156_vm11, %v2147_v45, %v2149_v16  ;;  %v2912_v45 = vlaneseq  ;;  %v637_v16 = vld [vmem:[%s12975_s1] sm:$0x3f]  ;;  %s13044_s1 = smov 96  }
 0x1ab   : > { %2243 = vmatprep.subr.mxu1 %v2160_v18  ;;  %2307 = vmatprep.mubr.f32.mxu1 %v12920_v0 }
 0x1ac   : > { %9164 = vmatmul.mubr.msk.f32.vlgmr.msra.gmra.mrb[2].mxu0 %vm677_vm9, %v9163_v7  ;;  %2244 = vmatpush1.msra.mxu1 %v2159_v19  ;;  %v2913_v58 = vshrl.u32 %v2912_v45, 7 }
 0x1ad   : > { %2050 = vmatpush1.msra.mxu0 %v1897_v60  ;;  %v2153_v3 = vpop.permute.xlu1 %2152  ;;  %v2400_v22 = vpop.permute.xlu0 %2399  ;;  %2113 = vmatprep.mubr.f32.mxu0 %v12920_v0 }
 0x1ae   : > { %2172 = vmatprep.subr.mxu0 %v2158_v21  ;;  %v2162_v26 = vsel %vm2156_vm11, %v2153_v3, %v2155_v6  ;;  %v2161_v20 = vsel %vm2156_vm11, %v2151_v61, %v2153_v3  ;;  %v2410_v48 = vsel %vm2407_vm12, %v2398_v17, %v2400_v22  ;;  %v2914_v6 = vsub.s32 0, %v2913_v58 }
 0x1af   : > { %v2922_v3 = vsub.s32 2, %v2913_v58 }
 0x1b0   : > { %9166 = vmatmul.mubr.msk.f32.vlgmr.msra.gmra.mrb[0].mxu0 %vm677_vm9, %v9163_v7 }
 0x1b1   : > { %2173 = vmatpush1.msra.mxu0 %v2157_v23  ;;  %v2396_v25 = vpop.permute.xlu1 %2395  ;;  %v2404_v37 = vpop.permute.xlu0 %2403  ;;  %2236 = vmatprep.mubr.f32.mxu0 %v12920_v0 }
 0x1b2   : > { %2314 = vmatprep.subr.mxu0 %v2162_v26  ;;  %9169 = vmatmul.mubr.msk.f32.vlgmr.msra.gmra.mrb[2].mxu1 %vm677_vm9, %v9167_v38  ;;  %v2409_v40 = vsel %vm2407_vm12, %v2396_v25, %v2398_v17  ;;  %v2918_v17 = vsub.s32 1, %v2913_v58 }
 0x1b3   : > { %2558 = vmatprep.mubr.f32.mxu1 %v12920_v0 }
 0x1b4   : > { %9168 = vmatmul.mubr.msk.f32.vlgmr.msra.gmra.mrb[2].mxu0 %vm677_vm9, %v9167_v38 }
 0x1b5   : > { %2315 = vmatpush1.msra.mxu0 %v2161_v20  ;;  %v2394_v39 = vpop.permute.xlu1 %2393  ;;  %2378 = vmatprep.mubr.f32.mxu0 %v12920_v0  ;;  %v2647_v44 = vpop.permute.xlu0 %2646 }
 0x1b6   : > { %v2408_v42 = vsel %vm2407_vm12, %v2394_v39, %v2396_v25  ;;  %2423 = vmatprep.subr.mxu0 %v2409_v40  ;;  %v2926_v25 = vsub.s32 3, %v2913_v58 }
 0x1b8   : > { %9170 = vmatmul.mubr.msk.f32.vlgmr.msra.gmra.mrb[0].mxu0 %vm677_vm9, %v9167_v38 }
 0x1b9   : > { %2424 = vmatpush1.msra.mxu0 %v2408_v42  ;;  %v2402_v46 = vpop.permute.xlu1 %2401  ;;  %2487 = vmatprep.mubr.f32.mxu0 %v12920_v0  ;;  %v2645_v49 = vpop.permute.xlu0 %2644 }
 0x1ba   : > { %v2411_v41 = vsel %vm2407_vm12, %v2400_v22, %v2402_v46  ;;  %v2412_v52 = vsel %vm2407_vm12, %v2402_v46, %v2404_v37  ;;  %v2659_v57 = vsel %vm2658_vm14, %v2645_v49, %v2647_v44  ;;  %v11115_v22 = vrot.slane %v637_v16, %v2914_v6 }
 0x1bb   : > { %2494 = vmatprep.subr.mxu1 %v2411_v41  ;;  %v11122_v46 = vrot.slane %v637_v16, %v2922_v3  ;;  %v11125_v49 = vrot.slane %v637_v16, %v2926_v25 }
 0x1bc   : > { %2495 = vmatpush1.msra.mxu1 %v2410_v48  ;;  %9172 = vmatmul.mubr.msk.f32.vlgmr.msra.gmra.mrb[2].mxu0 %vm677_vm9, %v9171_v47  ;;  %12976 = vst [vmem:[#allocation10_spill] sm:$0xff] %v11115_v22 }
 0x1bd   : > { %v2406_v50 = vpop.permute.xlu1 %2405  ;;  %2629 = vmatprep.mubr.f32.mxu0 %v12920_v0  ;;  %9173 = vmatmul.mubr.msk.f32.vlgmr.msra.gmra.mrb[2].mxu1 %vm677_vm9, %v9171_v47  ;;  %v2653_v43 = vpop.permute.xlu0 %2652  ;;  %12978 = vst [vmem:[#allocation12_spill] sm:$0xff] %v11122_v46  ;;  %12979 = vst [vmem:[#allocation13_spill] sm:$0xff] %v11125_v49 }
 0x1be   : > { %v2413_v51 = vsel %vm2407_vm12, %v2404_v37, %v2406_v50  ;;  %2809 = vmatprep.mubr.f32.mxu1 %v12920_v0  ;;  %v11117_v37 = vrot.slane %v637_v16, %v2918_v17 }
 0x1bf   : > { %2565 = vmatprep.subr.mxu0 %v2413_v51  ;;  %v2934_v51 = vsub.s32 5, %v2913_v58 }
 0x1c0   : > { %2566 = vmatpush1.msra.mxu0 %v2412_v52  ;;  %12977 = vst [vmem:[#allocation11_spill] sm:$0xff] %v11117_v37 }
 0x1c1   : > { %v2649_v53 = vpop.permute.xlu1 %2648  ;;  %9174 = vmatmul.mubr.msk.f32.vlgmr.msra.gmra.mrb[0].mxu0 %vm677_vm9, %v9171_v47  ;;  %v2657_v63 = vpop.permute.xlu0 %2656  ;;  %v2930_v47 = vsub.s32 4, %v2913_v58 }
 0x1c2   : > { %v2660_v54 = vsel %vm2658_vm14, %v2647_v44, %v2649_v53  ;;  %2738 = vmatprep.mubr.f32.mxu0 %v12920_v0 }
 0x1c3   : > { %2674 = vmatprep.subr.mxu0 %v2660_v54 }
 0x1c4   : > { %2675 = vmatpush1.msra.mxu0 %v2659_v57 }
 0x1c5   : > { %v2651_v56 = vpop.permute.xlu1 %2650  ;;  %9176 = vmatmul.mubr.msk.f32.vlgmr.msra.gmra.mrb[2].mxu0 %vm677_vm9, %v9175_v55 }
 0x1c6   : > { %v2662_v59 = vsel %vm2658_vm14, %v2651_v56, %v2653_v43  ;;  %v2661_v62 = vsel %vm2658_vm14, %v2649_v53, %v2651_v56  ;;  %2880 = vmatprep.mubr.f32.mxu0 %v12920_v0  ;;  %v11131_v56 = vrot.slane %v637_v16, %v2930_v47 }
 0x1c7   : > { %2745 = vmatprep.subr.mxu1 %v2662_v59 }
 0x1c8   : > { %2746 = vmatpush1.msra.mxu1 %v2661_v62  ;;  %12981 = vst [vmem:[#allocation14_spill] sm:$0xff] %v11131_v56 }
 0x1c9   : > { %v2655_v1 = vpop.permute.xlu1 %2654  ;;  %9177 = vmatmul.mubr.msk.f32.vlgmr.msra.gmra.mrb[2].mxu1 %vm677_vm9, %v9175_v55 }
 0x1ca   : > { %v2664_v2 = vsel %vm2658_vm14, %v2655_v1, %v2657_v63  ;;  %v2663_v61 = vsel %vm2658_vm14, %v2653_v43, %v2655_v1  ;;  %3127 = vmatprep.mubr.f32.mxu1 %v12920_v0  ;;  %v11134_v63 = vrot.slane %v637_v16, %v2934_v51 }
 0x1cb   : > { %2816 = vmatprep.subr.mxu0 %v2664_v2 }
 0x1cc   : > { %2817 = vmatpush1.msra.mxu0 %v2663_v61  ;;  %12982 = vst [vmem:[#allocation15_spill] sm:$0xff] %v11134_v63  ;;  %v11144_v61 = vpack.i.bf16 %v10775_v8, %v10808_v27 }
 0x1cd   : > { %9178 = vmatmul.mubr.msk.f32.vlgmr.msra.gmra.mrb[0].mxu0 %vm677_vm9, %v9175_v55  ;;  %vm3059_vm9 = vcmask 130048  }
 0x1ce   : > { %6096 = vmatprep.mubr.f32.mxu0 %v12920_v0 }
 0x1da   : > { %v2897_v9 = vpop.permute.xlu1 %2896 }
 0x23c   : > { %v747_v4 = vpop.f32.mrb[0].mxu1 }
 0x23d   : > { %v749_v5 = vpop.f32.mrb[1].mxu1 }
 0x298   : > { %v2740_v7 = vpop.f32.mrb[2].mxu0 }
 0x299   : > { %v9499_v18 = vadd.f32 %v2740_v7, %v747_v4  ;;  %v2742_v19 = vpop.f32.mrb[3].mxu0 }
 0x29a   : > { %v9500_v60 = vadd.f32 %v2742_v19, %v749_v5 }
 0x29b   : > { %v2899_v21 = vadd.f32 %v9499_v18, %v2897_v9 }
 0x29c   : > { %v2811_v23 = vpop.f32.mrb[2].mxu1  ;;  %v2900_v26 = vadd.f32 %v9500_v60, %v2897_v9 }
 0x29d   : > { %v2901_v38 = vadd.f32 %v2897_v9, %v2811_v23  ;;  %v2813_v20 = vpop.f32.mrb[3].mxu1  ;;  %v2905_v39 = vmax.f32 %v2899_v21, 0.0  ;;  %v11182_v21 = vpack.i.bf16 %v10848_v34, %v10801_v24  ;;  %v5493_v23 = vld [vmem:[#allocation2] sm:$0xff] }
 0x29e   : > { %v2902_v40 = vadd.f32 %v2897_v9, %v2813_v20  ;;  %v2906_v42 = vmax.f32 %v2900_v26, 0.0  ;;  %v11194_v26 = vld [vmem:[#allocation2] sm:$0xff] }
 0x29f   : > { %v2907_v44 = vmax.f32 %v2901_v38, 0.0  ;;  %v2942_v41 = vmul.f32 %v11115_v22, %v2905_v39 }
 0x2a0   : > { %v2908_v48 = vmax.f32 %v2902_v40, 0.0  ;;  %v2882_v50 = vpop.f32.mrb[0].mxu0  ;;  %v2943_v52 = vmul.f32 %v11117_v37, %v2906_v42 }
 0x2a1   : > { %v2903_v53 = vadd.f32 %v2897_v9, %v2882_v50  ;;  %2954 = vrot.lane.b32.xlu0 %v2942_v41, %s12980_s23  ;;  %v2884_v54 = vpop.f32.mrb[1].mxu0  ;;  %v2944_v57 = vmul.f32 %v11122_v46, %v2907_v44  ;;  %v11212_v44 = vld [vmem:[#allocation2 + $0x68] sm:$0xff] }
 0x2a2   : > { %v2904_v55 = vadd.f32 %v2897_v9, %v2884_v54  ;;  %2956 = vrot.lane.b32.xlu1 %v2943_v52, %s12980_s23  ;;  %v2945_v59 = vmul.f32 %v11125_v49, %v2908_v48  ;;  %v10367_v52 = vld [vmem:[#allocation2] sm:$0xff]  ;;  %v10375_v48 = vld [vmem:[#allocation2 + $0x18] sm:$0xff] }
 0x2a3   : > { %v2909_v43 = vmax.f32 %v2903_v53, 0.0  ;;  %v4588_v53 = vld [vmem:[#allocation2 + $0x68] sm:$0xff] }
 0x2a4   : > { %v2910_v62 = vmax.f32 %v2904_v55, 0.0  ;;  %v9920_v55 = vpack.i.bf16 %v10892_v36, %v10858_v35  ;;  %v10005_v36 = vpack.i.bf16 %v10858_v35, %v10848_v34 }
 0x2a5   : > { %2958 = vrot.lane.b32.xlu0 %v2944_v57, %s12980_s23  ;;  %v2946_v1 = vmul.f32 %v11131_v56, %v2909_v43  ;;  %v5434_v57 = vld [vmem:[%s12889_s5] sm:$0xff]  ;;  %v10351_v43 = vld [vmem:[#allocation2 + $0x10] sm:$0xff] }
 0x2a6   : > { %2960 = vrot.lane.b32.xlu1 %v2945_v59, %s12980_s23  ;;  %v2947_v2 = vmul.f32 %v11134_v63, %v2910_v62  ;;  %v10010_v59 = vpack.i.bf16 %v10351_v43, %v10783_v12 }
 0x2a9   : > { %2962 = vrot.lane.b32.xlu0 %v2946_v1, %s12980_s23  ;;  %v11327_v1 = vld [vmem:[#allocation2 + $0x18] sm:$0xff] }
 0x2aa   : > { %2964 = vrot.lane.b32.xlu1 %v2947_v2, %s12980_s23 }
 0x2ad   : > { %9751 = vrot.lane.b32.xlu0 %v11144_v61, %s10503_s22 }
 0x313   : > { %v2955_v4 = vpop.permute.xlu0 %2954 }
 0x314   : > { %2978 = vst.msk [vmem:[#allocation2 + $0x38] sm:$0xff] %vm2977_vm2, %v2955_v4  ;;  %v2957_v5 = vpop.permute.xlu1 %2956 }
 0x315   : > { %v11150_v45 = vsel %vm384_vm15, %v2955_v4, %v2957_v5  ;;  %v10352_v4 = vld [vmem:[#allocation2 + $0x8] sm:$0xff] }
 0x316   : > { %2979 = vst [vmem:[#allocation2 + $0x40] sm:$0xff] %v11150_v45 }
 0x317   : > { %v2959_v58 = vpop.permute.xlu0 %2958 }
 0x318   : > { %v11154_v6 = vsel %vm384_vm15, %v2957_v5, %v2959_v58  ;;  %v2961_v8 = vpop.permute.xlu1 %2960  ;;  %v10035_v5 = vpack.i.bf16 %v10351_v43, %v10352_v4 }
 0x319   : > { %2980 = vst [vmem:[#allocation2 + $0x48] sm:$0xff] %v11154_v6  ;;  %v11158_v27 = vsel %vm384_vm15, %v2959_v58, %v2961_v8  ;;  %v11162_v7 = vpack.i.bf16 %v11154_v6, %v11150_v45 }
 0x31a   : > { %2981 = vst [vmem:[#allocation2 + $0x50] sm:$0xff] %v11158_v27 }
 0x31b   : > { %v2963_v9 = vpop.permute.xlu0 %2962  ;;  %v11165_v16 = vld [vmem:[#allocation2 + $0x38] sm:$0xff]  ;;  %9761 = vrot.lane.b32.xlu1 %v11162_v7, %s10503_s22 }
 0x31c   : > { %v11170_v17 = vsel %vm384_vm15, %v2961_v8, %v2963_v9  ;;  %v2965_v18 = vpop.permute.xlu1 %2964  ;;  %v11174_v19 = vpack.i.bf16 %v11165_v16, %v10781_v11  ;;  %v11176_v60 = vld [vmem:[#allocation2 + $0x38] sm:$0xff]  ;;  %v11188_v25 = vpack.i.bf16 %v11165_v16, %v5493_v23 }
 0x31d   : > { %2982 = vst [vmem:[#allocation2 + $0x58] sm:$0xff] %v11170_v17  ;;  %v2970_v3 = vsel %vm384_vm15, %v2963_v9, %v2965_v18  ;;  %v11192_v11 = vpack.i.bf16 %v11170_v17, %v11158_v27  ;;  %v11200_v38 = vld [vmem:[#allocation2 + $0x40] sm:$0xff] }
 0x31e   : > { %2984 = vst.msk [vmem:[#allocation2 + $0x60] sm:$0xff] %vm2983_vm4, %v2970_v3  ;;  %9756 = vrot.lane.b32.xlu0 %v11174_v19, %s10503_s22 }
 0x31f   : > { %9766 = vrot.lane.b32.xlu1 %v11182_v21, %s10503_s22  ;;  %v9752_v62 = vpop.permute.xlu0 %9751 }
 0x320   : > { %v11202_v20 = vld [vmem:[#allocation2 + $0x48] sm:$0xff]  ;;  %v9754_v2 = vunpack.i.h.bf16 %v9752_v62 }
 0x321   : > { %v10250_v39 = vpack.i.bf16 %v11202_v20, %v11200_v38  ;;  %v11208_v40 = vld [vmem:[#allocation2 + $0x50] sm:$0xff] }
 0x322   : > { %9771 = vrot.lane.b32.xlu0 %v11192_v11, %s10503_s22 }
 0x324   : > { %v11210_v42 = vld [vmem:[#allocation2 + $0x58] sm:$0xff] }
 0x325   : > { %v11214_v47 = vld [vmem:[#allocation2 + $0x60] sm:$0xff] }
 0x326   : > { %v11216_v41 = vld [vmem:[#allocation2 + $0x60] sm:$0xff]  ;;  %v11222_v50 = vpack.i.bf16 %v11214_v47, %v10858_v35  ;;  %9781 = vrot.lane.b32.xlu0 %v11144_v61, %s12915_s12  ;;  %v10065_v51 = vpack.i.bf16 %v11214_v47, %v11170_v17  ;;  %v9925_v54 = vpack.i.bf16 %v4588_v53, %v11214_v47  ;;  %v10025_v35 = vpack.i.bf16 %v10848_v34, %v11327_v1 }
 0x328   : > { %9776 = vrot.lane.b32.xlu1 %v11222_v50, %s10503_s22  ;;  %s12913_s22 = smov 84  }
 0x32a   : > { %9791 = vrot.lane.b32.xlu0 %v11174_v19, %s12915_s12 }
 0x32c   : > { %9786 = vrot.lane.b32.xlu1 %v11162_v7, %s12915_s12 }
 0x32e   : > { %9806 = vrot.lane.b32.xlu0 %v11144_v61, %s12911_s30 }
 0x330   : > { %9796 = vrot.lane.b32.xlu1 %v11182_v21, %s12915_s12 }
 0x332   : > { %9816 = vrot.lane.b32.xlu0 %v11192_v11, %s12915_s12 }
 0x334   : > { %9801 = vrot.lane.b32.xlu1 %v11222_v50, %s12915_s12  ;;  %s10508_s12 = smov 44  }
 0x336   : > { %9821 = vrot.lane.b32.xlu0 %v11174_v19, %s12911_s30 }
 0x338   : > { %9811 = vrot.lane.b32.xlu1 %v11162_v7, %s12911_s30 }
 0x33a   : > { %9836 = vrot.lane.b32.xlu0 %v11144_v61, %s10480_s27 }
 0x33c   : > { %9826 = vrot.lane.b32.xlu1 %v11182_v21, %s12911_s30 }
 0x33e   : > { %9846 = vrot.lane.b32.xlu0 %v11192_v11, %s12911_s30 }
 0x340   : > { %9831 = vrot.lane.b32.xlu1 %v11222_v50, %s12911_s30  ;;  %s12916_s30 = smov 48  }
 0x342   : > { %9851 = vrot.lane.b32.xlu0 %v11174_v19, %s10480_s27 }
 0x344   : > { %9841 = vrot.lane.b32.xlu1 %v11162_v7, %s10480_s27 }
 0x346   : > { %9866 = vrot.lane.b32.xlu0 %v11144_v61, %s12913_s22 }
 0x348   : > { %9856 = vrot.lane.b32.xlu1 %v11182_v21, %s10480_s27 }
 0x34a   : > { %9876 = vrot.lane.b32.xlu0 %v11192_v11, %s10480_s27 }
 0x34c   : > { %9861 = vrot.lane.b32.xlu1 %v11222_v50, %s10480_s27 }
 0x34e   : > { %9881 = vrot.lane.b32.xlu0 %v11174_v19, %s12913_s22 }
 0x350   : > { %9871 = vrot.lane.b32.xlu1 %v11162_v7, %s12913_s22 }
 0x352   : > { %9896 = vrot.lane.b32.xlu0 %v11144_v61, %s12916_s30 }
 0x354   : > { %9886 = vrot.lane.b32.xlu1 %v11182_v21, %s12913_s22 }
 0x356   : > { %9906 = vrot.lane.b32.xlu0 %v11192_v11, %s12913_s22 }
 0x358   : > { %9891 = vrot.lane.b32.xlu1 %v11222_v50, %s12913_s22  ;;  %s12983_s22 = smov 46  }
 0x35a   : > { %9911 = vrot.lane.b32.xlu0 %v11174_v19, %s12916_s30 }
 0x35c   : > { %9901 = vrot.lane.b32.xlu1 %v11162_v7, %s12916_s30 }
 0x35e   : > { %9926 = vrot.lane.b32.xlu0 %v9925_v54, %s12916_s30 }
 0x360   : > { %9916 = vrot.lane.b32.xlu1 %v11182_v21, %s12916_s30 }
 0x362   : > { %9936 = vrot.lane.b32.xlu0 %v11192_v11, %s12916_s30 }
 0x364   : > { %9921 = vrot.lane.b32.xlu1 %v9920_v55, %s12916_s30  ;;  %s12986_s30 = smov 67  }
 0x366   : > { %9941 = vrot.lane.b32.xlu0 %v11162_v7, %s12983_s22 }
 0x368   : > { %9931 = vrot.lane.b32.xlu1 %v11144_v61, %s12983_s22 }
 0x36a   : > { %9951 = vrot.lane.b32.xlu0 %v11182_v21, %s12983_s22 }
 0x36c   : > { %9946 = vrot.lane.b32.xlu1 %v11174_v19, %s12983_s22 }
 0x36e   : > { %9956 = vrot.lane.b32.xlu0 %v9920_v55, %s12983_s22 }
 0x370   : > { %9961 = vrot.lane.b32.xlu1 %v11192_v11, %s12983_s22 }
 0x372   : > { %9971 = vrot.lane.b32.xlu0 %v11144_v61, %s10508_s12  ;;  %v9753_v61 = vunpack.i.l.bf16 %v9752_v62 }
 0x374   : > { %9966 = vrot.lane.b32.xlu1 %v9925_v54, %s12983_s22  ;;  %v3038_v34 = vsel %vm3036_vm5, %v9753_v61, %v9754_v2  ;;  %s12987_s22 = smov 106  }
 0x376   : > { %9981 = vrot.lane.b32.xlu0 %v11174_v19, %s10508_s12 }
 0x378   : > { %9976 = vrot.lane.b32.xlu1 %v11162_v7, %s10508_s12 }
 0x37a   : > { %9996 = vrot.lane.b32.xlu0 %v11192_v11, %s10508_s12 }
 0x37c   : > { %9986 = vrot.lane.b32.xlu1 %v11182_v21, %s10508_s12 }
 0x37e   : > { %10001 = vrot.lane.b32.xlu0 %v9925_v54, %s10508_s12 }
 0x380   : > { %9991 = vrot.lane.b32.xlu1 %v9920_v55, %s10508_s12 }
 0x382   : > { %10006 = vrot.lane.b32.xlu0 %v10005_v36, %s10496_s18 }
 0x384   : > { %5437 = vperm.xlu1 %9749, %v5434_v57  }
 0x386   : > { %10011 = vrot.lane.b32.xlu0 %v10010_v59, %s10497_s29 }
 0x388   : > { %10016 = vrot.lane.b32.xlu1 %v11162_v7, %s10497_s29 }
 0x38a   : > { %10021 = vrot.lane.b32.xlu0 %v11188_v25, %s10497_s29 }
 0x38c   : > { %10026 = vrot.lane.b32.xlu1 %v10025_v35, %s10497_s29 }
 0x38d   : > { %v9762_v12 = vpop.permute.xlu1 %9761 }
 0x38e   : > { %10031 = vrot.lane.b32.xlu0 %v11222_v50, %s10497_s29  ;;  %v9764_v58 = vunpack.i.h.bf16 %v9762_v12  ;;  %v9763_v8 = vunpack.i.l.bf16 %v9762_v12  ;;  %v9179_v12 = vld [vmem:[%s12888_s4 + $0x8] sm:$0xff] }
 0x390   : > { %v9757_v9 = vpop.permute.xlu0 %9756  ;;  %10036 = vrot.lane.b32.xlu1 %v10035_v5, %s10498_s24  ;;  %v3043_v18 = vsel %vm3036_vm5, %v9763_v8, %v9764_v58 }
 0x391   : > { %v9759_v19 = vunpack.i.h.bf16 %v9757_v9  ;;  %v9758_v3 = vunpack.i.l.bf16 %v9757_v9  ;;  %v9767_v21 = vpop.permute.xlu1 %9766  ;;  %v9259_v23 = vpack.c.bf16 %v3043_v18, %v3038_v34 }
 0x392   : > { %10041 = vrot.lane.b32.xlu0 %v11162_v7, %s10498_s24  ;;  %v9769_v55 = vunpack.i.h.bf16 %v9767_v21  ;;  %v9768_v36 = vunpack.i.l.bf16 %v9767_v21 }
 0x393   : > { %v3037_v53 = vsel %vm3036_vm5, %v9758_v3, %v9753_v61  ;;  %v3042_v54 = vsel %vm3036_vm5, %v9759_v19, %v9763_v8  ;;  %9260 = vmatprep.subr.bf16.mxu1 %v9259_v23 }
 0x394   : > { %10051 = vrot.lane.b32.xlu1 %v10025_v35, %s10498_s24  ;;  %v9772_v57 = vpop.permute.xlu0 %9771  ;;  %v9261_v43 = vpack.c.bf16 %v3042_v54, %v3037_v53  ;;  %v3039_v61 = vsel %vm3036_vm5, %v9754_v2, %v9768_v36  ;;  %v3040_v8 = vsel %vm3036_vm5, %v9768_v36, %v9769_v55 }
 0x395   : > { %v9774_v59 = vunpack.i.h.bf16 %v9772_v57  ;;  %v9773_v62 = vunpack.i.l.bf16 %v9772_v57  ;;  %v10354_v57 = vld [vmem:[#allocation2] sm:$0xff] }
 0x396   : > { %10046 = vrot.lane.b32.xlu0 %v11188_v25, %s10498_s24  ;;  %9262 = vmatpush1.bf16.msra.mxu1 %v9261_v43  ;;  %v9273_v43 = vpack.c.bf16 %v11165_v16, %v10354_v57 }
 0x397   : > { %v3044_v4 = vsel %vm3036_vm5, %v9764_v58, %v9773_v62  ;;  %v3045_v35 = vsel %vm3036_vm5, %v9773_v62, %v9774_v59  ;;  %v10355_v62 = vld [vmem:[#allocation2 + $0x18] sm:$0xff] }
 0x398   : > { %10061 = vrot.lane.b32.xlu1 %v10035_v5, %s10480_s27  ;;  %v11354_v9 = vpop.permute.xlu0 %9781  ;;  %v9263_v34 = vpack.c.bf16 %v3045_v35, %v3040_v8  ;;  %v9265_v18 = vpack.c.bf16 %v3044_v4, %v3039_v61  ;;  %v9275_v61 = vpack.c.bf16 %v11158_v27, %v10355_v62  ;;  %v2997_v8 = vld [vmem:[%s12888_s4] sm:$0xff] }
 0x399   : > { %9180 = vmatmul.mubr.msk.f32.vlgmr.msra.gmra.mrb[4].mxu1 %vm3059_vm9, %v9179_v12  ;;  %v9784_v16 = vunpack.i.h.bf16 %v11354_v9 }
 0x39a   : > { %v9777_v19 = vpop.permute.xlu1 %9776  ;;  %10056 = vrot.lane.b32.xlu0 %v11222_v50, %s10498_s24  ;;  %9264 = vmatprep.subr.bf16.mxu1 %v9263_v34  ;;  %v10356_v34 = vld [vmem:[#allocation2 + $0x10] sm:$0xff] }
 0x39b   : > { %v9779_v2 = vunpack.i.h.bf16 %v9777_v19  ;;  %v9778_v3 = vunpack.i.l.bf16 %v9777_v19  ;;  %9266 = vmatpush1.bf16.msra.mxu1 %v9265_v18  ;;  %3198 = vmatprep.mubr.f32.mxu1 %v12920_v0  ;;  %v9277_v27 = vpack.c.bf16 %v11154_v6, %v10356_v34  ;;  %v11396_v19 = vld [vmem:[#allocation2 + $0x28] sm:$0xff] }
 0x39c   : > { %10066 = vrot.lane.b32.xlu1 %v10065_v51, %s10496_s18  ;;  %v9792_v5 = vpop.permute.xlu0 %9791  ;;  %v10353_v51 = vld [vmem:[#allocation2 + $0x8] sm:$0xff] }
 0x39d   : > { %v3041_v58 = vsel %vm3036_vm5, %v9769_v55, %v9778_v3  ;;  %v3046_v21 = vsel %vm3036_vm5, %v9774_v59, %v9779_v2  ;;  %v9267_v53 = vpack.c.bf16 %v9779_v2, %v9778_v3  ;;  %v9271_v36 = vpack.c.bf16 %v11150_v45, %v10353_v51  ;;  %v11408_v51 = vld [vmem:[#allocation2 + $0x20] sm:$0xff] }
 0x39e   : > { %v11366_v23 = vpop.permute.xlu1 %9786  ;;  %10071 = vrot.lane.b32.xlu0 %v11192_v11, %s10497_s29  ;;  %9181 = vmatmul.mubr.msk.f32.vlgmr.msra.gmra.mrb[6].mxu1 %vm3059_vm9, %v9179_v12  ;;  %v9269_v50 = vpack.c.bf16 %v3046_v21, %v3041_v58  ;;  %v9279_v2 = vpack.c.bf16 %v11214_v47, %v11396_v19  ;;  %v9794_v6 = vunpack.i.h.bf16 %v9792_v5  ;;  %v9793_v21 = vunpack.i.l.bf16 %v9792_v5 }
 0x39f   : > { %3269 = vmatprep.mubr.f32.mxu1 %v12920_v0  ;;  %9268 = vmatprep.subr.bf16.mxu1 %v9267_v53  ;;  %v9789_v4 = vunpack.i.h.bf16 %v11366_v23  ;;  %v9788_v45 = vunpack.i.l.bf16 %v11366_v23  ;;  %v9281_v47 = vpack.c.bf16 %v11170_v17, %v11408_v51  ;;  %vm3789_vm5 = vcmask 719872  }
 0x3a0   : > { %v11372_v54 = vpop.permute.xlu0 %9806  ;;  %9270 = vmatpush1.bf16.msra.mxu1 %v9269_v50 }
 0x3a1   : > { %9272 = vmatprep.subr.bf16.mxu1 %v9271_v36  ;;  %v3524_v57 = vsel %vm3518_vm1, %v9794_v6, %v9788_v45 }
 0x3a2   : > { %v11375_v55 = vpop.permute.xlu1 %9796  ;;  %10076 = vrot.lane.b32.xlu0 %v11192_v11, %s10498_s24 }
 0x3a3   : > { %9182 = vmatmul.mubr.msk.f32.vlgmr.msra.gmra.mrb[8].mxu1 %vm3059_vm9, %v9179_v12  ;;  %v9783_v12 = vunpack.i.l.bf16 %v11354_v9  ;;  %v3525_v9 = vsel %vm3518_vm1, %v9788_v45, %v9789_v4  ;;  %v9799_v53 = vunpack.i.h.bf16 %v11375_v55  ;;  %v9798_v50 = vunpack.i.l.bf16 %v11375_v55 }
 0x3a4   : > { %v11381_v59 = vpop.permute.xlu0 %9816  ;;  %9274 = vmatpush1.bf16.msra.mxu1 %v9273_v43  ;;  %3343 = vmatprep.mubr.f32.mxu1 %v12920_v0 }
 0x3a5   : > { %9276 = vmatprep.subr.bf16.mxu1 %v9275_v61  ;;  %v9819_v3 = vunpack.i.h.bf16 %v11381_v59  ;;  %v9818_v58 = vunpack.i.l.bf16 %v11381_v59  ;;  %v3520_v36 = vsel %vm3518_vm1, %v9783_v12, %v9784_v16  ;;  %v3519_v55 = vsel %vm3518_vm1, %v9793_v21, %v9783_v12  ;;  %v9186_v12 = vld [vmem:[%s12888_s4 + $0x10] sm:$0xff] }
 0x3a6   : > { %v9802_v35 = vpop.permute.xlu1 %9801  ;;  %v9283_v5 = vpack.c.bf16 %v3525_v9, %v3520_v36  ;;  %v9285_v17 = vpack.c.bf16 %v3524_v57, %v3519_v55  ;;  %v3522_v61 = vsel %vm3518_vm1, %v9798_v50, %v9799_v53 }
 0x3a7   : > { %9183 = vmatmul.mubr.msk.f32.vlgmr.msra.gmra.mrb[4].mxu1 %vm3059_vm9, %v2997_v8  ;;  %v3527_v59 = vsel %vm3518_vm1, %v9818_v58, %v9819_v3  ;;  %v9804_v34 = vunpack.i.h.bf16 %v9802_v35  ;;  %v9803_v45 = vunpack.i.l.bf16 %v9802_v35  ;;  %v3521_v35 = vsel %vm3518_vm1, %v9784_v16, %v9798_v50 }
 0x3a8   : > { %v11394_v18 = vpop.permute.xlu0 %9821  ;;  %9278 = vmatpush1.bf16.msra.mxu1 %v9277_v27  ;;  %3414 = vmatprep.mubr.f32.mxu1 %v12920_v0  ;;  %v3526_v27 = vsel %vm3518_vm1, %v9789_v4, %v9818_v58  ;;  %v9287_v9 = vpack.c.bf16 %v3527_v59, %v3522_v61  ;;  %v9809_v4 = vunpack.i.h.bf16 %v11372_v54 }
 0x3a9   : > { %9280 = vmatprep.subr.bf16.mxu1 %v9279_v2  ;;  %v9289_v58 = vpack.c.bf16 %v3526_v27, %v3521_v35  ;;  %v3523_v36 = vsel %vm3518_vm1, %v9799_v53, %v9803_v45  ;;  %v9824_v50 = vunpack.i.h.bf16 %v11394_v18  ;;  %v9823_v53 = vunpack.i.l.bf16 %v11394_v18 }
 0x3aa   : > { %v11404_v23 = vpop.permute.xlu1 %9811 }
 0x3ab   : > { %9184 = vmatmul.mubr.msk.f32.vlgmr.msra.gmra.mrb[6].mxu1 %vm3059_vm9, %v2997_v8  ;;  %v9814_v6 = vunpack.i.h.bf16 %v11404_v23 }
 0x3ac   : > { %v11415_v43 = vpop.permute.xlu0 %9836  ;;  %9282 = vmatpush1.bf16.msra.mxu1 %v9281_v47  ;;  %3485 = vmatprep.mubr.f32.mxu1 %v12920_v0  ;;  %v9813_v47 = vunpack.i.l.bf16 %v11404_v23  ;;  %v3528_v23 = vsel %vm3518_vm1, %v9819_v3, %v9804_v34  ;;  %vm4330_vm1 = vcmask 687104  }
 0x3ad   : > { %9284 = vmatprep.subr.bf16.mxu1 %v9283_v5  ;;  %v9291_v5 = vpack.c.bf16 %v9804_v34, %v9803_v45  ;;  %v9293_v61 = vpack.c.bf16 %v3528_v23, %v3523_v36 }
 0x3ae   : > { %v11420_v62 = vpop.permute.xlu1 %9826  ;;  %v3795_v45 = vsel %vm3789_vm5, %v9824_v50, %v9813_v47 }
 0x3af   : > { %9185 = vmatmul.mubr.msk.f32.vlgmr.msra.gmra.mrb[8].mxu1 %vm3059_vm9, %v2997_v8  ;;  %v9808_v8 = vunpack.i.l.bf16 %v11372_v54  ;;  %v3796_v54 = vsel %vm3789_vm5, %v9813_v47, %v9814_v6  ;;  %v9829_v55 = vunpack.i.h.bf16 %v11420_v62 }
 0x3b0   : > { %v11425_v2 = vpop.permute.xlu0 %9846  ;;  %9286 = vmatpush1.bf16.msra.mxu1 %v9285_v17  ;;  %3608 = vmatprep.mubr.f32.mxu1 %v12920_v0  ;;  %v9828_v17 = vunpack.i.l.bf16 %v11420_v62 }
 0x3b1   : > { %9288 = vmatprep.subr.bf16.mxu1 %v9287_v9  ;;  %v9849_v59 = vunpack.i.h.bf16 %v11425_v2  ;;  %v9848_v16 = vunpack.i.l.bf16 %v11425_v2  ;;  %v3791_v34 = vsel %vm3789_vm5, %v9808_v8, %v9809_v4  ;;  %v3790_v9 = vsel %vm3789_vm5, %v9823_v53, %v9808_v8  ;;  %v9190_v8 = vld [vmem:[%s12888_s4 + $0x18] sm:$0xff] }
 0x3b2   : > { %v9832_v21 = vpop.permute.xlu1 %9831  ;;  %v9295_v2 = vpack.c.bf16 %v3796_v54, %v3791_v34  ;;  %v9297_v62 = vpack.c.bf16 %v3795_v45, %v3790_v9 }
 0x3b3   : > { %9187 = vmatmul.mubr.msk.f32.vlgmr.msra.gmra.mrb[4].mxu1 %vm3059_vm9, %v9186_v12  ;;  %v3798_v18 = vsel %vm3789_vm5, %v9848_v16, %v9849_v59  ;;  %v9834_v36 = vunpack.i.h.bf16 %v9832_v21  ;;  %v9833_v47 = vunpack.i.l.bf16 %v9832_v21  ;;  %v3797_v23 = vsel %vm3789_vm5, %v9814_v6, %v9848_v16 }
 0x3b4   : > { %v11439_v57 = vpop.permute.xlu0 %9851  ;;  %9290 = vmatpush1.bf16.msra.mxu1 %v9289_v58  ;;  %3679 = vmatprep.mubr.f32.mxu1 %v12920_v0  ;;  %v3793_v58 = vsel %vm3789_vm5, %v9828_v17, %v9829_v55  ;;  %v3792_v21 = vsel %vm3789_vm5, %v9809_v4, %v9828_v17  ;;  %v9839_v6 = vunpack.i.h.bf16 %v11415_v43 }
 0x3b5   : > { %9292 = vmatprep.subr.bf16.mxu1 %v9291_v5  ;;  %v9299_v54 = vpack.c.bf16 %v3798_v18, %v3793_v58  ;;  %v9301_v16 = vpack.c.bf16 %v3797_v23, %v3792_v21  ;;  %v3794_v34 = vsel %vm3789_vm5, %v9829_v55, %v9833_v47  ;;  %v9853_v55 = vunpack.i.l.bf16 %v11439_v57 }
 0x3b6   : > { %v11447_v3 = vpop.permute.xlu1 %9841 }
 0x3b7   : > { %9188 = vmatmul.mubr.msk.f32.vlgmr.msra.gmra.mrb[6].mxu1 %vm3059_vm9, %v9186_v12  ;;  %v9844_v50 = vunpack.i.h.bf16 %v11447_v3 }
 0x3b8   : > { %v11454_v27 = vpop.permute.xlu0 %9866  ;;  %9294 = vmatpush1.bf16.msra.mxu1 %v9293_v61  ;;  %3750 = vmatprep.mubr.f32.mxu1 %v12920_v0  ;;  %v9843_v61 = vunpack.i.l.bf16 %v11447_v3  ;;  %v3799_v3 = vsel %vm3789_vm5, %v9849_v59, %v9834_v36  ;;  %vm4633_vm5 = vcmask 392192  }
 0x3b9   : > { %9296 = vmatprep.subr.bf16.mxu1 %v9295_v2  ;;  %v9303_v2 = vpack.c.bf16 %v9834_v36, %v9833_v47  ;;  %v9305_v58 = vpack.c.bf16 %v3799_v3, %v3794_v34 }
 0x3ba   : > { %v11459_v35 = vpop.permute.xlu1 %9856  ;;  %v4066_v17 = vsel %vm1644_vm8, %v9843_v61, %v9844_v50 }
 0x3bb   : > { %9189 = vmatmul.mubr.msk.f32.vlgmr.msra.gmra.mrb[8].mxu1 %vm3059_vm9, %v9186_v12  ;;  %v9838_v12 = vunpack.i.l.bf16 %v11415_v43  ;;  %v9854_v43 = vunpack.i.h.bf16 %v11439_v57  ;;  %v9859_v59 = vunpack.i.h.bf16 %v11459_v35 }
 0x3bc   : > { %v11464_v5 = vpop.permute.xlu0 %9876  ;;  %9298 = vmatpush1.bf16.msra.mxu1 %v9297_v62  ;;  %3879 = vmatprep.mubr.f32.mxu1 %v12920_v0  ;;  %v9858_v62 = vunpack.i.l.bf16 %v11459_v35 }
 0x3bd   : > { %9300 = vmatprep.subr.bf16.mxu1 %v9299_v54  ;;  %v9879_v18 = vunpack.i.h.bf16 %v11464_v5  ;;  %v9878_v4 = vunpack.i.l.bf16 %v11464_v5  ;;  %v4061_v36 = vsel %vm1644_vm8, %v9838_v12, %v9839_v6  ;;  %v4065_v47 = vsel %vm1644_vm8, %v9854_v43, %v9843_v61 }
 0x3be   : > { %v9862_v53 = vpop.permute.xlu1 %9861  ;;  %v9307_v5 = vpack.c.bf16 %v4066_v17, %v4061_v36  ;;  %v4060_v54 = vsel %vm1644_vm8, %v9853_v55, %v9838_v12  ;;  %v9194_v12 = vld [vmem:[%s12888_s4 + $0x20] sm:$0xff] }
 0x3bf   : > { %9191 = vmatmul.mubr.msk.f32.vlgmr.msra.gmra.mrb[4].mxu1 %vm3059_vm9, %v9190_v8  ;;  %v4068_v57 = vsel %vm1644_vm8, %v9878_v4, %v9879_v18  ;;  %v9309_v35 = vpack.c.bf16 %v4065_v47, %v4060_v54  ;;  %v9864_v34 = vunpack.i.h.bf16 %v9862_v53  ;;  %v9863_v61 = vunpack.i.l.bf16 %v9862_v53 }
 0x3c0   : > { %v11478_v45 = vpop.permute.xlu0 %9881  ;;  %9302 = vmatpush1.bf16.msra.mxu1 %v9301_v16  ;;  %3950 = vmatprep.mubr.f32.mxu1 %v12920_v0  ;;  %v4063_v16 = vsel %vm1644_vm8, %v9858_v62, %v9859_v59  ;;  %v4067_v3 = vsel %vm1644_vm8, %v9844_v50, %v9878_v4  ;;  %v4062_v53 = vsel %vm1644_vm8, %v9839_v6, %v9858_v62  ;;  %v9869_v50 = vunpack.i.h.bf16 %v11454_v27 }
 0x3c1   : > { %9304 = vmatprep.subr.bf16.mxu1 %v9303_v2  ;;  %v9311_v17 = vpack.c.bf16 %v4068_v57, %v4063_v16  ;;  %v9313_v4 = vpack.c.bf16 %v4067_v3, %v4062_v53  ;;  %v4064_v36 = vsel %vm1644_vm8, %v9859_v59, %v9863_v61  ;;  %v9884_v62 = vunpack.i.h.bf16 %v11478_v45 }
 0x3c2   : > { %v11486_v9 = vpop.permute.xlu1 %9871  ;;  %v9883_v59 = vunpack.i.l.bf16 %v11478_v45 }
 0x3c3   : > { %9192 = vmatmul.mubr.msk.f32.vlgmr.msra.gmra.mrb[6].mxu1 %vm3059_vm9, %v9190_v8  ;;  %v9874_v43 = vunpack.i.h.bf16 %v11486_v9 }
 0x3c4   : > { %v11493_v23 = vpop.permute.xlu0 %9896  ;;  %9306 = vmatpush1.bf16.msra.mxu1 %v9305_v58  ;;  %4021 = vmatprep.mubr.f32.mxu1 %v12920_v0  ;;  %v9873_v58 = vunpack.i.l.bf16 %v11486_v9  ;;  %v4069_v9 = vsel %vm1644_vm8, %v9879_v18, %v9864_v34 }
 0x3c5   : > { %9308 = vmatprep.subr.bf16.mxu1 %v9307_v5  ;;  %v9315_v5 = vpack.c.bf16 %v9864_v34, %v9863_v61  ;;  %v9317_v16 = vpack.c.bf16 %v4069_v9, %v4064_v36 }
 0x3c6   : > { %v11498_v21 = vpop.permute.xlu1 %9886  ;;  %v4336_v61 = vsel %vm4330_vm1, %v9884_v62, %v9873_v58 }
 0x3c7   : > { %9193 = vmatmul.mubr.msk.f32.vlgmr.msra.gmra.mrb[8].mxu1 %vm3059_vm9, %v9190_v8  ;;  %v9868_v8 = vunpack.i.l.bf16 %v11454_v27  ;;  %v4337_v27 = vsel %vm4330_vm1, %v9873_v58, %v9874_v43  ;;  %v9889_v54 = vunpack.i.h.bf16 %v11498_v21 }
 0x3c8   : > { %v11503_v2 = vpop.permute.xlu0 %9906  ;;  %9310 = vmatpush1.bf16.msra.mxu1 %v9309_v35  ;;  %4149 = vmatprep.mubr.f32.mxu1 %v12920_v0  ;;  %v9888_v35 = vunpack.i.l.bf16 %v11498_v21 }
 0x3c9   : > { %9312 = vmatprep.subr.bf16.mxu1 %v9311_v17  ;;  %v9909_v57 = vunpack.i.h.bf16 %v11503_v2  ;;  %v9908_v6 = vunpack.i.l.bf16 %v11503_v2  ;;  %v4332_v34 = vsel %vm4330_vm1, %v9868_v8, %v9869_v50  ;;  %v4331_v17 = vsel %vm4330_vm1, %v9883_v59, %v9868_v8  ;;  %v9198_v8 = vld [vmem:[%s12888_s4 + $0x28] sm:$0xff] }
 0x3ca   : > { %v9892_v55 = vpop.permute.xlu1 %9891  ;;  %v9319_v2 = vpack.c.bf16 %v4337_v27, %v4332_v34  ;;  %v9321_v21 = vpack.c.bf16 %v4336_v61, %v4331_v17 }
 0x3cb   : > { %9195 = vmatmul.mubr.msk.f32.vlgmr.msra.gmra.mrb[4].mxu1 %vm3059_vm9, %v9194_v12  ;;  %v4339_v45 = vsel %vm4330_vm1, %v9908_v6, %v9909_v57  ;;  %v9894_v36 = vunpack.i.h.bf16 %v9892_v55  ;;  %v9893_v58 = vunpack.i.l.bf16 %v9892_v55  ;;  %v4338_v9 = vsel %vm4330_vm1, %v9874_v43, %v9908_v6 }
 0x3cc   : > { %v11517_v47 = vpop.permute.xlu0 %9911  ;;  %9314 = vmatpush1.bf16.msra.mxu1 %v9313_v4  ;;  %4220 = vmatprep.mubr.f32.mxu1 %v12920_v0  ;;  %v4334_v4 = vsel %vm4330_vm1, %v9888_v35, %v9889_v54  ;;  %v4333_v55 = vsel %vm4330_vm1, %v9869_v50, %v9888_v35  ;;  %v9899_v43 = vunpack.i.h.bf16 %v11493_v23 }
 0x3cd   : > { %9316 = vmatprep.subr.bf16.mxu1 %v9315_v5  ;;  %v9323_v27 = vpack.c.bf16 %v4339_v45, %v4334_v4  ;;  %v9325_v6 = vpack.c.bf16 %v4338_v9, %v4333_v55  ;;  %v4335_v34 = vsel %vm4330_vm1, %v9889_v54, %v9893_v58  ;;  %v9914_v35 = vunpack.i.h.bf16 %v11517_v47 }
 0x3ce   : > { %v11525_v18 = vpop.permute.xlu1 %9901  ;;  %v9913_v54 = vunpack.i.l.bf16 %v11517_v47 }
 0x3cf   : > { %9196 = vmatmul.mubr.msk.f32.vlgmr.msra.gmra.mrb[6].mxu1 %vm3059_vm9, %v9194_v12  ;;  %v9904_v62 = vunpack.i.h.bf16 %v11525_v18 }
 0x3d0   : > { %v11532_v3 = vpop.permute.xlu0 %9926  ;;  %9318 = vmatpush1.bf16.msra.mxu1 %v9317_v16  ;;  %4291 = vmatprep.mubr.f32.mxu1 %v12920_v0  ;;  %v9903_v16 = vunpack.i.l.bf16 %v11525_v18  ;;  %v4340_v18 = vsel %vm4330_vm1, %v9909_v57, %v9894_v36  ;;  %vm4910_vm1 = vcmask 375808  }
 0x3d1   : > { %9320 = vmatprep.subr.bf16.mxu1 %v9319_v2  ;;  %v9327_v2 = vpack.c.bf16 %v9894_v36, %v9893_v58  ;;  %v9329_v4 = vpack.c.bf16 %v4340_v18, %v4335_v34  ;;  %v9929_v34 = vunpack.i.h.bf16 %v11532_v3 }
 0x3d2   : > { %v11537_v53 = vpop.permute.xlu1 %9916  ;;  %v4640_v58 = vsel %vm4633_vm5, %v9914_v35, %v9903_v16 }
 0x3d3   : > { %9197 = vmatmul.mubr.msk.f32.vlgmr.msra.gmra.mrb[8].mxu1 %vm3059_vm9, %v9194_v12  ;;  %v9898_v12 = vunpack.i.l.bf16 %v11493_v23  ;;  %v4641_v23 = vsel %vm4633_vm5, %v9903_v16, %v9904_v62  ;;  %v9919_v17 = vunpack.i.h.bf16 %v11537_v53  ;;  %v9928_v16 = vunpack.i.l.bf16 %v11532_v3  ;;  %v9202_v3 = vld [vmem:[%s12888_s4 + $0x30] sm:$0xff] }
 0x3d4   : > { %v11542_v5 = vpop.permute.xlu0 %9936  ;;  %9322 = vmatpush1.bf16.msra.mxu1 %v9321_v21  ;;  %4420 = vmatprep.mubr.f32.mxu1 %v12920_v0  ;;  %v9918_v21 = vunpack.i.l.bf16 %v11537_v53 }
 0x3d5   : > { %9324 = vmatprep.subr.bf16.mxu1 %v9323_v27  ;;  %v9939_v45 = vunpack.i.h.bf16 %v11542_v5  ;;  %v9938_v50 = vunpack.i.l.bf16 %v11542_v5  ;;  %v4635_v36 = vsel %vm4633_vm5, %v9898_v12, %v9899_v43 }
 0x3d6   : > { %v9922_v59 = vpop.permute.xlu1 %9921  ;;  %v9331_v5 = vpack.c.bf16 %v4641_v23, %v4635_v36 }
 0x3d7   : > { %9199 = vmatmul.mubr.msk.f32.vlgmr.msra.gmra.mrb[4].mxu1 %vm3059_vm9, %v9198_v8  ;;  %v9924_v27 = vunpack.i.h.bf16 %v9922_v59  ;;  %v9923_v55 = vunpack.i.l.bf16 %v9922_v59  ;;  %v4643_v47 = vsel %vm4633_vm5, %v9938_v50, %v9939_v45  ;;  %v4642_v23 = vsel %vm4633_vm5, %v9904_v62, %v9938_v50 }
 0x3d8   : > { %v11556_v61 = vpop.permute.xlu0 %9941  ;;  %9326 = vmatpush1.bf16.msra.mxu1 %v9325_v6  ;;  %4491 = vmatprep.mubr.f32.mxu1 %v12920_v0  ;;  %v4634_v6 = vsel %vm4633_vm5, %v9913_v54, %v9898_v12  ;;  %v4636_v62 = vsel %vm4633_vm5, %v9899_v43, %v9918_v21 }
 0x3d9   : > { %9328 = vmatprep.subr.bf16.mxu1 %v9327_v2  ;;  %v9333_v18 = vpack.c.bf16 %v4640_v58, %v4634_v6  ;;  %v4637_v2 = vsel %vm4633_vm5, %v9918_v21, %v9919_v17  ;;  %v4639_v54 = vsel %vm4633_vm5, %v9923_v55, %v9924_v27  ;;  %v9944_v50 = vunpack.i.h.bf16 %v11556_v61 }
 0x3da   : > { %v11564_v57 = vpop.permute.xlu1 %9931  ;;  %v9335_v35 = vpack.c.bf16 %v4643_v47, %v4637_v2  ;;  %v9943_v36 = vunpack.i.l.bf16 %v11556_v61  ;;  %v9337_v58 = vpack.c.bf16 %v4642_v23, %v4636_v62  ;;  %v4644_v61 = vsel %vm4633_vm5, %v9939_v45, %v9928_v16 }
 0x3db   : > { %9200 = vmatmul.mubr.msk.f32.vlgmr.msra.gmra.mrb[6].mxu1 %vm3059_vm9, %v9198_v8  ;;  %v9933_v12 = vunpack.i.l.bf16 %v11564_v57 }
 0x3dc   : > { %v11571_v9 = vpop.permute.xlu0 %9951  ;;  %9330 = vmatpush1.bf16.msra.mxu1 %v9329_v4  ;;  %4562 = vmatprep.mubr.f32.mxu1 %v12920_v0  ;;  %v9934_v4 = vunpack.i.h.bf16 %v11564_v57  ;;  %v4645_v57 = vsel %vm4633_vm5, %v9928_v16, %v9929_v34  ;;  %v4918_v34 = vsel %vm4910_vm1, %v9943_v36, %v9944_v50 }
 0x3dd   : > { %9332 = vmatprep.subr.bf16.mxu1 %v9331_v5  ;;  %v4638_v5 = vsel %vm4633_vm5, %v9919_v17, %v9923_v55  ;;  %v9339_v27 = vpack.c.bf16 %v4645_v57, %v4639_v54  ;;  %v9954_v17 = vunpack.i.h.bf16 %v11571_v9  ;;  %v9953_v55 = vunpack.i.l.bf16 %v11571_v9 }
 0x3de   : > { %v9947_v53 = vpop.permute.xlu1 %9946  ;;  %v4912_v2 = vsel %vm4910_vm1, %v9933_v12, %v9934_v4  ;;  %vm5187_vm5 = vcmask 359424  }
 0x3df   : > { %9201 = vmatmul.mubr.msk.f32.vlgmr.msra.gmra.mrb[8].mxu1 %vm3059_vm9, %v9198_v8  ;;  %v9949_v47 = vunpack.i.h.bf16 %v9947_v53  ;;  %v9948_v6 = vunpack.i.l.bf16 %v9947_v53  ;;  %v9341_v53 = vpack.c.bf16 %v4644_v61, %v4638_v5  ;;  %v9206_v61 = vld [vmem:[%s12888_s4 + $0x38] sm:$0xff] }
 0x3e0   : > { %v11581_v59 = vpop.permute.xlu0 %9956  ;;  %9334 = vmatpush1.bf16.msra.mxu1 %v9333_v18  ;;  %4725 = vmatprep.mubr.f32.mxu1 %v12920_v0 }
 0x3e1   : > { %9336 = vmatprep.subr.bf16.mxu1 %v9335_v35  ;;  %v4911_v35 = vsel %vm4910_vm1, %v9948_v6, %v9933_v12  ;;  %v4917_v54 = vsel %vm4910_vm1, %v9949_v47, %v9943_v36  ;;  %v9959_v9 = vunpack.i.h.bf16 %v11581_v59  ;;  %v9958_v12 = vunpack.i.l.bf16 %v11581_v59 }
 0x3e2   : > { %v9962_v8 = vpop.permute.xlu1 %9961  ;;  %v9345_v5 = vpack.c.bf16 %v4917_v54, %v4911_v35  ;;  %v4914_v36 = vsel %vm4910_vm1, %v9953_v55, %v9954_v17 }
 0x3e3   : > { %9203 = vmatmul.mubr.msk.f32.vlgmr.msra.gmra.mrb[4].mxu1 %vm3059_vm9, %v9202_v3  ;;  %v9964_v43 = vunpack.i.h.bf16 %v9962_v8  ;;  %v9963_v21 = vunpack.i.l.bf16 %v9962_v8  ;;  %v9343_v8 = vpack.c.bf16 %v4918_v34, %v4912_v2  ;;  %v4916_v35 = vsel %vm4910_vm1, %v9958_v12, %v9959_v9 }
 0x3e4   : > { %v11596_v18 = vpop.permute.xlu0 %9971  ;;  %9338 = vmatpush1.bf16.msra.mxu1 %v9337_v58  ;;  %4796 = vmatprep.mubr.f32.mxu1 %v12920_v0 }
 0x3e5   : > { %9340 = vmatprep.subr.bf16.mxu1 %v9339_v27  ;;  %v4920_v45 = vsel %vm4910_vm1, %v9963_v21, %v9964_v43  ;;  %v4919_v47 = vsel %vm4910_vm1, %v9944_v50, %v9963_v21  ;;  %v9973_v21 = vunpack.i.l.bf16 %v11596_v18 }
 0x3e6   : > { %v9967_v23 = vpop.permute.xlu1 %9966  ;;  %v9347_v6 = vpack.c.bf16 %v4920_v45, %v4914_v36 }
 0x3e7   : > { %9204 = vmatmul.mubr.msk.f32.vlgmr.msra.gmra.mrb[6].mxu1 %vm3059_vm9, %v9202_v3  ;;  %v9969_v58 = vunpack.i.h.bf16 %v9967_v23  ;;  %v9968_v57 = vunpack.i.l.bf16 %v9967_v23  ;;  %v4913_v23 = vsel %vm4910_vm1, %v9934_v4, %v9953_v55  ;;  %v4915_v55 = vsel %vm4910_vm1, %v9954_v17, %v9958_v12 }
 0x3e8   : > { %v9982_v62 = vpop.permute.xlu0 %9981  ;;  %9342 = vmatpush1.bf16.msra.mxu1 %v9341_v53  ;;  %4867 = vmatprep.mubr.f32.mxu1 %v12920_v0  ;;  %v9349_v34 = vpack.c.bf16 %v4919_v47, %v4913_v23 }
 0x3e9   : > { %9344 = vmatprep.subr.bf16.mxu1 %v9343_v8  ;;  %v4922_v59 = vsel %vm4910_vm1, %v9968_v57, %v9969_v58  ;;  %v4921_v54 = vsel %vm4910_vm1, %v9964_v43, %v9968_v57  ;;  %vm8895_vm1 = vcmask 654852  }
 0x3ea   : > { %v11609_v16 = vpop.permute.xlu1 %9976  ;;  %v9351_v8 = vpack.c.bf16 %v4922_v59, %v4916_v35  ;;  %v9353_v43 = vpack.c.bf16 %v4921_v54, %v4915_v55 }
 0x3eb   : > { %9205 = vmatmul.mubr.msk.f32.vlgmr.msra.gmra.mrb[8].mxu1 %vm3059_vm9, %v9202_v3  ;;  %v9979_v27 = vunpack.i.h.bf16 %v11609_v16  ;;  %v9978_v2 = vunpack.i.l.bf16 %v11609_v16  ;;  %v9974_v3 = vunpack.i.h.bf16 %v11596_v18  ;;  %v9984_v16 = vunpack.i.h.bf16 %v9982_v62 }
 0x3ec   : > { %9346 = vmatpush1.bf16.msra.mxu1 %v9345_v5  ;;  %5002 = vmatprep.mubr.f32.mxu1 %v12920_v0  ;;  %v9997_v50 = vpop.permute.xlu0 %9996  ;;  %v9983_v18 = vunpack.i.l.bf16 %v9982_v62 }
 0x3ed   : > { %9348 = vmatprep.subr.bf16.mxu1 %v9347_v6  ;;  %v5195_v4 = vsel %vm5187_vm5, %v9978_v2, %v9979_v27  ;;  %v9999_v9 = vunpack.i.h.bf16 %v9997_v50  ;;  %v9998_v36 = vunpack.i.l.bf16 %v9997_v50  ;;  %v5189_v57 = vsel %vm5187_vm5, %v9973_v21, %v9974_v3 }
 0x3ee   : > { %v9987_v53 = vpop.permute.xlu1 %9986  ;;  %v5194_v47 = vsel %vm5187_vm5, %v9984_v16, %v9978_v2  ;;  %v9355_v59 = vpack.c.bf16 %v5195_v4, %v5189_v57  ;;  %v5188_v62 = vsel %vm5187_vm5, %v9983_v18, %v9973_v21 }
 0x3ef   : > { %9207 = vmatmul.mubr.msk.f32.vlgmr.msra.gmra.mrb[4].mxu1 %vm3059_vm9, %v9206_v61  ;;  %v9989_v45 = vunpack.i.h.bf16 %v9987_v53  ;;  %v9988_v58 = vunpack.i.l.bf16 %v9987_v53  ;;  %v5197_v35 = vsel %vm5187_vm5, %v9998_v36, %v9999_v9  ;;  %v5196_v4 = vsel %vm5187_vm5, %v9979_v27, %v9998_v36 }
 0x3f0   : > { %9350 = vmatpush1.bf16.msra.mxu1 %v9349_v34  ;;  %5073 = vmatprep.mubr.f32.mxu1 %v12920_v0  ;;  %v10002_v6 = vpop.permute.xlu0 %10001  ;;  %v9357_v34 = vpack.c.bf16 %v5194_v47, %v5188_v62 }
 0x3f1   : > { %9352 = vmatprep.subr.bf16.mxu1 %v9351_v8  ;;  %v5191_v17 = vsel %vm5187_vm5, %v9988_v58, %v9989_v45  ;;  %v10004_v12 = vunpack.i.h.bf16 %v10002_v6  ;;  %v10003_v50 = vunpack.i.l.bf16 %v10002_v6  ;;  %v5190_v2 = vsel %vm5187_vm5, %v9974_v3, %v9988_v58  ;;  %v9210_v8 = vld [vmem:[%s12888_s4 + $0x40] sm:$0xff] }
 0x3f2   : > { %v9992_v5 = vpop.permute.xlu1 %9991  ;;  %v9359_v54 = vpack.c.bf16 %v5197_v35, %v5191_v17  ;;  %v9361_v55 = vpack.c.bf16 %v5196_v4, %v5190_v2 }
 0x3f3   : > { %9208 = vmatmul.mubr.msk.f32.vlgmr.msra.gmra.mrb[6].mxu1 %vm3059_vm9, %v9206_v61  ;;  %v9994_v23 = vunpack.i.h.bf16 %v9992_v5  ;;  %v9993_v53 = vunpack.i.l.bf16 %v9992_v5  ;;  %v5199_v16 = vsel %vm5187_vm5, %v10003_v50, %v10004_v12  ;;  %v5198_v58 = vsel %vm5187_vm5, %v9999_v9, %v10003_v50 }
 0x3f4   : > { %9354 = vmatpush1.bf16.msra.mxu1 %v9353_v43  ;;  %5144 = vmatprep.mubr.f32.mxu1 %v12920_v0  ;;  %v11664_v9 = vpop.permute.xlu0 %10006 }
 0x3f5   : > { %9356 = vmatprep.subr.bf16.mxu1 %v9355_v59  ;;  %v5193_v21 = vsel %vm5187_vm5, %v9993_v53, %v9994_v23  ;;  %v5192_v3 = vsel %vm5187_vm5, %v9989_v45, %v9993_v53  ;;  %12984 = vst [vmem:[#allocation16_spill] sm:$0xff] %v11664_v9  ;;  %v10009_v47 = vunpack.i.h.bf16 %v11664_v9  ;;  %v12919_v6 = vunpack.i.l.bf16 %v11664_v9 }
 0x3f6   : > { %v9365_v18 = vpack.c.bf16 %v5198_v58, %v5192_v3  ;;  %vm8913_vm5 = vcmask 752640  }
 0x3f7   : > { %9209 = vmatmul.mubr.msk.f32.vlgmr.msra.gmra.mrb[8].mxu1 %vm3059_vm9, %v9206_v61  ;;  %v9363_v61 = vpack.c.bf16 %v5199_v16, %v5193_v21  ;;  %v5858_v17 = vsel %vm906_vm13, %v12919_v6, %v10009_v47  ;;  %v10366_v6 = vld [vmem:[#allocation2 + $0x38] sm:$0xff] }
 0x3f8   : > { %9358 = vmatpush1.bf16.msra.mxu1 %v9357_v34  ;;  %5279 = vmatprep.mubr.f32.mxu1 %v12920_v0 }
 0x3f9   : > { %9360 = vmatprep.subr.bf16.mxu1 %v9359_v54 }
 0x3fb   : > { %9211 = vmatmul.mubr.msk.f32.vlgmr.msra.gmra.mrb[4].mxu1 %vm3059_vm9, %v9210_v8 }
 0x3fc   : > { %9362 = vmatpush1.bf16.msra.mxu1 %v9361_v55  ;;  %5350 = vmatprep.mubr.f32.mxu1 %v12920_v0 }
 0x3fd   : > { %9364 = vmatprep.subr.bf16.mxu1 %v9363_v61 }
 0x3ff   : > { %9212 = vmatmul.mubr.msk.f32.vlgmr.msra.gmra.mrb[6].mxu1 %vm3059_vm9, %v9210_v8 }
 0x400   : > { %9366 = vmatpush1.bf16.msra.mxu1 %v9365_v18  ;;  %5421 = vmatprep.mubr.f32.mxu1 %v12920_v0 }
 0x403   : > { %v5438_v27 = vpop.permute.xlu1 %5437  ;;  %9213 = vmatmul.mubr.msk.f32.vlgmr.msra.gmra.mrb[8].mxu1 %vm3059_vm9, %v9210_v8  ;;  %vm5601_vm9 = vcmask 195584  }
 0x404   : > { %5669 = vmatprep.mubr.f32.mxu1 %v12920_v0  ;;  %v10145_v0 = vpack.i.bf16 %v10366_v6, %v10367_v52  ;;  %v10370_v52 = vld [vmem:[#allocation2 + $0x30] sm:$0xff]  ;;  %v10371_v6 = vld [vmem:[#allocation2 + $0x28] sm:$0xff] }
 0x407   : > { %v11656_v45 = vpop.permute.xlu1 %10016 }
 0x40b   : > { %v11658_v5 = vpop.permute.xlu1 %10026 }
 0x40f   : > { %v11660_v36 = vpop.permute.xlu1 %10036 }
 0x413   : > { %v11662_v43 = vpop.permute.xlu1 %10051 }
 0x417   : > { %v11666_v57 = vpop.permute.xlu1 %10061 }
 0x41b   : > { %v11670_v59 = vpop.permute.xlu1 %10066 }
 0x41c   : > { %12985 = vst [vmem:[#allocation17_spill] sm:$0xff] %v11670_v59  ;;  %v10069_v23 = vunpack.i.h.bf16 %v11670_v59  ;;  %v12918_v53 = vunpack.i.l.bf16 %v11670_v59 }
 0x41e   : > { %v5863_v62 = vsel %vm906_vm13, %v12918_v53, %v10069_v23  ;;  %v9387_v12 = vpack.c.bf16 %v10069_v23, %v10009_v47 }
 0x41f   : > { %v9389_v50 = vpack.c.bf16 %v5863_v62, %v5858_v17 }
 0x420   : > { %9388 = vmatprep.subr.bf16.mxu0 %v9387_v12 }
 0x421   : > { %9390 = vmatpush1.bf16.msra.mxu0 %v9389_v50 }
 0x4ce   : > { %v5281_v34 = vpop.f32.mrb[4].mxu1 }
 0x4cf   : > { %v5440_v35 = vadd.f32 %v5438_v27, %v5281_v34  ;;  %v5283_v2 = vpop.f32.mrb[5].mxu1 }
 0x4d0   : > { %v5441_v54 = vadd.f32 %v5438_v27, %v5283_v2 }
 0x4d1   : > { %v5446_v8 = vmax.f32 %v5440_v35, 0.0 }
 0x4d2   : > { %v5447_v21 = vmax.f32 %v5441_v54, 0.0  ;;  %v5352_v4 = vpop.f32.mrb[6].mxu1 }
 0x4d3   : > { %v5452_v55 = vmul.f32 %v5446_v8, %v11115_v22  ;;  %v5442_v16 = vadd.f32 %v5438_v27, %v5352_v4  ;;  %v5354_v3 = vpop.f32.mrb[7].mxu1  ;;  %v12991_v22 = vpack.i.bf16 %v10777_v10, %v10790_v14  ;;  %v12996_v10 = vpack.i.bf16 %v10826_v31, %v10828_v32 }
 0x4d4   : > { %v5453_v61 = vmul.f32 %v5447_v21, %v11117_v37  ;;  %v5443_v58 = vadd.f32 %v5438_v27, %v5354_v3  ;;  %v11694_v21 = vpack.i.bf16 %v11408_v51, %v11327_v1  ;;  %v10359_v1 = vld [vmem:[#allocation2 + $0x60] sm:$0xff] }
 0x4d5   : > { %v5448_v18 = vmax.f32 %v5442_v16, 0.0  ;;  %5464 = vrot.lane.b32.xlu1 %v5452_v55, %s12980_s23  ;;  %v11709_v51 = vpack.i.bf16 %v10359_v1, %v11396_v19  ;;  %v10360_v1 = vld [vmem:[#allocation2 + $0x10] sm:$0xff] }
 0x4d6   : > { %v5449_v47 = vmax.f32 %v5443_v58, 0.0  ;;  %5466 = vrot.lane.b32.xlu0 %v5453_v61, %s12980_s23  ;;  %v5423_v23 = vpop.f32.mrb[8].mxu1 }
 0x4d7   : > { %v5454_v17 = vmul.f32 %v5448_v18, %v11122_v46  ;;  %v5444_v62 = vadd.f32 %v5438_v27, %v5423_v23  ;;  %v5425_v12 = vpop.f32.mrb[9].mxu1 }
 0x4d8   : > { %v5455_v50 = vmul.f32 %v5449_v47, %v11125_v49  ;;  %v5445_v34 = vadd.f32 %v5438_v27, %v5425_v12  ;;  %v11719_v27 = vpop.permute.xlu0 %10011 }
 0x4d9   : > { %v5450_v35 = vmax.f32 %v5444_v62, 0.0  ;;  %5468 = vrot.lane.b32.xlu1 %v5454_v17, %s12980_s23  ;;  %v10013_v59 = vunpack.i.l.bf16 %v11719_v27 }
 0x4da   : > { %v5451_v2 = vmax.f32 %v5445_v34, 0.0  ;;  %5470 = vrot.lane.b32.xlu0 %v5455_v50, %s12980_s23 }
 0x4db   : > { %v5456_v54 = vmul.f32 %v5450_v35, %v11131_v56 }
 0x4dc   : > { %v5457_v8 = vmul.f32 %v5451_v2, %v11134_v63  ;;  %v11721_v4 = vpop.permute.xlu0 %10021 }
 0x4dd   : > { %5472 = vrot.lane.b32.xlu1 %v5456_v54, %s12980_s23 }
 0x4de   : > { %5474 = vrot.lane.b32.xlu0 %v5457_v8, %s12980_s23 }
 0x4e0   : > { %v11723_v55 = vpop.permute.xlu0 %10031 }
 0x4e1   : > { %10091 = vrot.lane.b32.xlu1 %v11694_v21, %s10480_s27 }
 0x4e2   : > { %10081 = vrot.lane.b32.xlu0 %v11162_v7, %s10480_s27 }
 0x4e4   : > { %v11725_v19 = vpop.permute.xlu0 %10041 }
 0x4e5   : > { %10106 = vrot.lane.b32.xlu1 %v10788_v13, %s10499_s20 }
 0x4e6   : > { %10086 = vrot.lane.b32.xlu0 %v11188_v25, %s10480_s27 }
 0x4e8   : > { %v11727_v16 = vpop.permute.xlu0 %10046 }
 0x4e9   : > { %10121 = vrot.lane.b32.xlu1 %v11694_v21, %s10499_s20 }
 0x4ea   : > { %10096 = vrot.lane.b32.xlu0 %v11192_v11, %s10480_s27 }
 0x4ec   : > { %v11729_v3 = vpop.permute.xlu0 %10056 }
 0x4ee   : > { %10101 = vrot.lane.b32.xlu0 %v11709_v51, %s10480_s27 }
 0x4f0   : > { %v11731_v61 = vpop.permute.xlu0 %10071 }
 0x4f2   : > { %10111 = vrot.lane.b32.xlu0 %v11162_v7, %s10499_s20 }
 0x4f4   : > { %v11733_v58 = vpop.permute.xlu0 %10076 }
 0x4f6   : > { %10116 = vrot.lane.b32.xlu0 %v11188_v25, %s10499_s20 }
 0x4fa   : > { %10126 = vrot.lane.b32.xlu0 %v11192_v11, %s10499_s20 }
 0x547   : > { %v5465_v18 = vpop.permute.xlu1 %5464 }
 0x548   : > { %5487 = vst.msk [vmem:[#allocation2 + $0x70] sm:$0xff] %vm2977_vm2, %v5465_v18  ;;  %v5467_v47 = vpop.permute.xlu0 %5466 }
 0x549   : > { %v11737_v23 = vsel %vm384_vm15, %v5465_v18, %v5467_v47  ;;  %v10361_v18 = vld [vmem:[#allocation2 + $0x8] sm:$0xff] }
 0x54a   : > { %5488 = vst [vmem:[#allocation2 + $0x78] sm:$0xff] %v11737_v23 }
 0x54b   : > { %v5469_v17 = vpop.permute.xlu1 %5468 }
 0x54c   : > { %v11741_v62 = vsel %vm384_vm15, %v5467_v47, %v5469_v17  ;;  %v5471_v12 = vpop.permute.xlu0 %5470  ;;  %v10135_v47 = vpack.i.bf16 %v10360_v1, %v10361_v18  ;;  %v10368_v1 = vld [vmem:[#allocation2 + $0x50] sm:$0xff]  ;;  %v10369_v18 = vld [vmem:[#allocation2 + $0x58] sm:$0xff] }
 0x54d   : > { %5489 = vst [vmem:[#allocation2 + $0x80] sm:$0xff] %v11741_v62  ;;  %v11745_v50 = vsel %vm384_vm15, %v5469_v17, %v5471_v12  ;;  %6133 = vrot.lane.b32.xlu0 %v11741_v62, %s10497_s29  ;;  %v10362_v17 = vld [vmem:[#allocation2 + $0x20] sm:$0xff]  ;;  %v10155_v30 = vpack.i.bf16 %v10369_v18, %v10368_v1 }
 0x54e   : > { %5490 = vst [vmem:[#allocation2 + $0x88] sm:$0xff] %v11745_v50 }
 0x54f   : > { %v5473_v34 = vpop.permute.xlu1 %5472  ;;  %v11750_v35 = vld [vmem:[#allocation2 + $0x70] sm:$0xff] }
 0x550   : > { %v11753_v2 = vsel %vm384_vm15, %v5471_v12, %v5473_v34  ;;  %6129 = vrot.lane.b32.xlu1 %v11750_v35, %s10497_s29  ;;  %v5475_v54 = vpop.permute.xlu0 %5474  ;;  %v10363_v12 = vld [vmem:[#allocation2 + $0x18] sm:$0xff] }
 0x551   : > { %5491 = vst [vmem:[#allocation2 + $0x90] sm:$0xff] %v11753_v2  ;;  %v5480_v8 = vsel %vm384_vm15, %v5473_v34, %v5475_v54  ;;  %6426 = vrot.lane.b32.xlu0 %v11741_v62, %s10498_s24  ;;  %v10150_v34 = vpack.i.bf16 %v10362_v17, %v10363_v12  ;;  %v10364_v54 = vld [vmem:[#allocation2 + $0x40] sm:$0xff]  ;;  %v10160_v17 = vpack.i.bf16 %v10370_v52, %v10371_v6 }
 0x552   : > { %5492 = vst.msk [vmem:[#allocation2 + $0x98] sm:$0xff] %vm2983_vm4, %v5480_v8  ;;  %v10365_v8 = vld [vmem:[#allocation2 + $0x48] sm:$0xff]  ;;  %v11838_v52 = vld [vmem:[#allocation2 + $0xa0] sm:$0xff] }
 0x553   : > { %v10140_v53 = vpack.i.bf16 %v10365_v8, %v10364_v54  ;;  %v10372_v54 = vld [vmem:[#allocation2 + $0x68] sm:$0xff]  ;;  %v10373_v8 = vld [vmem:[#allocation2 + $0x60] sm:$0xff] }
 0x554   : > { %6422 = vrot.lane.b32.xlu1 %v11750_v35, %s10498_s24  ;;  %v10165_v1 = vpack.i.bf16 %v10372_v54, %v10373_v8  ;;  %v11824_v18 = vpop.permute.xlu0 %10081  ;;  %v11860_v54 = vpop.permute.xlu1 %10091 }
 0x555   : > { %6719 = vrot.lane.b32.xlu0 %v11741_v62, %s10480_s27 }
 0x558   : > { %6715 = vrot.lane.b32.xlu1 %v11750_v35, %s10480_s27 }
 0x559   : > { %7012 = vrot.lane.b32.xlu0 %v11741_v62, %s10499_s20  ;;  %v11812_v12 = vld [vmem:[#allocation2 + $0x98] sm:$0xff] }
 0x55c   : > { %7008 = vrot.lane.b32.xlu1 %v11750_v35, %s10499_s20 }
 0x55d   : > { %6135 = vrot.lane.b32.xlu0 %v11745_v50, %s10497_s29 }
 0x560   : > { %6131 = vrot.lane.b32.xlu1 %v11737_v23, %s10497_s29 }
 0x561   : > { %6428 = vrot.lane.b32.xlu0 %v11745_v50, %s10498_s24 }
 0x564   : > { %6424 = vrot.lane.b32.xlu1 %v11737_v23, %s10498_s24 }
 0x565   : > { %6721 = vrot.lane.b32.xlu0 %v11745_v50, %s10480_s27 }
 0x568   : > { %6717 = vrot.lane.b32.xlu1 %v11737_v23, %s10480_s27 }
 0x569   : > { %7014 = vrot.lane.b32.xlu0 %v11745_v50, %s10499_s20 }
 0x56c   : > { %7010 = vrot.lane.b32.xlu1 %v11737_v23, %s10499_s20 }
 0x56d   : > { %5850 = vrot.lane.b32.xlu0 %v11753_v2, %s10496_s18 }
 0x570   : > { %10136 = vrot.lane.b32.xlu1 %v10135_v47, %s12986_s30 }
 0x571   : > { %10131 = vrot.lane.b32.xlu0 %v11709_v51, %s10499_s20 }
 0x574   : > { %10151 = vrot.lane.b32.xlu1 %v10150_v34, %s12986_s30 }
 0x575   : > { %10141 = vrot.lane.b32.xlu0 %v10140_v53, %s12986_s30 }
 0x578   : > { %7349 = vrot.lane.b32.xlu1 %v11737_v23, %s12986_s30 }
 0x579   : > { %10146 = vrot.lane.b32.xlu0 %v10145_v0, %s12986_s30 }
 0x57c   : > { %6137 = vrot.lane.b32.xlu1 %v11753_v2, %s10497_s29 }
 0x57d   : > { %10156 = vrot.lane.b32.xlu0 %v10155_v30, %s12986_s30 }
 0x580   : > { %6430 = vrot.lane.b32.xlu1 %v11753_v2, %s10498_s24 }
 0x581   : > { %7351 = vrot.lane.b32.xlu0 %v11741_v62, %s12986_s30 }
 0x584   : > { %6723 = vrot.lane.b32.xlu1 %v11753_v2, %s10480_s27 }
 0x585   : > { %10161 = vrot.lane.b32.xlu0 %v10160_v17, %s12986_s30 }
 0x588   : > { %7016 = vrot.lane.b32.xlu1 %v11753_v2, %s10499_s20 }
 0x589   : > { %7353 = vrot.lane.b32.xlu0 %v11745_v50, %s12986_s30 }
 0x58c   : > { %5852 = vrot.lane.b32.xlu1 %v11812_v12, %s10496_s18 }
 0x58d   : > { %10171 = vrot.lane.b32.xlu0 %v10788_v13, %s12987_s22 }
 0x590   : > { %7347 = vrot.lane.b32.xlu1 %v11750_v35, %s12986_s30 }
 0x591   : > { %10181 = vrot.lane.b32.xlu0 %v10135_v47, %s12972_s11  ;;  %v11832_v47 = vpop.permute.xlu0 %10086 }
 0x594   : > { %10166 = vrot.lane.b32.xlu1 %v10165_v1, %s12986_s30 }
 0x595   : > { %10191 = vrot.lane.b32.xlu0 %v11188_v25, %s12987_s22  ;;  %v11841_v6 = vpop.permute.xlu0 %10096 }
 0x598   : > { %7355 = vrot.lane.b32.xlu1 %v11753_v2, %s12986_s30 }
 0x599   : > { %10201 = vrot.lane.b32.xlu0 %v11694_v21, %s12987_s22  ;;  %v11848_v21 = vpop.permute.xlu0 %10101 }
 0x59c   : > { %10176 = vrot.lane.b32.xlu1 %v11162_v7, %s12987_s22 }
 0x59d   : > { %5558 = vrot.lane.b32.xlu0 %v11737_v23, %s12987_s22 }
 0x5a0   : > { %6139 = vrot.lane.b32.xlu1 %v11812_v12, %s10497_s29  ;;  %s12988_s29 = smov 65  }
 0x5a1   : > { %10211 = vrot.lane.b32.xlu0 %v10150_v34, %s12972_s11  ;;  %v11855_v34 = vpop.permute.xlu0 %10111 }
 0x5a4   : > { %7359 = vrot.lane.b32.xlu1 %v11838_v52, %s12986_s30 }
 0x5a5   : > { %7651 = vrot.lane.b32.xlu0 %v11737_v23, %s12972_s11 }
 0x5a8   : > { %10186 = vrot.lane.b32.xlu1 %v10140_v53, %s12972_s11  ;;  %v11864_v53 = vpop.permute.xlu0 %10116 }
 0x5a9   : > { %5556 = vrot.lane.b32.xlu0 %v11750_v35, %s12987_s22 }
 0x5ac   : > { %10196 = vrot.lane.b32.xlu1 %v10145_v0, %s12972_s11  ;;  %v11868_v0 = vpop.permute.xlu1 %10106  ;;  %v11874_v8 = vpop.permute.xlu0 %10126 }
 0x5ad   : > { %5562 = vrot.lane.b32.xlu0 %v11745_v50, %s12987_s22 }
 0x5b0   : > { %6432 = vrot.lane.b32.xlu1 %v11812_v12, %s10498_s24  ;;  %s10509_s24 = smov 16  }
 0x5b1   : > { %10221 = vrot.lane.b32.xlu0 %v10160_v17, %s12972_s11 }
 0x5b4   : > { %10206 = vrot.lane.b32.xlu1 %v11192_v11, %s12987_s22  ;;  %v11879_v11 = vpop.permute.xlu1 %10121 }
 0x5b5   : > { %7655 = vrot.lane.b32.xlu0 %v11745_v50, %s12972_s11 }
 0x5b8   : > { %5560 = vrot.lane.b32.xlu1 %v11741_v62, %s12987_s22 }
 0x5b9   : > { %10231 = vrot.lane.b32.xlu0 %v11709_v51, %s12987_s22 }
 0x5bc   : > { %10216 = vrot.lane.b32.xlu1 %v10155_v30, %s12972_s11 }
 0x5bd   : > { %10241 = vrot.lane.b32.xlu0 %v11162_v7, %s10496_s18 }
 0x5bf   : > { %v11881_v17 = vpop.permute.xlu0 %6133 }
 0x5c0   : > { %7653 = vrot.lane.b32.xlu1 %v11741_v62, %s12972_s11 }
 0x5c1   : > { %7661 = vrot.lane.b32.xlu0 %v11838_v52, %s12972_s11 }
 0x5c2   : > { %v11887_v33 = vpop.permute.xlu1 %6129 }
 0x5c3   : > { %v11889_v51 = vpop.permute.xlu0 %6426 }
 0x5c4   : > { %6725 = vrot.lane.b32.xlu1 %v11812_v12, %s10480_s27 }
 0x5c5   : > { %10251 = vrot.lane.b32.xlu0 %v10250_v39, %s12988_s29  ;;  %v10374_v39 = vld [vmem:[#allocation2 + $0x50] sm:$0xff] }
 0x5c6   : > { %v11897_v30 = vpop.permute.xlu1 %6422  ;;  %v10265_v63 = vpack.i.bf16 %v10374_v39, %v10375_v48 }
 0x5c7   : > { %v11899_v7 = vpop.permute.xlu0 %6719 }
 0x5c8   : > { %7649 = vrot.lane.b32.xlu1 %v11750_v35, %s12972_s11 }
 0x5c9   : > { %7357 = vrot.lane.b32.xlu0 %v11812_v12, %s12986_s30  ;;  %s10513_s30 = smov 32  }
 0x5ca   : > { %v11905_v24 = vpop.permute.xlu1 %6715 }
 0x5cb   : > { %v11907_v15 = vpop.permute.xlu0 %7012 }
 0x5cc   : > { %5564 = vrot.lane.b32.xlu1 %v11753_v2, %s12987_s22 }
 0x5cd   : > { %10256 = vrot.lane.b32.xlu0 %v11188_v25, %s10496_s18 }
 0x5ce   : > { %v11913_v38 = vpop.permute.xlu1 %7008 }
 0x5cf   : > { %v11915_v20 = vpop.permute.xlu0 %6135 }
 0x5d0   : > { %10226 = vrot.lane.b32.xlu1 %v10165_v1, %s12972_s11 }
 0x5d1   : > { %10266 = vrot.lane.b32.xlu0 %v10265_v63, %s10496_s18  ;;  %v12989_v63 = vpack.i.bf16 %v11210_v42, %v11208_v40 }
 0x5d2   : > { %v11919_v56 = vpop.permute.xlu1 %6131 }
 0x5d3   : > { %v11921_v49 = vpop.permute.xlu0 %6428 }
 0x5d4   : > { %7018 = vrot.lane.b32.xlu1 %v11812_v12, %s10499_s20  ;;  %s10511_s20 = smov 20  }
 0x5d5   : > { %5846 = vrot.lane.b32.xlu0 %v11741_v62, %s10496_s18 }
 0x5d6   : > { %v11927_v25 = vpop.permute.xlu1 %6424 }
 0x5d7   : > { %v11929_v46 = vpop.permute.xlu0 %6721 }
 0x5d8   : > { %7657 = vrot.lane.b32.xlu1 %v11753_v2, %s12972_s11 }
 0x5d9   : > { %10276 = vrot.lane.b32.xlu0 %v12989_v63, %s12988_s29 }
 0x5da   : > { %v11937_v48 = vpop.permute.xlu1 %6717 }
 0x5db   : > { %v11939_v1 = vpop.permute.xlu0 %7014 }
 0x5dc   : > { %10236 = vrot.lane.b32.xlu1 %v10788_v13, %s10496_s18  ;;  %v12993_v13 = vpack.i.bf16 %v11176_v60, %v11194_v26  ;;  %v12999_v60 = vpack.i.bf16 %v10816_v28, %v10818_v29  ;;  %v10019_v29 = vunpack.i.h.bf16 %v11656_v45 }
 0x5dd   : > { %7955 = vrot.lane.b32.xlu0 %v11741_v62, %s12988_s29 }
 0x5de   : > { %v11945_v39 = vpop.permute.xlu1 %7010 }
 0x5df   : > { %v11947_v37 = vpop.permute.xlu0 %5850 }
 0x5e0   : > { %12990 = vst [vmem:[#allocation18_spill] sm:$0xff] %v11947_v37  ;;  %10246 = vrot.lane.b32.xlu1 %v12991_v22, %s12988_s29 }
 0x5e1   : > { %7951 = vrot.lane.b32.xlu0 %v11750_v35, %s12988_s29 }
 0x5e2   : > { %v11955_v40 = vpop.permute.xlu1 %10136 }
 0x5e3   : > { %12992 = vst [vmem:[#allocation19_spill] sm:$0xff] %v11955_v40  ;;  %v11957_v42 = vpop.permute.xlu0 %10131 }
 0x5e4   : > { %10261 = vrot.lane.b32.xlu1 %v12993_v13, %s12988_s29 }
 0x5e5   : > { %7957 = vrot.lane.b32.xlu0 %v11745_v50, %s12988_s29 }
 0x5e6   : > { %v11965_v62 = vpop.permute.xlu1 %10151 }
 0x5e7   : > { %12994 = vst [vmem:[#allocation20_spill] sm:$0xff] %v11965_v62  ;;  %v11967_v63 = vpop.permute.xlu0 %10141 }
 0x5e8   : > { %12995 = vst [vmem:[#allocation21_spill] sm:$0xff] %v11967_v63  ;;  %5844 = vrot.lane.b32.xlu1 %v11737_v23, %s10496_s18 }
 0x5e9   : > { %10281 = vrot.lane.b32.xlu0 %v12996_v10, %s12988_s29 }
 0x5ea   : > { %v11975_v14 = vpop.permute.xlu1 %7349 }
 0x5eb   : > { %12997 = vst [vmem:[#allocation22_spill] sm:$0xff] %v11975_v14  ;;  %v11977_v22 = vpop.permute.xlu0 %10146  ;;  %v10024_v14 = vunpack.i.h.bf16 %v11721_v4 }
 0x5ec   : > { %12998 = vst [vmem:[#allocation23_spill] sm:$0xff] %v11977_v22  ;;  %10271 = vrot.lane.b32.xlu1 %v12999_v60, %s12988_s29  ;;  %v10018_v60 = vunpack.i.l.bf16 %v11656_v45  ;;  %v10028_v22 = vunpack.i.l.bf16 %v11658_v5 }
 0x5ed   : > { %7961 = vrot.lane.b32.xlu0 %v11812_v12, %s12988_s29 }
 0x5ee   : > { %v11985_v26 = vpop.permute.xlu1 %6137  ;;  %v6147_v45 = vsel %vm1148_vm3, %v10018_v60, %v10019_v29 }
 0x5ef   : > { %v11987_v13 = vpop.permute.xlu0 %10156 }
 0x5f0   : > { %13000 = vst [vmem:[#allocation24_spill] sm:$0xff] %v11987_v13  ;;  %7953 = vrot.lane.b32.xlu1 %v11737_v23, %s12988_s29  ;;  %v10014_v23 = vunpack.i.h.bf16 %v11719_v27  ;;  %v10073_v13 = vunpack.i.l.bf16 %v11731_v61 }
 0x5f2   : > { %v11991_v31 = vpop.permute.xlu1 %6430  ;;  %v6142_v40 = vsel %vm1148_vm3, %v10013_v59, %v10014_v23 }
 0x5f3   : > { %v11993_v32 = vpop.permute.xlu0 %7351 }
 0x5f4   : > { %13001 = vst [vmem:[#allocation25_spill] sm:$0xff] %v11993_v32  ;;  %7659 = vrot.lane.b32.xlu1 %v11812_v12, %s12972_s11  ;;  %v10023_v32 = vunpack.i.l.bf16 %v11721_v4  ;;  %v12023_v4 = vld [vmem:[%s12890_s6] sm:$0xff]  ;;  %s13029_s11 = smov 48  }
 0x5f5   : > { %13004 = vst [vmem:[#allocation28_spill] sm:$0xff] %v12023_v4 }
 0x5f6   : > { %v11997_v10 = vpop.permute.xlu1 %6723 }
 0x5f7   : > { %v11999_v28 = vpop.permute.xlu0 %10161 }
 0x5f8   : > { %13002 = vst [vmem:[#allocation26_spill] sm:$0xff] %v11999_v28  ;;  %5566 = vrot.lane.b32.xlu1 %v11812_v12, %s12987_s22  ;;  %v6146_v28 = vsel %vm1148_vm3, %v10024_v14, %v10018_v60  ;;  %v10074_v12 = vunpack.i.h.bf16 %v11731_v61  ;;  %v9391_v14 = vpack.c.bf16 %v6147_v45, %v6142_v40  ;;  %v10029_v61 = vunpack.i.h.bf16 %v11658_v5  ;;  %s10514_s22 = smov 4  }
 0x5f9   : > { %v6152_v40 = vsel %vm1148_vm3, %v11919_v56, %v11881_v17  ;;  %v6148_v45 = vsel %vm1148_vm3, %v10019_v29, %v10073_v13  ;;  %v10034_v29 = vunpack.i.h.bf16 %v11723_v55 }
 0x5fa   : > { %v12007_v9 = vpop.permute.xlu1 %7016  ;;  %v6149_v5 = vsel %vm1148_vm3, %v10073_v13, %v10074_v12 }
 0x5fb   : > { %v12011_v62 = vpop.permute.xlu0 %7353 }
 0x5fc   : > { %13003 = vst [vmem:[#allocation27_spill] sm:$0xff] %v12011_v62  ;;  %5842 = vrot.lane.b32.xlu1 %v11750_v35, %s10496_s18  ;;  %v6141_v62 = vsel %vm1148_vm3, %v10023_v32, %v10013_v59  ;;  %v13005_v32 = vmov 0.0  }
 0x5fd   : > { %v9393_v63 = vpack.c.bf16 %v6146_v28, %v6141_v62  ;;  %v6144_v62 = vsel %vm1148_vm3, %v10028_v22, %v10029_v61  ;;  %v6143_v28 = vsel %vm1148_vm3, %v10014_v23, %v10028_v22  ;;  %v8223_v22 = vld [vmem:[%s12891_s7] sm:$0xff] }
 0x5fe   : > { %v5853_v27 = vpop.permute.xlu1 %5852  ;;  %v9395_v13 = vpack.c.bf16 %v6149_v5, %v6144_v62  ;;  %8226 = vperm.xlu0 %10290, %v8223_v22   ;;  %v10039_v62 = vunpack.i.h.bf16 %v11660_v36 }
 0x5ff   : > { %6036 = vmatprep.subr.mxu0 %v5853_v27  ;;  %v5868_v35 = vsel %vm906_vm13, %v11947_v37, %v5853_v27  ;;  %v12028_v60 = vpop.permute.xlu0 %10171  ;;  %v6151_v27 = vsel %vm1148_vm3, %v11887_v33, %v11919_v56  ;;  %v13006_v33 = vpack.i.bf16 %v11212_v44, %v11216_v41  ;;  %v6154_v56 = vsel %vm1148_vm3, %v11915_v20, %v11985_v26 }
 0x600   : > { %5848 = vrot.lane.b32.xlu1 %v11745_v50, %s10496_s18  ;;  %6037 = vmatpush1.msra.mxu0 %v5868_v35  ;;  %v10033_v35 = vunpack.i.l.bf16 %v11723_v55  ;;  %v6150_v55 = vsel %vm1148_vm3, %v10074_v12, %v10034_v29  ;;  %v10038_v44 = vunpack.i.l.bf16 %v11660_v36  ;;  %v6153_v41 = vsel %vm1148_vm3, %v11881_v17, %v11915_v20  ;;  %s12944_s18 = smov 52  }
 0x601   : > { %9392 = vmatprep.subr.bf16.mxu0 %v9391_v14  ;;  %9220 = vmatmul.mubr.msk.f32.vlgmr.msra.gmra.mrb[4].mxu0 %vm5601_vm9, %v12023_v4  ;;  %v10044_v12 = vunpack.i.h.bf16 %v11725_v19  ;;  %v10048_v17 = vunpack.i.l.bf16 %v11727_v16 }
 0x602   : > { %v12036_v59 = vpop.permute.xlu1 %7347  ;;  %9394 = vmatpush1.bf16.msra.mxu0 %v9393_v63  ;;  %6241 = vmatprep.mubr.f32.mxu0 %v13005_v32  ;;  %v12052_v63 = vld [vmem:[%s12890_s6 + $0x10] sm:$0xff]  ;;  %v9399_v5 = vpack.c.bf16 %v10034_v29, %v10033_v35  ;;  %v10173_v29 = vunpack.i.l.bf16 %v12028_v60 }
 0x603   : > { %6181 = vmatprep.subr.mxu0 %v6152_v40  ;;  %v12044_v50 = vpop.permute.xlu0 %10181 }
 0x604   : > { %7959 = vrot.lane.b32.xlu1 %v11753_v2, %s12988_s29  ;;  %v9397_v2 = vpack.c.bf16 %v6148_v45, %v6143_v28  ;;  %v6145_v45 = vsel %vm1148_vm3, %v10029_v61, %v10033_v35  ;;  %v12942_v61 = vunpack.i.h.bf16 %v12028_v60 }
 0x606   : > { %v12060_v14 = vpop.permute.xlu1 %10166  ;;  %6182 = vmatpush1.msra.mxu0 %v6151_v27  ;;  %v10043_v27 = vunpack.i.l.bf16 %v11725_v19 }
 0x607   : > { %9396 = vmatprep.subr.bf16.mxu0 %v9395_v13  ;;  %9222 = vmatmul.mubr.msk.f32.vlgmr.msra.gmra.mrb[6].mxu0 %vm5601_vm9, %v12052_v63  ;;  %v10192_v40 = vpop.permute.xlu0 %10191  ;;  %v9401_v13 = vpack.c.bf16 %v6150_v55, %v6145_v45 }
 0x608   : > { %10286 = vrot.lane.b32.xlu1 %v13006_v33, %s12988_s29  ;;  %9398 = vmatpush1.bf16.msra.mxu0 %v9397_v2  ;;  %v10193_v36 = vunpack.i.l.bf16 %v10192_v40  ;;  %v10194_v35 = vunpack.i.h.bf16 %v10192_v40  ;;  %v6435_v2 = vsel %vm1396_vm7, %v10038_v44, %v10039_v62  ;;  %v10049_v33 = vunpack.i.h.bf16 %v11727_v16 }
 0x609   : > { %6252 = vmatprep.subr.mxu0 %v6154_v56  ;;  %6312 = vmatprep.mubr.f32.mxu0 %v13005_v32  ;;  %v6434_v56 = vsel %vm1396_vm7, %v10048_v17, %v10038_v44  ;;  %v6440_v55 = vsel %vm1396_vm7, %v10043_v27, %v10044_v12  ;;  %v10053_v17 = vunpack.i.l.bf16 %v11662_v43 }
 0x60a   : > { %v12076_v23 = vpop.permute.xlu1 %7355  ;;  %v5568_v45 = vsel %vm665_vm6, %v10193_v36, %v10173_v29  ;;  %v9403_v44 = vpack.c.bf16 %v6440_v55, %v6435_v2  ;;  %v10078_v36 = vunpack.i.l.bf16 %v11733_v58 }
 0x60b   : > { %v12084_v28 = vpop.permute.xlu0 %10201 }
 0x60c   : > { %7963 = vrot.lane.b32.xlu1 %v11838_v52, %s12988_s29  ;;  %6253 = vmatpush1.msra.mxu0 %v6153_v41  ;;  %v5569_v41 = vsel %vm665_vm6, %v10173_v29, %v12942_v61  ;;  %s12948_s29 = smov 28  }
 0x60d   : > { %9400 = vmatprep.subr.bf16.mxu0 %v9399_v5  ;;  %9223 = vmatmul.mubr.msk.f32.vlgmr.msra.gmra.mrb[8].mxu0 %vm5601_vm9, %v12052_v63 }
 0x60e   : > { %v12095_v20 = vpop.permute.xlu1 %10176  ;;  %9402 = vmatpush1.bf16.msra.mxu0 %v9401_v13  ;;  %6383 = vmatprep.mubr.f32.mxu0 %v13005_v32  ;;  %v10054_v13 = vunpack.i.h.bf16 %v11662_v43  ;;  %v6445_v43 = vsel %vm1396_vm7, %v11927_v25, %v11889_v51 }
 0x60f   : > { %v10179_v19 = vunpack.i.h.bf16 %v12095_v20  ;;  %v10178_v52 = vunpack.i.l.bf16 %v12095_v20  ;;  %v12101_v22 = vpop.permute.xlu0 %5558 }
 0x611   : > { %v5573_v5 = vsel %vm665_vm6, %v10194_v35, %v10178_v52  ;;  %v5574_v40 = vsel %vm665_vm6, %v10178_v52, %v10179_v19  ;;  %v10079_v35 = vunpack.i.h.bf16 %v11733_v58  ;;  %v6439_v52 = vsel %vm1396_vm7, %v10049_v33, %v10043_v27 }
 0x612   : > { %v6140_v4 = vpop.permute.xlu1 %6139  ;;  %v9367_v16 = vpack.c.bf16 %v5574_v40, %v5569_v41  ;;  %v9369_v37 = vpack.c.bf16 %v5573_v5, %v5568_v45  ;;  %v9405_v5 = vpack.c.bf16 %v6439_v52, %v6434_v56  ;;  %v6437_v58 = vsel %vm1396_vm7, %v10053_v17, %v10054_v13 }
 0x613   : > { %6323 = vmatprep.subr.mxu0 %v6140_v4  ;;  %v6155_v29 = vsel %vm1148_vm3, %v11985_v26, %v6140_v4  ;;  %v12120_v61 = vpop.permute.xlu0 %10211  ;;  %v6442_v26 = vsel %vm1396_vm7, %v10078_v36, %v10079_v35  ;;  %v6441_v27 = vsel %vm1396_vm7, %v10044_v12, %v10078_v36  ;;  %v6444_v56 = vsel %vm1396_vm7, %v11897_v30, %v11927_v25 }
 0x614   : > { %9368 = vmatprep.subr.bf16.mxu1 %v9367_v16  ;;  %6324 = vmatpush1.msra.mxu0 %v6155_v29  ;;  %v9407_v55 = vpack.c.bf16 %v6442_v26, %v6437_v58  ;;  %v10058_v12 = vunpack.i.l.bf16 %v11729_v3  ;;  %v6447_v40 = vsel %vm1396_vm7, %v11921_v49, %v11991_v31  ;;  %v10088_v36 = vunpack.i.l.bf16 %v11832_v47 }
 0x615   : > { %9370 = vmatpush1.bf16.msra.mxu1 %v9369_v37  ;;  %9404 = vmatprep.subr.bf16.mxu0 %v9403_v44  ;;  %v6436_v37 = vsel %vm1396_vm7, %v10039_v62, %v10053_v17  ;;  %v10059_v62 = vunpack.i.h.bf16 %v11729_v3  ;;  %v10084_v44 = vunpack.i.h.bf16 %v11824_v18  ;;  %v10083_v3 = vunpack.i.l.bf16 %v11824_v18 }
 0x616   : > { %v12123_v2 = vpop.permute.xlu1 %7359  ;;  %9224 = vmatmul.mubr.msk.f32.vlgmr.msra.gmra.mrb[4].mxu0 %vm5601_vm9, %v12052_v63  ;;  %v9225_v63 = vld [vmem:[%s12890_s6 + $0x18] sm:$0xff]  ;;  %v9409_v45 = vpack.c.bf16 %v6441_v27, %v6436_v37  ;;  %v6438_v30 = vsel %vm1396_vm7, %v10054_v13, %v10058_v12  ;;  %v10089_v17 = vunpack.i.h.bf16 %v11832_v47  ;;  %v6446_v52 = vsel %vm1396_vm7, %v11889_v51, %v11921_v49 }
 0x617   : > { %9406 = vmatpush1.bf16.msra.mxu0 %v9405_v5  ;;  %6534 = vmatprep.mubr.f32.mxu0 %v13005_v32  ;;  %v12133_v4 = vpop.permute.xlu0 %7651  ;;  %v6443_v25 = vsel %vm1396_vm7, %v10079_v35, %v10059_v62  ;;  %v9411_v13 = vpack.c.bf16 %v10059_v62, %v10058_v12  ;;  %v10064_v35 = vunpack.i.h.bf16 %v11666_v57  ;;  %v10063_v5 = vunpack.i.l.bf16 %v11666_v57 }
 0x618   : > { %6474 = vmatprep.subr.mxu0 %v6445_v43  ;;  %v9413_v43 = vpack.c.bf16 %v6443_v25, %v6438_v30  ;;  %v6732_v47 = vsel %vm1644_vm8, %v10089_v17, %v10083_v3  ;;  %v6733_v49 = vsel %vm1644_vm8, %v10083_v3, %v10084_v44  ;;  %v10094_v57 = vunpack.i.h.bf16 %v11860_v54 }
 0x619   : > { %v6727_v18 = vsel %vm1644_vm8, %v10088_v36, %v10063_v5  ;;  %v10099_v26 = vunpack.i.h.bf16 %v11841_v6  ;;  %v10098_v37 = vunpack.i.l.bf16 %v11841_v6  ;;  %v6728_v27 = vsel %vm1644_vm8, %v10063_v5, %v10064_v35 }
 0x61a   : > { %v12140_v33 = vpop.permute.xlu1 %10186  ;;  %v9415_v62 = vpack.c.bf16 %v6733_v49, %v6728_v27  ;;  %v9417_v12 = vpack.c.bf16 %v6732_v47, %v6727_v18  ;;  %v10203_v30 = vunpack.i.l.bf16 %v12084_v28  ;;  %v12225_v47 = vld [vmem:[%s12890_s6 + $0x8] sm:$0xff]  ;;  %vm8683_vm3 = vcmask 519552  }
 0x61b   : > { %6475 = vmatpush1.msra.mxu0 %v6444_v56  ;;  %v12145_v41 = vpop.permute.xlu0 %5556  ;;  %v10093_v56 = vunpack.i.l.bf16 %v11860_v54  ;;  %v6738_v54 = vsel %vm1644_vm8, %v11937_v48, %v11899_v7 }
 0x61c   : > { %9408 = vmatprep.subr.bf16.mxu0 %v9407_v55  ;;  %9226 = vmatmul.mubr.msk.f32.vlgmr.msra.gmra.mrb[6].mxu0 %vm5601_vm9, %v9225_v63 }
 0x61d   : > { %9410 = vmatpush1.bf16.msra.mxu0 %v9409_v45  ;;  %6605 = vmatprep.mubr.f32.mxu0 %v13005_v32  ;;  %v6729_v49 = vsel %vm1644_vm8, %v10064_v35, %v10093_v56 }
 0x61e   : > { %6545 = vmatprep.subr.mxu0 %v6447_v40  ;;  %v12156_v16 = vpop.permute.xlu1 %10196  ;;  %v10204_v40 = vunpack.i.h.bf16 %v12084_v28  ;;  %v7033_v28 = vsel %vm1892_vm10, %v11939_v1, %v12007_v9 }
 0x61f   : > { %v12162_v29 = vpop.permute.xlu0 %5562 }
 0x621   : > { %6546 = vmatpush1.msra.mxu0 %v6446_v52  ;;  %v6734_v52 = vsel %vm1644_vm8, %v10084_v44, %v10098_v37  ;;  %v6737_v44 = vsel %vm1644_vm8, %v11905_v24, %v11937_v48 }
 0x622   : > { %9412 = vmatprep.subr.bf16.mxu0 %v9411_v13  ;;  %v6433_v58 = vpop.permute.xlu1 %6432  ;;  %9227 = vmatmul.mubr.msk.f32.vlgmr.msra.gmra.mrb[8].mxu0 %vm5601_vm9, %v9225_v63  ;;  %v9421_v27 = vpack.c.bf16 %v6734_v52, %v6729_v49 }
 0x623   : > { %9414 = vmatpush1.bf16.msra.mxu0 %v9413_v43  ;;  %6676 = vmatprep.mubr.f32.mxu0 %v13005_v32  ;;  %v12174_v51 = vpop.permute.xlu0 %10221  ;;  %v6448_v45 = vsel %vm1396_vm7, %v11991_v31, %v6433_v58  ;;  %v6735_v31 = vsel %vm1644_vm8, %v10098_v37, %v10099_v26  ;;  %v5571_v43 = vsel %vm665_vm6, %v10203_v30, %v10204_v40  ;;  %v13007_v37 = vunpack.i.h.bf16 %v12028_v60 }
 0x624   : > { %6616 = vmatprep.subr.mxu0 %v6433_v58  ;;  %v5578_v58 = vsel %vm665_vm6, %v12145_v41, %v12101_v22  ;;  %v10103_v41 = vunpack.i.l.bf16 %v11848_v21  ;;  %vm8695_vm7 = vcmask 650752  }
 0x625   : > { %v5570_v24 = vsel %vm665_vm6, %v13007_v37, %v10203_v30  ;;  %v10118_v30 = vunpack.i.l.bf16 %v11864_v53 }
 0x626   : > { %v12181_v55 = vpop.permute.xlu1 %10206  ;;  %v6731_v60 = vsel %vm1644_vm8, %v10094_v57, %v10103_v41 }
 0x627   : > { %v10209_v25 = vunpack.i.h.bf16 %v12181_v55  ;;  %v10208_v3 = vunpack.i.l.bf16 %v12181_v55  ;;  %6617 = vmatpush1.msra.mxu0 %v6448_v45  ;;  %v12190_v6 = vpop.permute.xlu0 %7655 }
 0x628   : > { %9416 = vmatprep.subr.bf16.mxu0 %v9415_v62  ;;  %9228 = vmatmul.mubr.msk.f32.vlgmr.msra.gmra.mrb[4].mxu0 %vm5601_vm9, %v9225_v63  ;;  %v6730_v63 = vsel %vm1644_vm8, %v10093_v56, %v10094_v57  ;;  %v10114_v56 = vunpack.i.h.bf16 %v11855_v34  ;;  %v6739_v57 = vsel %vm1644_vm8, %v11899_v7, %v11929_v46 }
 0x629   : > { %9418 = vmatpush1.bf16.msra.mxu0 %v9417_v12  ;;  %6827 = vmatprep.mubr.f32.mxu0 %v13005_v32  ;;  %v5576_v17 = vsel %vm665_vm6, %v10208_v3, %v10209_v25  ;;  %v5575_v13 = vsel %vm665_vm6, %v10179_v19, %v10208_v3  ;;  %v9419_v20 = vpack.c.bf16 %v6735_v31, %v6730_v63  ;;  %v9229_v19 = vld [vmem:[%s12890_s6 + $0x20] sm:$0xff]  ;;  %v10113_v12 = vunpack.i.l.bf16 %v11855_v34 }
 0x62a   : > { %6767 = vmatprep.subr.mxu0 %v6738_v54  ;;  %v12200_v36 = vpop.permute.xlu1 %5560  ;;  %v9371_v18 = vpack.c.bf16 %v5576_v17, %v5571_v43  ;;  %v9373_v45 = vpack.c.bf16 %v5575_v13, %v5570_v24  ;;  %v10119_v54 = vunpack.i.h.bf16 %v11864_v53  ;;  %v10109_v31 = vunpack.i.h.bf16 %v11868_v0 }
 0x62b   : > { %v5579_v5 = vsel %vm665_vm6, %v12101_v22, %v12200_v36  ;;  %v10104_v22 = vunpack.i.h.bf16 %v11848_v21  ;;  %v12235_v62 = vpop.permute.xlu0 %10231  ;;  %v6740_v21 = vsel %vm1644_vm8, %v11929_v46, %v11997_v10  ;;  %v10108_v17 = vunpack.i.l.bf16 %v11868_v0 }
 0x62c   : > { %5609 = vmatprep.subr.mxu1 %v5579_v5  ;;  %v7026_v46 = vsel %vm1892_vm10, %v10113_v12, %v10114_v56  ;;  %v7025_v7 = vsel %vm1892_vm10, %v10119_v54, %v10113_v12  ;;  %v10129_v13 = vunpack.i.h.bf16 %v11874_v8  ;;  %v10128_v0 = vunpack.i.l.bf16 %v11874_v8 }
 0x62d   : > { %6768 = vmatpush1.msra.mxu0 %v6737_v44  ;;  %5610 = vmatpush1.msra.mxu1 %v5578_v58  ;;  %v6736_v35 = vsel %vm1644_vm8, %v10099_v26, %v10104_v22  ;;  %v9423_v26 = vpack.c.bf16 %v10104_v22, %v10103_v41  ;;  %v7020_v52 = vsel %vm1892_vm10, %v10118_v30, %v10108_v17  ;;  %v10124_v58 = vunpack.i.h.bf16 %v11879_v11 }
 0x62e   : > { %9420 = vmatprep.subr.bf16.mxu0 %v9419_v20  ;;  %v12233_v48 = vpop.permute.xlu1 %10216  ;;  %9372 = vmatprep.subr.bf16.mxu1 %v9371_v18  ;;  %v9425_v63 = vpack.c.bf16 %v6736_v35, %v6731_v60  ;;  %v7021_v43 = vsel %vm1892_vm10, %v10108_v17, %v10109_v31  ;;  %v10123_v44 = vunpack.i.l.bf16 %v11879_v11  ;;  %v9429_v49 = vpack.c.bf16 %v7025_v7, %v7020_v52 }
 0x62f   : > { %9230 = vmatmul.mubr.msk.f32.vlgmr.msra.gmra.mrb[6].mxu0 %vm5601_vm9, %v9229_v19  ;;  %9215 = vmatmul.mubr.msk.f32.vlgmr.msra.gmra.mrb[10].mxu1 %vm5601_vm9, %v12225_v47  ;;  %v12258_v34 = vpop.permute.xlu0 %10241  ;;  %v9427_v20 = vpack.c.bf16 %v7026_v46, %v7021_v43  ;;  %v7028_v8 = vsel %vm1892_vm10, %v10128_v0, %v10129_v13  ;;  %v10233_v41 = vunpack.i.l.bf16 %v12235_v62  ;;  %v7031_v11 = vsel %vm1892_vm10, %v11945_v39, %v11907_v15  ;;  %v13010_v46 = vld [vmem:[#allocation19_spill] sm:$0xff] }
 0x630   : > { %9422 = vmatpush1.bf16.msra.mxu0 %v9421_v27  ;;  %9374 = vmatpush1.bf16.msra.mxu1 %v9373_v45  ;;  %v7027_v37 = vsel %vm1892_vm10, %v10114_v56, %v10128_v0  ;;  %v7023_v24 = vsel %vm1892_vm10, %v10123_v44, %v10124_v58  ;;  %v10133_v60 = vunpack.i.l.bf16 %v11957_v42  ;;  %v7030_v35 = vsel %vm1892_vm10, %v11913_v38, %v11945_v39 }
 0x631   : > { %6838 = vmatprep.subr.mxu0 %v6740_v21  ;;  %6898 = vmatprep.mubr.f32.mxu0 %v13005_v32  ;;  %v9431_v45 = vpack.c.bf16 %v7028_v8, %v7023_v24  ;;  %v10134_v21 = vunpack.i.h.bf16 %v11957_v42  ;;  %v5572_v30 = vsel %vm665_vm6, %v10204_v40, %v10233_v41  ;;  %v5580_v38 = vsel %vm665_vm6, %v12200_v36, %v12162_v29  ;;  %v13009_v36 = vld [vmem:[#allocation23_spill] sm:$0xff] }
 0x632   : > { %v12249_v3 = vpop.permute.xlu1 %7653  ;;  %5740 = vmatprep.mubr.f32.mxu1 %v13005_v32  ;;  %v7024_v40 = vsel %vm1892_vm10, %v10124_v58, %v10133_v60  ;;  %v10149_v17 = vunpack.i.h.bf16 %v13009_v36  ;;  %v7032_v52 = vsel %vm1892_vm10, %v11907_v15, %v11939_v1  ;;  %v10139_v7 = vunpack.i.h.bf16 %v13010_v46 }
 0x633   : > { %v12274_v22 = vpop.permute.xlu0 %7661 }
 0x634   : > { %6839 = vmatpush1.msra.mxu0 %v6739_v57 }
 0x635   : > { %9424 = vmatprep.subr.bf16.mxu0 %v9423_v26  ;;  %9231 = vmatmul.mubr.msk.f32.vlgmr.msra.gmra.mrb[8].mxu0 %vm5601_vm9, %v9229_v19  ;;  %v13008_v26 = vld [vmem:[#allocation21_spill] sm:$0xff] }
 0x636   : > { %9426 = vmatpush1.bf16.msra.mxu0 %v9425_v63  ;;  %v6726_v53 = vpop.permute.xlu1 %6725  ;;  %6969 = vmatprep.mubr.f32.mxu0 %v13005_v32  ;;  %v10148_v63 = vunpack.i.l.bf16 %v13009_v36 }
 0x637   : > { %6909 = vmatprep.subr.mxu0 %v6726_v53  ;;  %v6741_v5 = vsel %vm1644_vm8, %v11997_v10, %v6726_v53  ;;  %v10234_v10 = vunpack.i.h.bf16 %v12235_v62  ;;  %v9233_v62 = vld [vmem:[%s12890_s6 + $0x28] sm:$0xff]  ;;  %v12306_v54 = vpop.permute.xlu0 %10251  ;;  %v9435_v53 = vpack.c.bf16 %v10134_v21, %v10133_v60  ;;  %v13013_v60 = vld [vmem:[#allocation25_spill] sm:$0xff] }
 0x639   : > { %v5577_v12 = vsel %vm665_vm6, %v10209_v25, %v10234_v10  ;;  %v9375_v39 = vpack.c.bf16 %v10234_v10, %v10233_v41  ;;  %v7029_v25 = vsel %vm1892_vm10, %v10129_v13, %v10134_v21  ;;  %v10138_v13 = vunpack.i.l.bf16 %v13010_v46 }
 0x63a   : > { %6910 = vmatpush1.msra.mxu0 %v6741_v5  ;;  %v12272_v18 = vpop.permute.xlu1 %7649  ;;  %v9377_v57 = vpack.c.bf16 %v5577_v12, %v5572_v30  ;;  %v9437_v43 = vpack.c.bf16 %v7029_v25, %v7024_v40  ;;  %v10189_v46 = vunpack.i.h.bf16 %v12140_v33 }
 0x63b   : > { %9428 = vmatprep.subr.bf16.mxu0 %v9427_v20  ;;  %9232 = vmatmul.mubr.msk.f32.vlgmr.msra.gmra.mrb[4].mxu0 %vm5601_vm9, %v9229_v19  ;;  %v7022_v19 = vsel %vm1892_vm10, %v10109_v31, %v10123_v44  ;;  %v10144_v31 = vunpack.i.h.bf16 %v13008_v26  ;;  %v12332_v0 = vpop.permute.xlu0 %7357  ;;  %v7361_v1 = vsel %vm2156_vm11, %v10148_v63, %v10138_v13  ;;  %v13011_v44 = vld [vmem:[#allocation24_spill] sm:$0xff]  ;;  %v7362_v10 = vsel %vm2156_vm11, %v10138_v13, %v10139_v7 }
 0x63c   : > { %9430 = vmatpush1.bf16.msra.mxu0 %v9429_v49  ;;  %7120 = vmatprep.mubr.f32.mxu0 %v13005_v32  ;;  %v9433_v42 = vpack.c.bf16 %v7027_v37, %v7022_v19  ;;  %v10159_v20 = vunpack.i.h.bf16 %v13011_v44  ;;  %v10158_v49 = vunpack.i.l.bf16 %v13011_v44  ;;  %v13012_v37 = vld [vmem:[#allocation20_spill] sm:$0xff]  ;;  %v10184_v44 = vunpack.i.h.bf16 %v12044_v50 }
 0x63d   : > { %7060 = vmatprep.subr.mxu0 %v7031_v11  ;;  %v10154_v24 = vunpack.i.h.bf16 %v13012_v37  ;;  %v10153_v19 = vunpack.i.l.bf16 %v13012_v37  ;;  %v10219_v37 = vunpack.i.h.bf16 %v12233_v48 }
 0x63e   : > { %v12287_v27 = vpop.permute.xlu1 %5564  ;;  %v7369_v30 = vsel %vm2156_vm11, %v10144_v31, %v10158_v49 }
 0x63f   : > { %v5581_v56 = vsel %vm665_vm6, %v12162_v29, %v12287_v27  ;;  %v10143_v29 = vunpack.i.l.bf16 %v13008_v26 }
 0x640   : > { %7061 = vmatpush1.msra.mxu0 %v7030_v35  ;;  %5680 = vmatprep.subr.mxu1 %v5581_v56  ;;  %v13014_v35 = vld [vmem:[#allocation22_spill] sm:$0xff] }
 0x641   : > { %9432 = vmatprep.subr.bf16.mxu0 %v9431_v45  ;;  %9234 = vmatmul.mubr.msk.f32.vlgmr.msra.gmra.mrb[6].mxu0 %vm5601_vm9, %v9233_v62  ;;  %v7368_v15 = vsel %vm2156_vm11, %v10143_v29, %v10144_v31  ;;  %v7367_v58 = vsel %vm2156_vm11, %v10149_v17, %v10143_v29  ;;  %v12348_v45 = vpop.permute.xlu0 %10256  ;;  %v7374_v56 = vsel %vm2156_vm11, %v13014_v35, %v13013_v60  ;;  %v13016_v17 = vld [vmem:[#allocation27_spill] sm:$0xff] }
 0x642   : > { %9434 = vmatpush1.bf16.msra.mxu0 %v9433_v42  ;;  %5681 = vmatpush1.msra.mxu1 %v5580_v38  ;;  %v12315_v55 = vpop.permute.xlu1 %10226  ;;  %v9439_v11 = vpack.c.bf16 %v7368_v15, %v7362_v10  ;;  %v9441_v21 = vpack.c.bf16 %v7367_v58, %v7361_v1  ;;  %v10169_v42 = vunpack.i.h.bf16 %v12060_v14  ;;  %v10168_v38 = vunpack.i.l.bf16 %v12060_v14 }
 0x643   : > { %7131 = vmatprep.subr.mxu0 %v7033_v28  ;;  %9376 = vmatprep.subr.bf16.mxu1 %v9375_v39  ;;  %v9237_v39 = vld [vmem:[%s12890_s6 + $0x30] sm:$0xff]  ;;  %v7363_v28 = vsel %vm2156_vm11, %v10139_v7, %v10153_v19  ;;  %v7373_v40 = vsel %vm2156_vm11, %v12036_v59, %v13014_v35  ;;  %v7376_v63 = vsel %vm2156_vm11, %v13016_v17, %v12076_v23  ;;  %v10188_v7 = vunpack.i.l.bf16 %v12140_v33 }
 0x644   : > { %9216 = vmatmul.mubr.msk.f32.vlgmr.msra.gmra.mrb[12].mxu1 %vm5601_vm9, %v12225_v47  ;;  %7191 = vmatprep.mubr.f32.mxu0 %v13005_v32  ;;  %v9445_v36 = vpack.c.bf16 %v7369_v30, %v7363_v28  ;;  %v7372_v59 = vsel %vm2156_vm11, %v10168_v38, %v10169_v42  ;;  %v10198_v15 = vunpack.i.l.bf16 %v12156_v16  ;;  %v7375_v1 = vsel %vm2156_vm11, %v13013_v60, %v13016_v17 }
 0x645   : > { %9378 = vmatpush1.bf16.msra.mxu1 %v9377_v57  ;;  %5811 = vmatprep.mubr.f32.mxu1 %v13005_v32  ;;  %v13015_v57 = vld [vmem:[#allocation26_spill] sm:$0xff]  ;;  %v12371_v29 = vpop.permute.xlu0 %10266  ;;  %v7377_v60 = vsel %vm2156_vm11, %v12076_v23, %v12332_v0  ;;  %v10224_v23 = vunpack.i.h.bf16 %v12174_v51  ;;  %v10229_v28 = vunpack.i.h.bf16 %v12315_v55 }
 0x646   : > { %7132 = vmatpush1.msra.mxu0 %v7032_v52  ;;  %v7019_v5 = vpop.permute.xlu1 %7018  ;;  %v10164_v26 = vunpack.i.h.bf16 %v13015_v57  ;;  %v10163_v31 = vunpack.i.l.bf16 %v13015_v57  ;;  %v7371_v52 = vsel %vm2156_vm11, %v10159_v20, %v10168_v38  ;;  %v12438_v57 = vld [vmem:[%s12890_s6 + $0x38] sm:$0xff] }
 0x647   : > { %9436 = vmatprep.subr.bf16.mxu0 %v9435_v53  ;;  %9235 = vmatmul.mubr.msk.f32.vlgmr.msra.gmra.mrb[8].mxu0 %vm5601_vm9, %v9233_v62  ;;  %v7034_v41 = vsel %vm1892_vm10, %v12007_v9, %v7019_v5  ;;  %v7370_v9 = vsel %vm2156_vm11, %v10158_v49, %v10159_v20  ;;  %v10183_v20 = vunpack.i.l.bf16 %v12044_v50  ;;  %vm8722_vm10 = vcmask 850944  }
 0x648   : > { %9438 = vmatpush1.bf16.msra.mxu0 %v9437_v43  ;;  %7262 = vmatprep.mubr.f32.mxu0 %v13005_v32  ;;  %v7365_v53 = vsel %vm2156_vm11, %v10154_v24, %v10163_v31  ;;  %v10199_v43 = vunpack.i.h.bf16 %v12156_v16  ;;  %v7378_v16 = vsel %vm2156_vm11, %v12332_v0, %v12123_v2  ;;  %v10213_v2 = vunpack.i.l.bf16 %v12120_v61 }
 0x649   : > { %7202 = vmatprep.subr.mxu0 %v7019_v5  ;;  %v7366_v5 = vsel %vm2156_vm11, %v10163_v31, %v10164_v26  ;;  %v12395_v49 = vpop.permute.xlu0 %5846  ;;  %v9449_v33 = vpack.c.bf16 %v7371_v52, %v7365_v53  ;;  %v7663_v50 = vsel %vm2407_vm12, %v10198_v15, %v10183_v20  ;;  %v10223_v0 = vunpack.i.l.bf16 %v12174_v51 }
 0x64a   : > { %v12341_v8 = vpop.permute.xlu1 %7657  ;;  %v9447_v58 = vpack.c.bf16 %v7372_v59, %v7366_v5  ;;  %v7665_v51 = vsel %vm2407_vm12, %v10184_v44, %v10213_v2  ;;  %v7675_v26 = vsel %vm2407_vm12, %v12272_v18, %v12133_v4  ;;  %v10258_v15 = vunpack.i.l.bf16 %v12348_v45 }
 0x64b   : > { %v7668_v52 = vsel %vm2407_vm12, %v10223_v0, %v10224_v23 }
 0x64c   : > { %7203 = vmatpush1.msra.mxu0 %v7034_v41  ;;  %v7670_v41 = vsel %vm2407_vm12, %v10188_v7, %v10189_v46 }
 0x64d   : > { %9440 = vmatprep.subr.bf16.mxu0 %v9439_v11  ;;  %9236 = vmatmul.mubr.msk.f32.vlgmr.msra.gmra.mrb[4].mxu0 %vm5601_vm9, %v9233_v62  ;;  %v7364_v62 = vsel %vm2156_vm11, %v10153_v19, %v10154_v24  ;;  %v7669_v11 = vsel %vm2407_vm12, %v10199_v43, %v10188_v7  ;;  %v10218_v24 = vunpack.i.l.bf16 %v12233_v48  ;;  %v7664_v19 = vsel %vm2407_vm12, %v10183_v20, %v10184_v44 }
 0x64e   : > { %9442 = vmatpush1.bf16.msra.mxu0 %v9441_v21  ;;  %v12354_v12 = vpop.permute.xlu1 %10236  ;;  %7464 = vmatprep.mubr.f32.mxu0 %v13005_v32  ;;  %v9443_v25 = vpack.c.bf16 %v7370_v9, %v7364_v62  ;;  %v10214_v21 = vunpack.i.h.bf16 %v12120_v61  ;;  %v9451_v35 = vpack.c.bf16 %v7670_v41, %v7664_v19  ;;  %v9453_v30 = vpack.c.bf16 %v7669_v11, %v7663_v50 }
 0x64f   : > { %7404 = vmatprep.subr.mxu0 %v7374_v56  ;;  %v12415_v56 = vpop.permute.xlu0 %10276  ;;  %v7676_v48 = vsel %vm2407_vm12, %v12133_v4, %v12249_v3  ;;  %v7672_v61 = vsel %vm2407_vm12, %v10218_v24, %v10219_v37  ;;  %v7671_v42 = vsel %vm2407_vm12, %v10189_v46, %v10218_v24  ;;  %v10244_v62 = vunpack.i.h.bf16 %v12258_v34 }
 0x650   : > { %v7666_v38 = vsel %vm2407_vm12, %v10213_v2, %v10214_v21  ;;  %v9457_v17 = vpack.c.bf16 %v7671_v42, %v7665_v51  ;;  %v10238_v59 = vunpack.i.l.bf16 %v12354_v12  ;;  %v7678_v4 = vsel %vm2407_vm12, %v12190_v6, %v12341_v8 }
 0x651   : > { %v9455_v31 = vpack.c.bf16 %v7672_v61, %v7666_v38  ;;  %v10254_v46 = vunpack.i.h.bf16 %v12306_v54  ;;  %v10253_v7 = vunpack.i.l.bf16 %v12306_v54  ;;  %v10259_v43 = vunpack.i.h.bf16 %v12348_v45 }
 0x652   : > { %7405 = vmatpush1.msra.mxu0 %v7373_v40  ;;  %v12373_v14 = vpop.permute.xlu1 %10246  ;;  %v10228_v40 = vunpack.i.l.bf16 %v12315_v55  ;;  %v7667_v55 = vsel %vm2407_vm12, %v10214_v21, %v10223_v0  ;;  %v7677_v44 = vsel %vm2407_vm12, %v12249_v3, %v12190_v6  ;;  %v10269_v50 = vunpack.i.h.bf16 %v12371_v29  ;;  %v13019_v0 = vld [vmem:[#allocation17_spill] sm:$0xff] }
 0x653   : > { %9444 = vmatprep.subr.bf16.mxu0 %v9443_v25  ;;  %9238 = vmatmul.mubr.msk.f32.vlgmr.msra.gmra.mrb[6].mxu0 %vm5601_vm9, %v9237_v39  ;;  %v10268_v11 = vunpack.i.l.bf16 %v12371_v29  ;;  %v5854_v45 = vsel %vm906_vm13, %v10258_v15, %v10238_v59  ;;  %v7972_v3 = vsel %vm2658_vm14, %v10253_v7, %v10254_v46  ;;  %v13020_v42 = vunpack.i.l.bf16 %v13019_v0 }
 0x654   : > { %9446 = vmatpush1.bf16.msra.mxu0 %v9445_v36  ;;  %7535 = vmatprep.mubr.f32.mxu0 %v13005_v32  ;;  %v12444_v36 = vpop.permute.xlu0 %7955  ;;  %v7674_v53 = vsel %vm2407_vm12, %v10228_v40, %v10229_v28  ;;  %v7673_v5 = vsel %vm2407_vm12, %v10219_v37, %v10228_v40  ;;  %v10279_v51 = vunpack.i.h.bf16 %v12415_v56  ;;  %vm8725_vm11 = vcmask 913152  }
 0x655   : > { %7475 = vmatprep.subr.mxu0 %v7376_v63  ;;  %v10239_v63 = vunpack.i.h.bf16 %v12354_v12  ;;  %v9461_v24 = vpack.c.bf16 %v7673_v5, %v7667_v55  ;;  %v5862_v38 = vsel %vm906_vm13, %v10269_v50, %v13020_v42 }
 0x656   : > { %v12385_v13 = vpop.permute.xlu1 %10261 }
 0x657   : > { %v10264_v20 = vunpack.i.h.bf16 %v12385_v13  ;;  %v5855_v41 = vsel %vm906_vm13, %v10238_v59, %v10239_v63 }
 0x658   : > { %7476 = vmatpush1.msra.mxu0 %v7375_v1  ;;  %v10249_v1 = vunpack.i.h.bf16 %v12373_v14  ;;  %v7952_v37 = vpop.permute.xlu0 %7951 }
 0x659   : > { %9448 = vmatprep.subr.bf16.mxu0 %v9447_v58  ;;  %9239 = vmatmul.mubr.msk.f32.vlgmr.msra.gmra.mrb[8].mxu0 %vm5601_vm9, %v9237_v39  ;;  %v10248_v58 = vunpack.i.l.bf16 %v12373_v14 }
 0x65a   : > { %9450 = vmatpush1.bf16.msra.mxu0 %v9449_v33  ;;  %v12401_v10 = vpop.permute.xlu1 %5844  ;;  %7606 = vmatprep.mubr.f32.mxu0 %v13005_v32  ;;  %v10263_v33 = vunpack.i.l.bf16 %v12385_v13 }
 0x65b   : > { %7546 = vmatprep.subr.mxu0 %v7378_v16  ;;  %v9459_v16 = vpack.c.bf16 %v7674_v53, %v7668_v52  ;;  %v7966_v21 = vsel %vm2658_vm14, %v10248_v58, %v10249_v1  ;;  %v5865_v28 = vsel %vm906_vm13, %v12401_v10, %v12395_v49  ;;  %v13021_v52 = vld [vmem:[#allocation18_spill] sm:$0xff] }
 0x65c   : > { %v7965_v2 = vsel %vm2658_vm14, %v10263_v33, %v10248_v58  ;;  %v9463_v40 = vpack.c.bf16 %v7972_v3, %v7966_v21 }
 0x65e   : > { %7547 = vmatpush1.msra.mxu0 %v7377_v60  ;;  %v12417_v9 = vpop.permute.xlu1 %10271  ;;  %v7971_v60 = vsel %vm2658_vm14, %v10264_v20, %v10253_v7 }
 0x65f   : > { %9452 = vmatprep.subr.bf16.mxu0 %v9451_v35  ;;  %9240 = vmatmul.mubr.msk.f32.vlgmr.msra.gmra.mrb[4].mxu0 %vm5601_vm9, %v9237_v39  ;;  %v10243_v39 = vunpack.i.l.bf16 %v12258_v34  ;;  %v10274_v35 = vunpack.i.h.bf16 %v12417_v9 }
 0x660   : > { %9454 = vmatpush1.bf16.msra.mxu0 %v9453_v30  ;;  %7766 = vmatprep.mubr.f32.mxu0 %v13005_v32  ;;  %v10273_v30 = vunpack.i.l.bf16 %v12417_v9 }
 0x661   : > { %7706 = vmatprep.subr.mxu0 %v7676_v48  ;;  %v5860_v12 = vsel %vm906_vm13, %v10243_v39, %v10244_v62  ;;  %v5859_v19 = vsel %vm906_vm13, %v10259_v43, %v10243_v39 }
 0x662   : > { %v12433_v25 = vpop.permute.xlu1 %7953  ;;  %v9379_v13 = vpack.c.bf16 %v5860_v12, %v5855_v41  ;;  %v7968_v34 = vsel %vm2658_vm14, %v10273_v30, %v10274_v35 }
 0x663   : > { %v7977_v7 = vsel %vm2658_vm14, %v7952_v37, %v12433_v25 }
 0x664   : > { %7707 = vmatpush1.msra.mxu0 %v7675_v26  ;;  %v10278_v26 = vunpack.i.l.bf16 %v12415_v56  ;;  %v7978_v56 = vsel %vm2658_vm14, %v12433_v25, %v12444_v36 }
 0x665   : > { %9456 = vmatprep.subr.bf16.mxu0 %v9455_v31  ;;  %9242 = vmatmul.mubr.msk.f32.vlgmr.msra.gmra.mrb[6].mxu0 %vm5601_vm9, %v12438_v57  ;;  %v7958_v31 = vpop.permute.xlu0 %7957 }
 0x666   : > { %9458 = vmatpush1.bf16.msra.mxu0 %v9457_v17  ;;  %v7660_v18 = vpop.permute.xlu1 %7659  ;;  %7837 = vmatprep.mubr.f32.mxu0 %v13005_v32  ;;  %v9465_v17 = vpack.c.bf16 %v7971_v60, %v7965_v2  ;;  %v7974_v53 = vsel %vm2658_vm14, %v10278_v26, %v10279_v51  ;;  %v7973_v12 = vsel %vm2658_vm14, %v10254_v46, %v10278_v26 }
 0x667   : > { %7777 = vmatprep.subr.mxu0 %v7678_v4  ;;  %v7680_v29 = vsel %vm2407_vm12, %v7660_v18, %v12274_v22  ;;  %v13017_v22 = vld [vmem:[#allocation16_spill] sm:$0xff]  ;;  %v7679_v39 = vsel %vm2407_vm12, %v12341_v8, %v7660_v18  ;;  %v5861_v8 = vsel %vm906_vm13, %v10244_v62, %v10269_v50  ;;  %v7967_v62 = vsel %vm2658_vm14, %v10249_v1, %v10273_v30  ;;  %v9245_v18 = vld [vmem:[%s12890_s6 + $0x40] sm:$0xff] }
 0x668   : > { %v13018_v61 = vunpack.i.l.bf16 %v13017_v22  ;;  %v13022_v4 = vld [vmem:[#allocation28_spill] sm:$0xff]  ;;  %v9467_v5 = vpack.c.bf16 %v7974_v53, %v7968_v34  ;;  %v9469_v1 = vpack.c.bf16 %v7973_v12, %v7967_v62  ;;  %v7979_v20 = vsel %vm2658_vm14, %v12444_v36, %v7958_v31  ;;  %v13027_v12 = vld [vmem:[#allocation14_spill] sm:$0xff] }
 0x669   : > { %v10282_v43 = vpop.permute.xlu0 %10281  ;;  %vm8737_vm12 = vcmask 1044352  }
 0x66a   : > { %7778 = vmatpush1.msra.mxu0 %v7677_v44  ;;  %v5567_v14 = vpop.permute.xlu1 %5566  ;;  %v5857_v23 = vsel %vm906_vm13, %v10268_v11, %v13018_v61  ;;  %v10284_v25 = vunpack.i.h.bf16 %v10282_v43  ;;  %v10283_v46 = vunpack.i.l.bf16 %v10282_v43 }
 0x66b   : > { %9460 = vmatprep.subr.bf16.mxu0 %v9459_v16  ;;  %v5582_v6 = vsel %vm665_vm6, %v12287_v27, %v5567_v14  ;;  %9243 = vmatmul.mubr.msk.f32.vlgmr.msra.gmra.mrb[8].mxu0 %vm5601_vm9, %v12438_v57  ;;  %v9381_v27 = vpack.c.bf16 %v5859_v19, %v5854_v45  ;;  %v9383_v55 = vpack.c.bf16 %v5862_v38, %v5857_v23  ;;  %v13023_v38 = vld [vmem:[#allocation10_spill] sm:$0xff]  ;;  %vm8659_vm6 = vcmask 257152  }
 0x66c   : > { %9462 = vmatpush1.bf16.msra.mxu0 %v9461_v24  ;;  %5751 = vmatprep.subr.mxu1 %v5567_v14  ;;  %v7970_v50 = vsel %vm2658_vm14, %v10283_v46, %v10284_v25  ;;  %v8290_v25 = vld [vmem:[#allocation2 + $0x40] sm:$0xff] }
 0x66d   : > { %7848 = vmatprep.subr.mxu0 %v7680_v29  ;;  %5752 = vmatpush1.msra.mxu1 %v5582_v6  ;;  %v7962_v14 = vpop.permute.xlu0 %7961 }
 0x66e   : > { %9380 = vmatprep.subr.bf16.mxu1 %v9379_v13  ;;  %v5843_v48 = vpop.permute.xlu1 %5842  ;;  %9217 = vmatmul.mubr.msk.f32.vlgmr.msra.gmra.mrb[14].mxu1 %vm5601_vm9, %v12225_v47  ;;  %v5856_v47 = vsel %vm906_vm13, %v10239_v63, %v10268_v11 }
 0x66f   : > { %9382 = vmatpush1.bf16.msra.mxu1 %v9381_v27  ;;  %7908 = vmatprep.mubr.f32.mxu0 %v13005_v32  ;;  %v5864_v63 = vsel %vm906_vm13, %v5843_v48, %v12401_v10 }
 0x670   : > { %7849 = vmatpush1.msra.mxu0 %v7679_v39  ;;  %5894 = vmatprep.subr.mxu1 %v5865_v28 }
 0x671   : > { %9464 = vmatprep.subr.bf16.mxu0 %v9463_v40  ;;  %9244 = vmatmul.mubr.msk.f32.vlgmr.msra.gmra.mrb[4].mxu0 %vm5601_vm9, %v12438_v57  ;;  %v9385_v57 = vpack.c.bf16 %v5861_v8, %v5856_v47 }
 0x672   : > { %9466 = vmatpush1.bf16.msra.mxu0 %v9465_v17  ;;  %v5849_v59 = vpop.permute.xlu1 %5848  ;;  %5954 = vmatprep.mubr.f32.mxu1 %v13005_v32 }
 0x673   : > { %8008 = vmatprep.subr.mxu0 %v7978_v56  ;;  %5895 = vmatpush1.msra.mxu1 %v5864_v63  ;;  %v5867_v10 = vsel %vm906_vm13, %v5849_v59, %v13021_v52  ;;  %v5866_v54 = vsel %vm906_vm13, %v12395_v49, %v5849_v59  ;;  %v7969_v49 = vsel %vm2658_vm14, %v10274_v35, %v10283_v46  ;;  %v13026_v56 = vld [vmem:[#allocation13_spill] sm:$0xff]  ;;  %vm8671_vm13 = vcmask 388352  }
 0x674   : > { %9218 = vmatmul.mubr.msk.f32.vlgmr.msra.gmra.mrb[10].mxu1 %vm5601_vm9, %v13022_v4  ;;  %9384 = vmatprep.subr.bf16.mxu1 %v9383_v55  ;;  %v13025_v55 = vld [vmem:[#allocation12_spill] sm:$0xff] }
 0x675   : > { %9386 = vmatpush1.bf16.msra.mxu1 %v9385_v57  ;;  %8068 = vmatprep.mubr.f32.mxu0 %v13005_v32 }
 0x676   : > { %8009 = vmatpush1.msra.mxu0 %v7977_v7  ;;  %5965 = vmatprep.subr.mxu1 %v5867_v10  ;;  %v7960_v15 = vpop.permute.xlu1 %7959 }
 0x677   : > { %9246 = vmatmul.mubr.msk.f32.vlgmr.msra.gmra.mrb[6].mxu0 %vm5601_vm9, %v9245_v18  ;;  %9468 = vmatprep.subr.bf16.mxu0 %v9467_v5  ;;  %v7980_v58 = vsel %vm2658_vm14, %v7958_v31, %v7960_v15  ;;  %v7981_v24 = vsel %vm2658_vm14, %v7960_v15, %v7962_v14  ;;  %v13024_v31 = vld [vmem:[#allocation11_spill] sm:$0xff]  ;;  %v8285_v15 = vld [vmem:[#allocation2 + $0x10] sm:$0xff] }
 0x678   : > { %9470 = vmatpush1.bf16.msra.mxu0 %v9469_v1  ;;  %6025 = vmatprep.mubr.f32.mxu1 %v13005_v32  ;;  %v13028_v5 = vld [vmem:[#allocation15_spill] sm:$0xff] }
 0x679   : > { %5966 = vmatpush1.msra.mxu1 %v5866_v54  ;;  %8079 = vmatprep.subr.mxu0 %v7980_v58  ;;  %v8291_v1 = vld [vmem:[#allocation2 + $0x48] sm:$0xff] }
 0x67a   : > { %9219 = vmatmul.mubr.msk.f32.vlgmr.msra.gmra.mrb[12].mxu1 %vm5601_vm9, %v13022_v4  ;;  %v10287_v44 = vpop.permute.xlu1 %10286  ;;  %8139 = vmatprep.mubr.f32.mxu0 %v13005_v32  ;;  %v8284_v58 = vld [vmem:[#allocation2 + $0x8] sm:$0xff]  ;;  %v10296_v46 = vpack.i.bf16 %v8291_v1, %v8290_v25  ;;  %v8841_v1 = vld [vmem:[%s10702_s21] sm:$0xf0] }
 0x67b   : > { %v10289_v33 = vunpack.i.h.bf16 %v10287_v44  ;;  %v10288_v16 = vunpack.i.l.bf16 %v10287_v44  ;;  %8496 = vmatprep.mubr.f32.mxu1 %v13005_v32  ;;  %v10291_v54 = vpack.i.bf16 %v8285_v15, %v8284_v58  ;;  %v8289_v44 = vld [vmem:[#allocation2 + $0x38] sm:$0xff]  ;;  %v8843_v25 = vrot.slane %v8841_v1, 4 }
 0x67c   : > { %8080 = vmatpush1.msra.mxu0 %v7979_v20  ;;  %v8297_v20 = vld [vmem:[#allocation2 + $0x80] sm:$0xff] }
 0x67d   : > { %v7975_v41 = vsel %vm2658_vm14, %v10279_v51, %v10288_v16  ;;  %9247 = vmatmul.mubr.msk.f32.vlgmr.msra.gmra.mrb[8].mxu0 %vm5601_vm9, %v9245_v18  ;;  %v7976_v11 = vsel %vm2658_vm14, %v10288_v16, %v10289_v33  ;;  %v8227_v21 = vpop.permute.xlu0 %8226  ;;  %v8283_v33 = vld [vmem:[#allocation2] sm:$0xff] }
 0x67e   : > { %v9473_v45 = vpack.c.bf16 %v7975_v41, %v7969_v49  ;;  %v7964_v37 = vpop.permute.xlu1 %7963  ;;  %v9471_v36 = vpack.c.bf16 %v7976_v11, %v7970_v50  ;;  %8210 = vmatprep.mubr.f32.mxu0 %v13005_v32  ;;  %v10301_v16 = vpack.i.bf16 %v8289_v44, %v8283_v33  ;;  %v8296_v49 = vld [vmem:[#allocation2 + $0x78] sm:$0xff]  ;;  %v8649_v33 = vld [vmem:[%s10702_s21] sm:$0xf] }
 0x67f   : > { %v7982_v9 = vsel %vm2658_vm14, %v7962_v14, %v7964_v37  ;;  %v10306_v41 = vpack.i.bf16 %v8297_v20, %v8296_v49  ;;  %v8739_v44 = vld [vmem:[%s10702_s21 + $0x8] sm:$0xf]  ;;  %v8972_v20 = vld [vmem:[%s10702_s21 + $0x8] sm:$0xf0]  ;;  %vm8839_vm14 = vcmask 130052  }
 0x680   : > { %9472 = vmatprep.subr.bf16.mxu0 %v9471_v36  ;;  %v8974_v49 = vrot.slane %v8972_v20, 4 }
 0x681   : > { %9474 = vmatpush1.bf16.msra.mxu0 %v9473_v45 }
 0x682   : > { %8150 = vmatprep.subr.mxu0 %v7982_v9  ;;  %v8295_v9 = vld [vmem:[#allocation2 + $0x70] sm:$0xff] }
 0x685   : > { %8151 = vmatpush1.msra.mxu0 %v7981_v24 }
 0x686   : > { %9248 = vmatmul.mubr.msk.f32.vlgmr.msra.gmra.mrb[4].mxu0 %vm5601_vm9, %v9245_v18  ;;  %vm8916_vm9 = vcmask 786052  }
 0x741   : > { %v5813_v19 = vpop.f32.mrb[14].mxu1 }
 0x742   : > { %v5815_v6 = vpop.f32.mrb[15].mxu1 }
 0x747   : > { %v5956_v3 = vpop.f32.mrb[10].mxu1 }
 0x748   : > { %v5958_v29 = vpop.f32.mrb[11].mxu1 }
 0x74a   : > { %v8070_v13 = vpop.f32.mrb[6].mxu0 }
 0x74b   : > { %v9501_v2 = vadd.f32 %v8070_v13, %v5956_v3  ;;  %v8072_v60 = vpop.f32.mrb[7].mxu0  ;;  %v8293_v13 = vld [vmem:[#allocation2 + $0x58] sm:$0xff] }
 0x74c   : > { %v9502_v27 = vadd.f32 %v8072_v60, %v5958_v29  ;;  %v8287_v29 = vld [vmem:[#allocation2 + $0x20] sm:$0xff] }
 0x74d   : > { %v6027_v35 = vpop.f32.mrb[12].mxu1  ;;  %v8229_v30 = vadd.f32 %v9501_v2, %v8227_v21  ;;  %v8292_v2 = vld [vmem:[#allocation2 + $0x50] sm:$0xff] }
 0x74e   : > { %v6029_v48 = vpop.f32.mrb[13].mxu1  ;;  %v8230_v22 = vadd.f32 %v9502_v27, %v8227_v21  ;;  %v10326_v27 = vpack.i.bf16 %v8293_v13, %v8292_v2  ;;  %v8673_v13 = vld [vmem:[%s10702_s21] sm:$0xf] }
 0x74f   : > { %v8235_v61 = vmax.f32 %v8229_v30, 0.0  ;;  %v8685_v2 = vld [vmem:[%s10702_s21] sm:$0xf] }
 0x750   : > { %v8141_v23 = vpop.f32.mrb[8].mxu0  ;;  %v8236_v28 = vmax.f32 %v8230_v22, 0.0 }
 0x751   : > { %v9503_v0 = vadd.f32 %v8141_v23, %v6027_v35  ;;  %v8143_v42 = vpop.f32.mrb[9].mxu0  ;;  %v8241_v39 = vmul.f32 %v8235_v61, %v13023_v38  ;;  %v8299_v35 = vld [vmem:[#allocation2 + $0x90] sm:$0xff]  ;;  %v8294_v38 = vld [vmem:[#allocation2 + $0x60] sm:$0xff] }
 0x752   : > { %v9504_v40 = vadd.f32 %v8143_v42, %v6029_v48  ;;  %v8242_v17 = vmul.f32 %v8236_v28, %v13024_v31  ;;  %v8298_v48 = vld [vmem:[#allocation2 + $0x88] sm:$0xff] }
 0x753   : > { %v8231_v47 = vadd.f32 %v9503_v0, %v8227_v21  ;;  %8253 = vrot.lane.b32.xlu1 %v8241_v39, %s12980_s23  ;;  %v10331_v23 = vpack.i.bf16 %v8299_v35, %v8298_v48  ;;  %v8288_v28 = vld [vmem:[#allocation2 + $0x28] sm:$0xff] }
 0x754   : > { %v8232_v51 = vadd.f32 %v9504_v40, %v8227_v21  ;;  %v9024_v48 = vld [vmem:[%s10702_s21 + $0x8] sm:$0xf0] }
 0x755   : > { %v8237_v26 = vmax.f32 %v8231_v47, 0.0 }
 0x756   : > { %v8238_v8 = vmax.f32 %v8232_v51, 0.0 }
 0x757   : > { %v8243_v63 = vmul.f32 %v8237_v26, %v13025_v55  ;;  %8255 = vrot.lane.b32.xlu1 %v8242_v17, %s12980_s23  ;;  %v10341_v26 = vpack.i.bf16 %v8294_v38, %v8288_v28  ;;  %v8932_v38 = vld [vmem:[%s10702_s21] sm:$0xf0] }
 0x758   : > { %v8244_v59 = vmul.f32 %v8238_v8, %v13026_v56  ;;  %v8307_v56 = vld [vmem:[%s12893_s9] sm:$0xf] }
 0x759   : > { %8257 = vrot.lane.b32.xlu0 %v8243_v63, %s12980_s23  ;;  %v8212_v34 = vpop.f32.mrb[4].mxu0 }
 0x75a   : > { %v9505_v62 = vadd.f32 %v8212_v34, %v5813_v19  ;;  %v8214_v57 = vpop.f32.mrb[5].mxu0 }
 0x75b   : > { %8259 = vrot.lane.b32.xlu1 %v8244_v59, %s12980_s23  ;;  %v9506_v52 = vadd.f32 %v8214_v57, %v5815_v6  ;;  %v8300_v57 = vld [vmem:[#allocation2 + $0x98] sm:$0xff] }
 0x75c   : > { %v8233_v10 = vadd.f32 %v9505_v62, %v8227_v21 }
 0x75d   : > { %v8234_v4 = vadd.f32 %v9506_v52, %v8227_v21  ;;  %v8286_v21 = vld [vmem:[#allocation2 + $0x18] sm:$0xff] }
 0x75e   : > { %v8239_v18 = vmax.f32 %v8233_v10, 0.0  ;;  %v10321_v60 = vpack.i.bf16 %v8287_v29, %v8286_v21  ;;  %v8946_v10 = vld [vmem:[%s10702_s21 + $0x8] sm:$0xf0]  ;;  %v8772_v29 = vld [vmem:[%s10702_s21 + $0x8] sm:$0xf] }
 0x75f   : > { %v8240_v53 = vmax.f32 %v8234_v4, 0.0  ;;  %v9011_v21 = vld [vmem:[%s10702_s21 + $0x8] sm:$0xf0] }
 0x760   : > { %v8245_v7 = vmul.f32 %v8239_v18, %v13027_v12  ;;  %v8948_v12 = vrot.slane %v8946_v10, 4 }
 0x761   : > { %v8246_v43 = vmul.f32 %v8240_v53, %v13028_v5 }
 0x762   : > { %8261 = vrot.lane.b32.xlu0 %v8245_v7, %s12980_s23  ;;  %v8827_v7 = vld [vmem:[%s10702_s21] sm:$0xf0] }
 0x763   : > { %8263 = vrot.lane.b32.xlu1 %v8246_v43, %s12980_s23  ;;  %v8959_v43 = vld [vmem:[%s10702_s21 + $0x8] sm:$0xf0]  ;;  %v8829_v15 = vrot.slane %v8827_v7, 4  ;;  %s12946_s23 = smov 56  }
 0x764   : > { %v8961_v58 = vrot.slane %v8959_v43, 4 }
 0x766   : > { %10292 = vrot.lane.b32.xlu0 %v10291_v54, %s10480_s27  ;;  %v8855_v54 = vld [vmem:[%s10702_s21] sm:$0xf0] }
 0x767   : > { %10297 = vrot.lane.b32.xlu1 %v10296_v46, %s10480_s27  ;;  %v8857_v46 = vrot.slane %v8855_v54, 4 }
 0x76a   : > { %10302 = vrot.lane.b32.xlu0 %v10301_v16, %s10480_s27  ;;  %v8869_v16 = vld [vmem:[%s10702_s21] sm:$0xf0] }
 0x76b   : > { %10307 = vrot.lane.b32.xlu1 %v10306_v41, %s10480_s27  ;;  %v8871_v41 = vrot.slane %v8869_v16, 4 }
 0x7c5   : > { %v8254_v50 = vpop.permute.xlu1 %8253 }
 0x7c6   : > { %8276 = vst.msk [vmem:[#allocation2 + $0xa8] sm:$0xff] %vm2977_vm2, %v8254_v50  ;;  %vm8867_vm2 = vcmask 392452  }
 0x7c9   : > { %v8256_v11 = vpop.permute.xlu1 %8255 }
 0x7ca   : > { %v8265_v45 = vsel %vm384_vm15, %v8254_v50, %v8256_v11  ;;  %v8750_v50 = vld [vmem:[%s10702_s21 + $0x8] sm:$0xf] }
 0x7cb   : > { %v8258_v37 = vpop.permute.xlu0 %8257 }
 0x7cc   : > { %v8266_v36 = vsel %vm384_vm15, %v8256_v11, %v8258_v37  ;;  %v8985_v11 = vld [vmem:[%s10702_s21 + $0x8] sm:$0xf0] }
 0x7cd   : > { %v8260_v14 = vpop.permute.xlu1 %8259  ;;  %v8301_v24 = vld [vmem:[#allocation2 + $0xa8] sm:$0xff]  ;;  %v10316_v19 = vpack.i.bf16 %v8266_v36, %v8265_v45  ;;  %v8661_v45 = vld [vmem:[%s10702_s21] sm:$0xf]  ;;  %v8987_v36 = vrot.slane %v8985_v11, 4 }
 0x7ce   : > { %v8267_v6 = vsel %vm384_vm15, %v8258_v37, %v8260_v14  ;;  %v10311_v3 = vpack.i.bf16 %v8301_v24, %v8295_v9  ;;  %v8883_v37 = vld [vmem:[%s10702_s21] sm:$0xf0]  ;;  %v8998_v9 = vld [vmem:[%s10702_s21 + $0x8] sm:$0xf0]  ;;  %v8761_v24 = vld [vmem:[%s10702_s21 + $0x8] sm:$0xf] }
 0x7cf   : > { %10317 = vrot.lane.b32.xlu0 %v10316_v19, %s10480_s27  ;;  %v8897_v19 = vld [vmem:[%s10702_s21] sm:$0xf0] }
 0x7d0   : > { %10312 = vrot.lane.b32.xlu1 %v10311_v3, %s10480_s27  ;;  %v8899_v3 = vrot.slane %v8897_v19, 4 }
 0x7d3   : > { %10322 = vrot.lane.b32.xlu0 %v10321_v60, %s10480_s27  ;;  %v8918_v60 = vld [vmem:[%s10702_s21] sm:$0xf0] }
 0x7d4   : > { %10327 = vrot.lane.b32.xlu1 %v10326_v27, %s10480_s27  ;;  %v8262_v30 = vpop.permute.xlu0 %8261  ;;  %v9013_v27 = vrot.slane %v9011_v21, 4  ;;  %v8920_v35 = vrot.slane %v8918_v60, 4 }
 0x7d5   : > { %v8268_v22 = vsel %vm384_vm15, %v8260_v14, %v8262_v30  ;;  %v8264_v61 = vpop.permute.xlu1 %8263  ;;  %v8885_v14 = vrot.slane %v8883_v37, 4 }
 0x7d6   : > { %v8269_v0 = vsel %vm384_vm15, %v8262_v30, %v8264_v61  ;;  %v10336_v42 = vpack.i.bf16 %v8268_v22, %v8267_v6  ;;  %v9000_v6 = vrot.slane %v8998_v9, 4  ;;  %v8783_v30 = vld [vmem:[%s10702_s21 + $0x8] sm:$0xf]  ;;  %v8697_v22 = vld [vmem:[%s10702_s21] sm:$0xf]  ;;  %v9026_v61 = vrot.slane %v9024_v48, 4 }
 0x7d7   : > { %8281 = vst.msk [vmem:[#allocation2 + $0xd0] sm:$0xff] %vm2983_vm4, %v8269_v0  ;;  %10332 = vrot.lane.b32.xlu0 %v10331_v23, %s10480_s27  ;;  %v8794_v23 = vld [vmem:[%s10702_s21 + $0x8] sm:$0xf]  ;;  %v9037_v0 = vld [vmem:[%s10702_s21 + $0x8] sm:$0xf0]  ;;  %vm8853_vm15 = vcmask 261252  }
 0x7d8   : > { %v12587_v39 = vpop.permute.xlu0 %10292  ;;  %10337 = vrot.lane.b32.xlu1 %v10336_v42, %s10480_s27  ;;  %v8709_v42 = vld [vmem:[%s10702_s21] sm:$0xf]  ;;  %v9039_v28 = vrot.slane %v9037_v0, 4  ;;  %vm8881_vm4 = vcmask 523652  }
 0x7d9   : > { %v10295_v40 = vunpack.i.h.bf16 %v12587_v39  ;;  %v10294_v47 = vunpack.i.l.bf16 %v12587_v39  ;;  %v12592_v51 = vpop.permute.xlu1 %10297 }
 0x7da   : > { %v10300_v31 = vunpack.i.h.bf16 %v12592_v51  ;;  %v10299_v17 = vunpack.i.l.bf16 %v12592_v51 }
 0x7db   : > { %v8386_v8 = vsel %vm1644_vm8, %v10294_v47, %v10295_v40  ;;  %10342 = vrot.lane.b32.xlu0 %v10341_v26, %s10480_s27  ;;  %v8727_v26 = vld [vmem:[%s10702_s21] sm:$0xf] }
 0x7dc   : > { %v10303_v55 = vpop.permute.xlu0 %10302  ;;  %v8391_v63 = vsel %vm1644_vm8, %v10299_v17, %v10300_v31 }
 0x7dd   : > { %v10305_v59 = vunpack.i.h.bf16 %v10303_v55  ;;  %v10304_v34 = vunpack.i.l.bf16 %v10303_v55  ;;  %v9475_v62 = vpack.c.bf16 %v8391_v63, %v8386_v8  ;;  %v8816_v8 = vld [vmem:[%s10702_s21 + $0x8] sm:$0xf]  ;;  %v10308_v55 = vpop.permute.xlu1 %10307 }
 0x7de   : > { %v8306_v52 = vld [vmem:[#allocation2 + $0xd0] sm:$0xff]  ;;  %v10310_v63 = vunpack.i.h.bf16 %v10308_v55 }
 0x7df   : > { %v8385_v4 = vsel %vm1644_vm8, %v10304_v34, %v10294_v47  ;;  %v8390_v18 = vsel %vm1644_vm8, %v10305_v59, %v10299_v17  ;;  %9476 = vmatprep.subr.bf16.mxu1 %v9475_v62  ;;  %v10346_v53 = vpack.i.bf16 %v8306_v52, %v8300_v57  ;;  %8310 = vperm.xlu0 %10290, %v8307_v56   ;;  %v8934_v47 = vrot.slane %v8932_v38, 4  ;;  %v8805_v17 = vld [vmem:[%s10702_s21 + $0x8] sm:$0xf] }
 0x7e0   : > { %v9477_v5 = vpack.c.bf16 %v8390_v18, %v8385_v4  ;;  %v10309_v56 = vunpack.i.l.bf16 %v10308_v55 }
 0x7e1   : > { %10347 = vrot.lane.b32.xlu1 %v10346_v53, %s10480_s27  ;;  %s12943_s27 = smov 24  }
 0x7e2   : > { %9478 = vmatpush1.bf16.msra.mxu1 %v9477_v5  ;;  %v8396_v4 = vsel %vm1644_vm8, %v10309_v56, %v10310_v63 }
 0x7e3   : > { %8949 = vrot.lane.b32.xlu0 %v8948_v12, %s13029_s11 }
 0x7e5   : > { %8830 = vrot.lane.b32.xlu1 %v8829_v15, %s10509_s24 }
 0x7e7   : > { %8962 = vrot.lane.b32.xlu0 %v8961_v58, %s12944_s18  ;;  %s10518_s18 = smov 8  }
 0x7e9   : > { %8844 = vrot.lane.b32.xlu1 %v8843_v25, %s10511_s20 }
 0x7eb   : > { %8858 = vrot.lane.b32.xlu0 %v8857_v46, %s12943_s27  ;;  %s10517_s27 = smov 36  }
 0x7ed   : > { %8741 = vrot.lane.b32.xlu1 %v8739_v44, %s10513_s30  ;;  %v8282_v44 = vld [vmem:[%s12892_s8] sm:$0xf] }
 0x7ef   : > { %8651 = vrot.lane.b32.xlu0 %v8649_v33, %s10514_s22  ;;  %s12949_s22 = smov 60  }
 0x7f1   : > { %8975 = vrot.lane.b32.xlu1 %v8974_v49, %s12946_s23  ;;  %s10520_s23 = smov 40  }
 0x7f3   : > { %8872 = vrot.lane.b32.xlu0 %v8871_v41, %s12948_s29  ;;  %s12950_s29 = smov 64  }
 0x7f5   : > { %8752 = vrot.lane.b32.xlu1 %v8750_v50, %s10517_s27 }
 0x7f7   : > { %8663 = vrot.lane.b32.xlu0 %v8661_v45, %s10518_s18  ;;  %s10522_s18 = smov 12  }
 0x7f9   : > { %8988 = vrot.lane.b32.xlu1 %v8987_v36, %s12949_s22 }
 0x7fb   : > { %8886 = vrot.lane.b32.xlu0 %v8885_v14, %s10513_s30  ;;  %s12951_s30 = smov 68  }
 0x7fd   : > { %8763 = vrot.lane.b32.xlu1 %v8761_v24, %s10520_s23 }
 0x7ff   : > { %9001 = vrot.lane.b32.xlu0 %v9000_v6, %s12950_s29  ;;  %s12955_s29 = smov 96  }
 0x801   : > { %8900 = vrot.lane.b32.xlu1 %v8899_v3, %s10517_s27  ;;  %s13030_s27 = smov 52  }
 0x803   : > { %8774 = vrot.lane.b32.xlu0 %v8772_v29, %s10508_s12 }
 0x805   : > { %8675 = vrot.lane.b32.xlu1 %v8673_v13, %s10522_s18  ;;  %s12960_s18 = smov 76  }
 0x807   : > { %8687 = vrot.lane.b32.xlu0 %v8685_v2, %s10509_s24  ;;  %s12953_s24 = smov 72  }
 0x809   : > { %9014 = vrot.lane.b32.xlu1 %v9013_v27, %s12951_s30  ;;  %s10530_s30 = smov 116  }
 0x80b   : > { %8921 = vrot.lane.b32.xlu0 %v8920_v35, %s10520_s23  ;;  %s13031_s23 = smov 24  }
 0x80d   : > { %8785 = vrot.lane.b32.xlu1 %v8783_v30, %s13029_s11  ;;  %s13032_s11 = smov 28  }
 0x80f   : > { %8699 = vrot.lane.b32.xlu0 %v8697_v22, %s10511_s20  ;;  %s13033_s20 = smov 56  }
 0x811   : > { %9027 = vrot.lane.b32.xlu1 %v9026_v61, %s12953_s24  ;;  %s12958_s24 = smov 112  }
 0x813   : > { %8796 = vrot.lane.b32.xlu0 %v8794_v23, %s13030_s27 }
 0x815   : > { %8711 = vrot.lane.b32.xlu1 %v8709_v42, %s13031_s23  ;;  %s13035_s23 = sshll.u32 %s10696_s28, 4 }
 0x817   : > { %9040 = vrot.lane.b32.xlu0 %v9039_v28, %s12960_s18 }
 0x819   : > { %8935 = vrot.lane.b32.xlu1 %v8934_v47, %s10508_s12  ;;  %s13034_s12 = smov 124  }
 0x81b   : > { %8729 = vrot.lane.b32.xlu0 %v8727_v26, %s13032_s11  ;;  %s10526_s11 = smov 104  }
 0x81d   : > { %8807 = vrot.lane.b32.xlu1 %v8805_v17, %s13033_s20 }
 0x821   : > { %8818 = vrot.lane.b32.xlu1 %v8816_v8, %s12949_s22  ;;  %s12725_s22 = scalar_lea.vmem [#allocation6], %s13035_s23  ;;  %s13036_s23 = smov 88  }
 0x841   : > { %v10318_v59 = vpop.permute.xlu0 %10317 }
 0x842   : > { %v10313_v34 = vpop.permute.xlu1 %10312  ;;  %v10320_v62 = vunpack.i.h.bf16 %v10318_v59  ;;  %v10319_v57 = vunpack.i.l.bf16 %v10318_v59 }
 0x843   : > { %v10315_v52 = vunpack.i.h.bf16 %v10313_v34  ;;  %v10314_v10 = vunpack.i.l.bf16 %v10313_v34 }
 0x844   : > { %v8401_v18 = vsel %vm1644_vm8, %v10319_v57, %v10320_v62 }
 0x845   : > { %v8395_v53 = vsel %vm1644_vm8, %v10314_v10, %v10309_v56  ;;  %v8400_v12 = vsel %vm1644_vm8, %v10315_v52, %v10319_v57  ;;  %v10323_v7 = vpop.permute.xlu0 %10322  ;;  %v9479_v5 = vpack.c.bf16 %v8401_v18, %v8396_v4 }
 0x846   : > { %v10328_v43 = vpop.permute.xlu1 %10327  ;;  %v9481_v15 = vpack.c.bf16 %v8400_v12, %v8395_v53  ;;  %v10325_v1 = vunpack.i.h.bf16 %v10323_v7  ;;  %v10324_v58 = vunpack.i.l.bf16 %v10323_v7 }
 0x847   : > { %v10330_v54 = vunpack.i.h.bf16 %v10328_v43  ;;  %v10329_v25 = vunpack.i.l.bf16 %v10328_v43  ;;  %9480 = vmatprep.subr.bf16.mxu1 %v9479_v5 }
 0x848   : > { %v8387_v46 = vsel %vm1644_vm8, %v10295_v40, %v10324_v58  ;;  %9482 = vmatpush1.bf16.msra.mxu1 %v9481_v15  ;;  %v8388_v20 = vsel %vm1644_vm8, %v10324_v58, %v10325_v1 }
 0x849   : > { %v8392_v33 = vsel %vm1644_vm8, %v10300_v31, %v10329_v25  ;;  %v10333_v16 = vpop.permute.xlu0 %10332  ;;  %v8393_v49 = vsel %vm1644_vm8, %v10329_v25, %v10330_v54 }
 0x84a   : > { %v9485_v41 = vpack.c.bf16 %v8392_v33, %v8387_v46  ;;  %v10335_v50 = vunpack.i.h.bf16 %v10333_v16  ;;  %v10334_v11 = vunpack.i.l.bf16 %v10333_v16  ;;  %v9483_v39 = vpack.c.bf16 %v8393_v49, %v8388_v20  ;;  %v10338_v45 = vpop.permute.xlu1 %10337  ;;  %v8645_v46 = vld [vmem:[%s10702_s21] sm:$0xf]  ;;  %s10528_s21 = smov 120  }
 0x84b   : > { %9249 = vmatmul.mubr.msk.f32.vlgmr.msra.gmra.mrb[16].mxu1 %vm382_vm0, %v8282_v44  ;;  %v10340_v40 = vunpack.i.h.bf16 %v10338_v45  ;;  %v10339_v37 = vunpack.i.l.bf16 %v10338_v45 }
 0x84c   : > { %9484 = vmatprep.subr.bf16.mxu1 %v9483_v39  ;;  %8567 = vmatprep.mubr.f32.mxu1 %v13005_v32  ;;  %v8397_v36 = vsel %vm1644_vm8, %v10310_v63, %v10334_v11  ;;  %v8398_v14 = vsel %vm1644_vm8, %v10334_v11, %v10335_v50 }
 0x84d   : > { %v8402_v51 = vsel %vm1644_vm8, %v10320_v62, %v10339_v37  ;;  %9486 = vmatpush1.bf16.msra.mxu1 %v9485_v41  ;;  %v10343_v31 = vpop.permute.xlu0 %10342  ;;  %v8403_v9 = vsel %vm1644_vm8, %v10339_v37, %v10340_v40 }
 0x84e   : > { %v9489_v24 = vpack.c.bf16 %v8402_v51, %v8397_v36  ;;  %v10345_v19 = vunpack.i.h.bf16 %v10343_v31  ;;  %v10344_v6 = vunpack.i.l.bf16 %v10343_v31  ;;  %v9487_v3 = vpack.c.bf16 %v8403_v9, %v8398_v14 }
 0x850   : > { %v8389_v29 = vsel %vm1644_vm8, %v10325_v1, %v10344_v6  ;;  %v8394_v13 = vsel %vm1644_vm8, %v10330_v54, %v10345_v19  ;;  %v9491_v21 = vpack.c.bf16 %v10345_v19, %v10344_v6  ;;  %9488 = vmatprep.subr.bf16.mxu1 %v9487_v3 }
 0x851   : > { %9490 = vmatpush1.bf16.msra.mxu1 %v9489_v24  ;;  %v9493_v2 = vpack.c.bf16 %v8394_v13, %v8389_v29 }
 0x852   : > { %9492 = vmatprep.subr.bf16.mxu1 %v9491_v21 }
 0x853   : > { %v10348_v60 = vpop.permute.xlu1 %10347 }
 0x854   : > { %v10350_v27 = vunpack.i.h.bf16 %v10348_v60  ;;  %v10349_v35 = vunpack.i.l.bf16 %v10348_v60  ;;  %9250 = vmatmul.mubr.msk.f32.vlgmr.msra.gmra.mrb[18].mxu1 %vm382_vm0, %v8282_v44 }
 0x855   : > { %9494 = vmatpush1.bf16.msra.mxu1 %v9493_v2  ;;  %8638 = vmatprep.mubr.f32.mxu1 %v13005_v32 }
 0x856   : > { %v8399_v30 = vsel %vm1644_vm8, %v10335_v50, %v10349_v35  ;;  %v8404_v48 = vsel %vm1644_vm8, %v10340_v40, %v10350_v27  ;;  %v9495_v22 = vpack.c.bf16 %v10350_v27, %v10349_v35  ;;  %vm8707_vm8 = vcmask 781952  }
 0x857   : > { %v9497_v61 = vpack.c.bf16 %v8404_v48, %v8399_v30  ;;  %v12690_v23 = vpop.permute.xlu1 %8830 }
 0x858   : > { %9496 = vmatprep.subr.bf16.mxu1 %v9495_v22 }
 0x859   : > { %9498 = vmatpush1.bf16.msra.mxu1 %v9497_v61 }
 0x85b   : > { %v12692_v0 = vpop.permute.xlu1 %8844 }
 0x85c   : > { %9251 = vmatmul.mubr.msk.f32.vlgmr.msra.gmra.mrb[20].mxu1 %vm382_vm0, %v8282_v44  ;;  %vm8647_vm0 = vcmask 125952  }
 0x85e   : > { %v12694_v42 = vpop.permute.xlu0 %8310 }
 0x85f   : > { %v8742_v28 = vpop.permute.xlu1 %8741 }
 0x862   : > { %v12696_v38 = vpop.permute.xlu0 %8949 }
 0x863   : > { %v12700_v47 = vpop.permute.xlu1 %8975 }
 0x866   : > { %v12698_v32 = vpop.permute.xlu0 %8962 }
 0x867   : > { %v8753_v17 = vpop.permute.xlu1 %8752 }
 0x86a   : > { %v12702_v26 = vpop.permute.xlu0 %8858 }
 0x86b   : > { %v12704_v55 = vpop.permute.xlu1 %8988 }
 0x86e   : > { %v8652_v8 = vpop.permute.xlu0 %8651 }
 0x86f   : > { %v8764_v56 = vpop.permute.xlu1 %8763 }
 0x872   : > { %v12706_v63 = vpop.permute.xlu0 %8872 }
 0x873   : > { %v12708_v34 = vpop.permute.xlu1 %8900 }
 0x876   : > { %v8664_v59 = vpop.permute.xlu0 %8663 }
 0x877   : > { %v8676_v57 = vpop.permute.xlu1 %8675 }
 0x87a   : > { %v12710_v62 = vpop.permute.xlu0 %8886 }
 0x87b   : > { %v9015_v10 = vpop.permute.xlu1 %9014 }
 0x87e   : > { %v12712_v52 = vpop.permute.xlu0 %9001 }
 0x87f   : > { %v8786_v18 = vpop.permute.xlu1 %8785 }
 0x882   : > { %v8775_v4 = vpop.permute.xlu0 %8774 }
 0x883   : > { %v12714_v12 = vpop.permute.xlu1 %9027 }
 0x886   : > { %v8688_v53 = vpop.permute.xlu0 %8687 }
 0x887   : > { %v8712_v43 = vpop.permute.xlu1 %8711 }
 0x88a   : > { %v12716_v7 = vpop.permute.xlu0 %8921 }
 0x88b   : > { %v12741_v19 = vpop.permute.xlu1 %8935 }
 0x88e   : > { %v8700_v44 = vpop.permute.xlu0 %8699 }
 0x88f   : > { %v8808_v27 = vpop.permute.xlu1 %8807 }
 0x892   : > { %v8797_v39 = vpop.permute.xlu0 %8796 }
 0x896   : > { %v12733_v36 = vpop.permute.xlu0 %9040 }
 0x89a   : > { %v8730_v60 = vpop.permute.xlu0 %8729 }
 0x91e   : > { %v8498_v5 = vpop.f32.mrb[16].mxu1 }
 0x91f   : > { %v8499_v15 = vadd.f32 %v8498_v5, %v12694_v42  ;;  %v8500_v1 = vpop.f32.mrb[17].mxu1 }
 0x920   : > { %v8501_v54 = vadd.f32 %v8500_v1, %v12694_v42 }
 0x921   : > { %v8714_v58 = vadd.f32 %v8712_v43, %v8499_v15  ;;  %v8654_v25 = vadd.f32 %v8652_v8, %v8499_v15  ;;  %v8646_v20 = vadd.f32 %v8645_v46, %v8499_v15  ;;  %v8666_v16 = vadd.f32 %v8664_v59, %v8499_v15 }
 0x922   : > { %v8744_v33 = vadd.f32 %v8742_v28, %v8501_v54  ;;  %v8755_v50 = vadd.f32 %v8753_v17, %v8501_v54  ;;  %v8678_v11 = vadd.f32 %v8676_v57, %v8499_v15  ;;  %v8766_v45 = vadd.f32 %v8764_v56, %v8501_v54  ;;  %v8819_v28 = vpop.permute.xlu1 %8818 }
 0x923   : > { %8718 = vrot.lane.b32.xlu0 %v8714_v58, %s10526_s11  ;;  %8656 = vrot.lane.b32.xlu1 %v8654_v25, %s13034_s12  ;;  %8648 = vst.msk [vmem:[%s12725_s22] sm:$0xf] %vm8647_vm0, %v8646_v20  ;;  %s12956_s12 = smov 92   ;;  %v8690_v40 = vadd.f32 %v8688_v53, %v8499_v15  ;;  %v8777_v9 = vadd.f32 %v8775_v4, %v8501_v54 }
 0x924   : > { %v8702_v24 = vadd.f32 %v8700_v44, %v8499_v15  ;;  %v8788_v3 = vadd.f32 %v8786_v18, %v8501_v54  ;;  %v8715_v21 = vadd.f32 %v8712_v43, %v8501_v54  ;;  %v8732_v35 = vadd.f32 %v8730_v60, %v8501_v54 }
 0x927   : > { %8746 = vrot.lane.b32.xlu0 %v8744_v33, %s12955_s29  ;;  %8668 = vrot.lane.b32.xlu1 %v8666_v16, %s10528_s21  ;;  %v8569_v49 = vpop.f32.mrb[18].mxu1  ;;  %s10532_s21 = smov 108   ;;  %s12959_s29 = smov 80  }
 0x928   : > { %v8571_v41 = vpop.f32.mrb[19].mxu1  ;;  %v8570_v29 = vadd.f32 %v8569_v49, %v12694_v42 }
 0x929   : > { %v8572_v13 = vadd.f32 %v8571_v41, %v12694_v42 }
 0x92a   : > { %v8799_v30 = vadd.f32 %v8797_v39, %v8570_v29  ;;  %v8810_v22 = vadd.f32 %v8808_v27, %v8570_v29  ;;  %v8821_v17 = vadd.f32 %v8819_v28, %v8570_v29 }
 0x92b   : > { %8757 = vrot.lane.b32.xlu0 %v8755_v50, %s12956_s12  ;;  %8680 = vrot.lane.b32.xlu1 %v8678_v11, %s10530_s30  ;;  %s13037_s30 = smov 84   ;;  %v8833_v48 = vadd.f32 %v12690_v23, %v8572_v13  ;;  %s10534_s12 = smov 100   ;;  %v8903_v56 = vadd.f32 %v12708_v34, %v8572_v13  ;;  %v8861_v59 = vadd.f32 %v12702_v26, %v8572_v13 }
 0x92c   : > { %v8889_v26 = vadd.f32 %v12710_v62, %v8572_v13 }
 0x92d   : > { %v8835_v61 = vrot.slane %v8833_v48, 4  ;;  %v8907_v23 = vrot.slane %v8903_v56, 4  ;;  %v8863_v57 = vrot.slane %v8861_v59, 4 }
 0x92e   : > { %v8891_v5 = vrot.slane %v8889_v26, 4 }
 0x92f   : > { %8768 = vrot.lane.b32.xlu0 %v8766_v45, %s13036_s23  ;;  %8692 = vrot.lane.b32.xlu1 %v8690_v40, %s12958_s24  ;;  %v8640_v37 = vpop.f32.mrb[20].mxu1  ;;  %s13038_s24 = smov 72  }
 0x930   : > { %v12736_v51 = vadd.f32 %v8640_v37, %v12694_v42  ;;  %v8642_v31 = vpop.f32.mrb[21].mxu1 }
 0x931   : > { %v12739_v14 = vadd.f32 %v8642_v31, %v12694_v42  ;;  %v8847_v42 = vadd.f32 %v12692_v0, %v8572_v13  ;;  %v8875_v0 = vadd.f32 %v12706_v63, %v8572_v13 }
 0x932   : > { %v8904_v6 = vadd.f32 %v12708_v34, %v12736_v51  ;;  %v8965_v34 = vadd.f32 %v12698_v32, %v12736_v51  ;;  %v8991_v15 = vadd.f32 %v12704_v55, %v12736_v51  ;;  %v8924_v32 = vadd.f32 %v12716_v7, %v12736_v51 }
 0x933   : > { %8779 = vrot.lane.b32.xlu0 %v8777_v9, %s13037_s30  ;;  %8704 = vrot.lane.b32.xlu1 %v8702_v24, %s10532_s21  ;;  %v9017_v2 = vadd.f32 %v9015_v10, %v12739_v14  ;;  %v8849_v8 = vrot.slane %v8847_v42, 4  ;;  %v8952_v10 = vadd.f32 %v12696_v38, %v12736_v51  ;;  %v8877_v18 = vrot.slane %v8875_v0, 4 }
 0x934   : > { %v8967_v53 = vrot.slane %v8965_v34, 4  ;;  %v8978_v38 = vadd.f32 %v12700_v47, %v12736_v51  ;;  %v8908_v43 = vrot.slane %v8904_v6, 4  ;;  %v8993_v62 = vrot.slane %v8991_v15, 4 }
 0x935   : > { %v8954_v4 = vrot.slane %v8952_v10, 4  ;;  %v8926_v1 = vrot.slane %v8924_v32, 4  ;;  %v9004_v47 = vadd.f32 %v12712_v52, %v12739_v14  ;;  %v9019_v54 = vrot.slane %v9017_v2, 4 }
 0x936   : > { %v8980_v63 = vrot.slane %v8978_v38, 4  ;;  %v9030_v55 = vadd.f32 %v12714_v12, %v12739_v14  ;;  %v8938_v7 = vadd.f32 %v12741_v19, %v12736_v51  ;;  %v9043_v46 = vadd.f32 %v12733_v36, %v12739_v14 }
 0x937   : > { %8790 = vrot.lane.b32.xlu0 %v8788_v3, %s12959_s29  ;;  %8720 = vrot.lane.b32.xlu1 %v8715_v21, %s10526_s11  ;;  %s13040_s29 = smov 68   ;;  %v9006_v58 = vrot.slane %v9004_v47, 4 }
 0x938   : > { %v9032_v52 = vrot.slane %v9030_v55, 4  ;;  %v8940_v25 = vrot.slane %v8938_v7, 4  ;;  %v9045_v12 = vrot.slane %v9043_v46, 4 }
 0x93b   : > { %8801 = vrot.lane.b32.xlu0 %v8799_v30, %s12960_s18  ;;  %8734 = vrot.lane.b32.xlu1 %v8732_v35, %s10534_s12  ;;  %s13041_s18 = smov 92  }
 0x93f   : > { %8812 = vrot.lane.b32.xlu0 %v8810_v22, %s13038_s24  ;;  %8836 = vrot.lane.b32.xlu1 %v8835_v61, %s13039_s0  ;;  %s13042_s0 = smov 80  }
 0x943   : > { %8823 = vrot.lane.b32.xlu0 %v8821_v17, %s13040_s29  ;;  %8850 = vrot.lane.b32.xlu1 %v8849_v8, %s10532_s21  ;;  %s13043_s21 = smov 76  }
 0x947   : > { %8909 = vrot.lane.b32.xlu0 %v8907_v23, %s13041_s18  ;;  %8864 = vrot.lane.b32.xlu1 %v8863_v57, %s10526_s11 }
 0x94b   : > { %8955 = vrot.lane.b32.xlu0 %v8954_v4, %s13042_s0  ;;  %8878 = vrot.lane.b32.xlu1 %v8877_v18, %s10534_s12  ;;  %s9051_s12 = scalar_lea.sflag [#allocation5], %s10696_s28 }
 0x94f   : > { %8968 = vrot.lane.b32.xlu0 %v8967_v53, %s13043_s21  ;;  %8892 = vrot.lane.b32.xlu1 %v8891_v5, %s13044_s1  ;;  %s13045_s1 = smov 64  }
 0x953   : > { %8981 = vrot.lane.b32.xlu0 %v8980_v63, %s13038_s24  ;;  %8911 = vrot.lane.b32.xlu1 %v8908_v43, %s13041_s18  ;;  %s13046_s24 = smov 60  }
 0x957   : > { %8994 = vrot.lane.b32.xlu0 %v8993_v62, %s13040_s29  ;;  %8927 = vrot.lane.b32.xlu1 %v8926_v1, %s13036_s23  ;;  %s9258_s29 = sshll.u32 %s10612_s17, 8  ;;  %s10535_s17 = smov [#allocation6]  }
 0x958   : > { %s12839_s11 = scalar_lea.hbm %s12894_s10, %s9258_s29 }
 0x95b   : > { %9007 = vrot.lane.b32.xlu0 %v9006_v58, %s13045_s1  ;;  %9020 = vrot.lane.b32.xlu1 %v9019_v54, %s13046_s24 }
 0x95f   : > { %9033 = vrot.lane.b32.xlu0 %v9032_v52, %s13033_s20  ;;  %8941 = vrot.lane.b32.xlu1 %v8940_v25, %s13037_s30  ;;  %s10410_s30 = sshll.u32 %s10535_s17, 4  ;;  %s10411_s30 = int_to_ptr.vmem [resolvable:$false] %s10410_s30 }
 0x960   : > { %s10412_s0 = scalar_lea.vmem %s10411_s30, 512 }
 0x963   : > { %9046 = vrot.lane.b32.xlu0 %v9045_v12, %s13030_s27  ;;  %s9065_s27 = sshll.u32 %s12725_s22, 4  ;;  %s12841_s27 = int_to_ptr.vmem [resolvable:$true] %s9065_s27 }
 0x964   : > { %s10406_s23 = scalar_lea.vmem %s12841_s27, 256  ;;  %p10413_p7 = scmp.lt.s32.totalorder %s12841_s27, %s10411_s30 }
 0x965   : > { %p10407_p6 = scmp.ne.s32.totalorder %s12841_s27, %s10406_s23  ;;  %p10414_p10 = scmp.lt.s32.totalorder %s10412_s0, %s10406_s23 }
 0x967   : > { %p10408_p12 = pnand %p10407_p6, %p13047_p11  ;;  %p10415_p2 = por %p10414_p10, %p10413_p7 }
 0x969   : > { %p10409_p13 = pneg %p10408_p12 }
 0x96b   : > { %p10416_p4 = pnand %p10415_p2, %p10409_p13 }
 0x995   : > { %v8719_v44 = vpop.permute.xlu0 %8718  ;;  %v8657_v20 = vpop.permute.xlu1 %8656 }
 0x996   : > { %8660 = vst.msk [vmem:[%s12725_s22] sm:$0xf] %vm8659_vm6, %v8657_v20 }
 0x999   : > { %v8747_v33 = vpop.permute.xlu0 %8746  ;;  %v8669_v16 = vpop.permute.xlu1 %8668 }
 0x99a   : > { %8749 = vst.msk [vmem:[%s12725_s22 + $0x8] sm:$0xf] %vm8647_vm0, %v8747_v33  ;;  %vm8930_vm0 = vcmask 917252  }
 0x99b   : > { %8672 = vst.msk [vmem:[%s12725_s22] sm:$0xf] %vm8671_vm13, %v8669_v16 }
 0x99d   : > { %v8758_v49 = vpop.permute.xlu0 %8757  ;;  %v8681_v41 = vpop.permute.xlu1 %8680 }
 0x99e   : > { %8760 = vst.msk [vmem:[%s12725_s22 + $0x8] sm:$0xf] %vm8659_vm6, %v8758_v49  ;;  %vm8944_vm6 = vcmask 1048452  }
 0x99f   : > { %8684 = vst.msk [vmem:[%s12725_s22] sm:$0xf] %vm8683_vm3, %v8681_v41 }
 0x9a1   : > { %v8769_v50 = vpop.permute.xlu0 %8768  ;;  %v8693_v11 = vpop.permute.xlu1 %8692 }
 0x9a2   : > { %8771 = vst.msk [vmem:[%s12725_s22 + $0x8] sm:$0xf] %vm8671_vm13, %v8769_v50 }
 0x9a3   : > { %8696 = vst.msk [vmem:[%s12725_s22] sm:$0xf] %vm8695_vm7, %v8693_v11 }
 0x9a5   : > { %v8780_v39 = vpop.permute.xlu0 %8779  ;;  %v8705_v45 = vpop.permute.xlu1 %8704 }
 0x9a6   : > { %8782 = vst.msk [vmem:[%s12725_s22 + $0x8] sm:$0xf] %vm8683_vm3, %v8780_v39 }
 0x9a7   : > { %8708 = vst.msk [vmem:[%s12725_s22] sm:$0xf] %vm8707_vm8, %v8705_v45 }
 0x9a9   : > { %v8791_v40 = vpop.permute.xlu0 %8790  ;;  %v8721_v37 = vpop.permute.xlu1 %8720 }
 0x9aa   : > { %8793 = vst.msk [vmem:[%s12725_s22 + $0x8] sm:$0xf] %vm8695_vm7, %v8791_v40  ;;  %v8723_v36 = vsel %vm8722_vm10, %v8719_v44, %v8721_v37 }
 0x9ab   : > { %8726 = vst.msk [vmem:[%s12725_s22] sm:$0xf] %vm8725_vm11, %v8723_v36 }
 0x9ad   : > { %v8802_v51 = vpop.permute.xlu0 %8801  ;;  %v8735_v31 = vpop.permute.xlu1 %8734 }
 0x9ae   : > { %8804 = vst.msk [vmem:[%s12725_s22 + $0x8] sm:$0xf] %vm8707_vm8, %v8802_v51 }
 0x9af   : > { %8738 = vst.msk [vmem:[%s12725_s22] sm:$0xf] %vm8737_vm12, %v8735_v31 }
 0x9b1   : > { %v8813_v14 = vpop.permute.xlu0 %8812  ;;  %v8837_v9 = vpop.permute.xlu1 %8836 }
 0x9b2   : > { %8815 = vst.msk [vmem:[%s12725_s22 + $0x8] sm:$0xf] %vm8725_vm11, %v8813_v14 }
 0x9b3   : > { %8840 = vst.msk [vmem:[%s12725_s22] sm:$0xf0] %vm8839_vm14, %v8837_v9 }
 0x9b5   : > { %v8824_v24 = vpop.permute.xlu0 %8823  ;;  %v8851_v19 = vpop.permute.xlu1 %8850 }
 0x9b6   : > { %8826 = vst.msk [vmem:[%s12725_s22 + $0x8] sm:$0xf] %vm8737_vm12, %v8824_v24 }
 0x9b7   : > { %8854 = vst.msk [vmem:[%s12725_s22] sm:$0xf0] %vm8853_vm15, %v8851_v19 }
 0x9b9   : > { %v8910_v6 = vpop.permute.xlu0 %8909  ;;  %v8865_v3 = vpop.permute.xlu1 %8864 }
 0x9ba   : > { %8868 = vst.msk [vmem:[%s12725_s22] sm:$0xf0] %vm8867_vm2, %v8865_v3 }
 0x9bd   : > { %v8956_v29 = vpop.permute.xlu0 %8955  ;;  %v8879_v13 = vpop.permute.xlu1 %8878 }
 0x9be   : > { %8958 = vst.msk [vmem:[%s12725_s22 + $0x8] sm:$0xf0] %vm8839_vm14, %v8956_v29 }
 0x9bf   : > { %8882 = vst.msk [vmem:[%s12725_s22] sm:$0xf0] %vm8881_vm4, %v8879_v13 }
 0x9c1   : > { %v8969_v21 = vpop.permute.xlu0 %8968  ;;  %v8893_v2 = vpop.permute.xlu1 %8892 }
 0x9c2   : > { %8971 = vst.msk [vmem:[%s12725_s22 + $0x8] sm:$0xf0] %vm8853_vm15, %v8969_v21 }
 0x9c3   : > { %8896 = vst.msk [vmem:[%s12725_s22] sm:$0xf0] %vm8895_vm1, %v8893_v2 }
 0x9c5   : > { %v8982_v60 = vpop.permute.xlu0 %8981  ;;  %v8912_v27 = vpop.permute.xlu1 %8911 }
 0x9c6   : > { %8984 = vst.msk [vmem:[%s12725_s22 + $0x8] sm:$0xf0] %vm8867_vm2, %v8982_v60  ;;  %v8914_v35 = vsel %vm8913_vm5, %v8910_v6, %v8912_v27 }
 0x9c7   : > { %8917 = vst.msk [vmem:[%s12725_s22] sm:$0xf0] %vm8916_vm9, %v8914_v35 }
 0x9c9   : > { %v8995_v30 = vpop.permute.xlu0 %8994  ;;  %v8928_v48 = vpop.permute.xlu1 %8927 }
 0x9ca   : > { %8997 = vst.msk [vmem:[%s12725_s22 + $0x8] sm:$0xf0] %vm8881_vm4, %v8995_v30 }
 0x9cb   : > { %8931 = vst.msk [vmem:[%s12725_s22] sm:$0xf0] %vm8930_vm0, %v8928_v48 }
 0x9cd   : > { %v9008_v22 = vpop.permute.xlu0 %9007  ;;  %v9021_v61 = vpop.permute.xlu1 %9020 }
 0x9ce   : > { %9010 = vst.msk [vmem:[%s12725_s22 + $0x8] sm:$0xf0] %vm8895_vm1, %v9008_v22 }
 0x9cf   : > { %9023 = vst.msk [vmem:[%s12725_s22 + $0x8] sm:$0xf0] %vm8916_vm9, %v9021_v61 }
 0x9d1   : > { %v9034_v42 = vpop.permute.xlu0 %9033  ;;  %v8942_v28 = vpop.permute.xlu1 %8941 }
 0x9d2   : > { %9036 = vst.msk [vmem:[%s12725_s22 + $0x8] sm:$0xf0] %vm8930_vm0, %v9034_v42 }
 0x9d3   : > { %8945 = vst.msk [vmem:[%s12725_s22] sm:$0xf0] %vm8944_vm6, %v8942_v28 }
 0x9d5   : > { %v9047_v17 = vpop.permute.xlu0 %9046 }
 0x9d6   : > { %9049 = vst.msk [vmem:[%s12725_s22 + $0x8] sm:$0xf0] %vm8944_vm6, %v9047_v17 }
 0x9d7   : > { %10419 = shalt.err (!%p10416_p4)
}
 0x9d8   : > { %s10420_s28 = scalar_lea.hbm %s12839_s11, 256  ;;  %s10424_s1 = scalar_lea.hbm %s12894_s10, 512 }
 0x9d9   : > { %p10421_p5 = scmp.ne.s32.totalorder %s12839_s11, %s10420_s28  ;;  %p10425_p0 = scmp.lt.u32.totalorder %s12839_s11, %s12894_s10 }
 0x9da   : > { %p10426_p1 = scmp.lt.u32.totalorder %s10424_s1, %s10420_s28  ;;  %p10428_p6 = scmp.lt.u32.totalorder %s10420_s28, %s12839_s11 }
 0x9db   : > { %p10422_p8 = pnand %p10421_p5, %p13047_p11 }
 0x9dc   : > { %p10427_p3 = por %p10426_p1, %p10425_p0 }
 0x9dd   : > { %p10423_p9 = pneg %p10422_p8 }
 0x9de   : > { %p10429_p12 = por %p10428_p6, %p10427_p3 }
 0x9e0   : > { %p10430_p13 = pnand %p10429_p12, %p10423_p9 }
 0x9e2   : > { %10433 = shalt.err (!%p10430_p13)
}
 0x9e3   : > { %9645 = dma.vmem_to_hbm [thread:$0]  (%p13047_p11), %s12841_s27, 256, %s12839_s11, %s9051_s12  }
 0x9e4 PF: > { %s9077_s18 = sand.u32 1, %s10460_s13   ;;  %p13048_p7 = scmp.ne.s32.totalorder %s12967_s26, 0 }
 0x9e5   : > { %p13049_p10 = scmp.ge.s32.totalorder %s10472_s16, 2  ;;  %s9078_s20 = scalar_lea.sflag [#allocation5], %s9077_s18 }
 0x9e7   : > { %p9652_p2 = pnand %p13049_p10, %p13048_p7 }
 0x9e9   : > { %10455 = dma.done.wait (!%p9652_p2), %s9078_s20, 256  }
 0x9ea   : > { %10457 = vsyncadd (!%p9652_p2), %s9078_s20, 4294967040  ;;  %s13050_s23 = sld [smem:[#allocation9_spill]]  ;;  %p23_p4 = scmp.ge.s32.totalorder %s10616_s19, 4  }
 0x9eb   : > { %s13051_s13 = smov %s10464_s14  ;;  %s13052_s14 = smov %s10468_s15 }
 0x9ec   : > { %s13054_s16 = smov %s10616_s19  ;;  %25 = sbr.rel (!%p23_p4) target bundleno = 8 (0x8), region = 129 }
 0x9f0   : > { %s13053_s15 = smov %s13050_s23 }
 0x9f3   :  { %9083 = vsyncpa [#allocation4], 1 }
 0x9f4   :  { %9085 = vsyncpa [#allocation4 + $0x1], 1 }
 0x9f5   :  { %9086 = vsyncpa [#allocation5], 1 }
 0x9f6   :  { %9088 = vsyncpa [#allocation5 + $0x1], 1 }

</bundles_post_ra>
